<compile_context>
chip_gen: v7x
topology: tpu7x:2x2x1
jax: 0.10.0
libtpu: 0.0.40
codegen_flags: <defaults>
</compile_context>

<pallas_src>
import functools
import math

import jax
import jax.numpy as jnp
from jax.experimental import pallas as pl
from jax.experimental.pallas import tpu as pltpu

MY_INF = 1000000000000.0
LN_EPS = 1e-5
_HP = jax.lax.Precision.HIGHEST           # high-precision reference matmuls only
_VMEM_LIMIT = 48 * 1024 * 1024            # > scoped defaults, < v7x physical


# ---------------------------------------------------------------------------
# In-kernel helpers
# ---------------------------------------------------------------------------
def _ln_f32(x, gamma, beta, eps=LN_EPS):
    mean = jnp.mean(x, axis=-1, keepdims=True)
    var = jnp.mean((x - mean) ** 2, axis=-1, keepdims=True)
    return (x - mean) * jax.lax.rsqrt(var + eps) * gamma + beta


# ---------------------------------------------------------------------------
# Pallas kernels
# ---------------------------------------------------------------------------
def _attn_layer_kernel(*refs, heads, causal, has_ffn):
    """Fused layer kernel.

    [K/V proj+head split (hoisted, qi==0)] -> Q proj -> batched per-head
    attention -> single out proj -> +residual -> LayerNorm
    [-> FFN -> +residual -> LayerNorm].

    Grid = (batch, q-tile). q-tile axis is "arbitrary" (K/V scratch carries).
    """
    if has_ffn:
        (xq_ref, kv_ref, qpad_ref, kpad_ref,
         wq_ref, wk_ref, wv_ref, wo_ref, abias_ref,
         w1_ref, b1_ref, w2_ref, fbias_ref,
         out_ref, k_scr, v_scr) = refs
    else:
        (xq_ref, kv_ref, qpad_ref, kpad_ref,
         wq_ref, wk_ref, wv_ref, wo_ref, abias_ref,
         out_ref, k_scr, v_scr) = refs

    TQ, D = xq_ref.shape[1], xq_ref.shape[2]
    Lk = kv_ref.shape[1]
    dk = D // heads
    qi = pl.program_id(1)

    ab = abias_ref[...]                                   # (6, D) f32 packed
    bq, bk, bv, bo = ab[0:1], ab[1:2], ab[2:3], ab[3:4]
    g1, be1 = ab[4:5], ab[5:6]

    # --- K/V projection + head split, hoisted out of the q-tile axis ----------
    @pl.when(qi == 0)
    def _():
        kv = kv_ref[0]                                    # (Lk, D) bf16 -> MXU
        k = jnp.dot(kv, wk_ref[...], preferred_element_type=jnp.float32) + bk
        v = jnp.dot(kv, wv_ref[...], preferred_element_type=jnp.float32) + bv
        k_scr[...] = k.reshape(Lk, heads, dk).transpose(1, 0, 2).astype(k_scr.dtype)
        v_scr[...] = v.reshape(Lk, heads, dk).transpose(1, 0, 2).astype(v_scr.dtype)
        # TODO(synk): for long Lk on v7x (64 MiB VMEM) tile Lk with an online
        # (flash) softmax instead of holding full K/V and (H, TQ, Lk) scores.

    # --- Q projection (scale folded in) ---------------------------------------
    xq = xq_ref[0]                                        # (TQ, D) bf16
    q = jnp.dot(xq, wq_ref[...], preferred_element_type=jnp.float32) + bq
    q = q * (1.0 / math.sqrt(dk))
    qh = q.reshape(TQ, heads, dk).transpose(1, 0, 2).astype(jnp.bfloat16)  # (H,TQ,dk)

    kh = k_scr[...]                                       # (H, Lk, dk) bf16
    vh = v_scr[...]

    # --- Scores + in-kernel mask (padding + optional causal) ------------------
    s = jnp.einsum("hqd,hkd->hqk", qh, kh,
                   preferred_element_type=jnp.float32)    # (H, TQ, Lk) f32
    qm = qpad_ref[0] != 0                                 # (TQ, 1)
    km = kpad_ref[0] != 0                                 # (1, Lk)
    msk = jnp.logical_or(qm, km)                          # (TQ, Lk)
    if causal:
        rows = jax.lax.broadcasted_iota(jnp.int32, (TQ, Lk), 0) + qi * TQ
        cols = jax.lax.broadcasted_iota(jnp.int32, (TQ, Lk), 1)
        msk = jnp.logical_or(msk, cols > rows)
    s = jnp.where(msk[None, :, :], -MY_INF, s)

    # --- Softmax (f32) ---------------------------------------------------------
    s = s - jnp.max(s, axis=-1, keepdims=True)
    p = jnp.exp(s)
    p = p * pl.reciprocal(jnp.sum(p, axis=-1, keepdims=True), approx=True)

    # --- Context + single fused output projection ------------------------------
    ctx = jnp.einsum("hqk,hkd->hqd", p.astype(jnp.bfloat16), vh,
                     preferred_element_type=jnp.float32)  # (H, TQ, dk) f32
    ctx2 = ctx.transpose(1, 0, 2).reshape(TQ, D).astype(jnp.bfloat16)
    o = jnp.dot(ctx2, wo_ref[...], preferred_element_type=jnp.float32) + bo

    # --- Residual + LayerNorm epilogue (f32) -----------------------------------
    y = _ln_f32(xq.astype(jnp.float32) + o, g1, be1)

    if has_ffn:
        fb = fbias_ref[...]                               # (3, D) f32 packed
        b2, g2, be2 = fb[0:1], fb[1:2], fb[2:3]
        h = jnp.dot(y.astype(jnp.bfloat16), w1_ref[...],
                    preferred_element_type=jnp.float32) + b1_ref[...]
        h = jnp.maximum(h, 0.0).astype(jnp.bfloat16)
        z = jnp.dot(h, w2_ref[...], preferred_element_type=jnp.float32) + b2
        y = _ln_f32(y + z, g2, be2)

    out_ref[0] = y.astype(out_ref.dtype)


def _linear_kernel(x_ref, w_ref, b_ref, out_ref):
    """(TM, D) @ (D, TN) + b tile of the final vocabulary projection."""
    out_ref[...] = (jnp.dot(x_ref[...], w_ref[...],
                            preferred_element_type=jnp.float32)
                    + b_ref[...]).astype(out_ref.dtype)


# ---------------------------------------------------------------------------
# Tile helpers (prefer large, 256-aligned tiles when shapes allow)
# ---------------------------------------------------------------------------
def _q_tile(L):
    for t in (512, 256, 128):
        if L % t == 0:
            return t
    return L


def _row_tile(R):
    for t in (1024, 512, 256):
        if R % t == 0:
            return t
    return R


def _lane_tile(V):
    for t in (1024, 512, 256):
        if V % t == 0:
            return t
    return V


# ---------------------------------------------------------------------------
# Wrappers (pallas_call plumbing)
# ---------------------------------------------------------------------------
def attention_layer(x_q, x_kv, q_pad, k_pad, causal, heads, attn_p, ln1, ffn=None):
    """One fused pallas_call:
         y = LN1(x_q + MHA(x_q, x_kv, x_kv, mask))
         if ffn: y = LN2(y + FFN(y))
       mask = padding(q_pad, k_pad) [+ causal], built in-kernel.
    """
    B, Lq, D = x_q.shape
    Lk = x_kv.shape[1]
    TQ = _q_tile(Lq)
    nq = Lq // TQ
    has_ffn = ffn is not None
    bf16 = jnp.bfloat16

    abias = jnp.concatenate([attn_p["bq"], attn_p["bk"], attn_p["bv"],
                             attn_p["bo"], ln1[0], ln1[1]], axis=0)   # (6, D) f32
    q_pad3 = q_pad.reshape(B, Lq, 1).astype(jnp.int32)
    k_pad3 = k_pad.reshape(B, 1, Lk).astype(jnp.int32)

    full2 = lambda b, qi: (0, 0)
    # NOTE: constant-index weight blocks could use pipeline_mode=pl.Buffered(1)
    # to skip double-buffering on v7x; left at the default here.
    in_specs = [
        pl.BlockSpec((1, TQ, D), lambda b, qi: (b, qi, 0)),   # x_q (also residual)
        pl.BlockSpec((1, Lk, D), lambda b, qi: (b, 0, 0)),    # kv source
        pl.BlockSpec((1, TQ, 1), lambda b, qi: (b, qi, 0)),   # q padding flags
        pl.BlockSpec((1, 1, Lk), lambda b, qi: (b, 0, 0)),    # k padding flags
        pl.BlockSpec((D, D), full2), pl.BlockSpec((D, D), full2),   # wq, wk
        pl.BlockSpec((D, D), full2), pl.BlockSpec((D, D), full2),   # wv, wo
        pl.BlockSpec((6, D), full2),                                # packed biases+LN1
    ]
    operands = [x_q.astype(bf16), x_kv.astype(bf16), q_pad3, k_pad3,
                attn_p["wq"].astype(bf16), attn_p["wk"].astype(bf16),
                attn_p["wv"].astype(bf16), attn_p["wo"].astype(bf16), abias]

    if has_ffn:
        d_ff = ffn["w1"].shape[1]
        fbias = jnp.concatenate([ffn["b2"], ffn["g"], ffn["b"]], axis=0)  # (3, D)
        in_specs += [pl.BlockSpec((D, d_ff), full2), pl.BlockSpec((1, d_ff), full2),
                     pl.BlockSpec((d_ff, D), full2), pl.BlockSpec((3, D), full2)]
        operands += [ffn["w1"].astype(bf16), ffn["b1"],
                     ffn["w2"].astype(bf16), fbias]

    kernel = functools.partial(_attn_layer_kernel, heads=heads,
                               causal=causal, has_ffn=has_ffn)
    d_k = D // heads

    return pl.pallas_call(
        kernel,
        out_shape=jax.ShapeDtypeStruct((B, Lq, D), bf16),
        grid=(B, nq),
        in_specs=in_specs,
        out_specs=pl.BlockSpec((1, TQ, D), lambda b, qi: (b, qi, 0)),
        scratch_shapes=[pltpu.VMEM((heads, Lk, d_k), bf16),     # K heads
                        pltpu.VMEM((heads, Lk, d_k), bf16)],    # V heads
        compiler_params=pltpu.CompilerParams(
            dimension_semantics=("parallel", "arbitrary"),
            vmem_limit_bytes=_VMEM_LIMIT),
    )(*operands)


def linear_rows(x, w, b):
    """Final output projection (d_model -> vocab), tiled over rows and vocab."""
    B, L, D = x.shape
    V = w.shape[1]
    R = B * L
    TM = _row_tile(R)
    TN = _lane_tile(V)
    xf = x.reshape(R, D).astype(jnp.bfloat16)
    y = pl.pallas_call(
        _linear_kernel,
        out_shape=jax.ShapeDtypeStruct((R, V), jnp.float32),
        grid=(R // TM, V // TN),
        in_specs=[pl.BlockSpec((TM, D), lambda i, j: (i, 0)),
                  pl.BlockSpec((D, TN), lambda i, j: (0, j)),
                  pl.BlockSpec((1, TN), lambda i, j: (0, j))],
        out_specs=pl.BlockSpec((TM, TN), lambda i, j: (i, j)),
        compiler_params=pltpu.CompilerParams(
            dimension_semantics=("parallel", "parallel"),
            vmem_limit_bytes=_VMEM_LIMIT),
    )(xf, w.astype(jnp.bfloat16), b)
    return y.reshape(B, L, V)


# ---------------------------------------------------------------------------
# Host-side pieces (embedding, positional encoding, mask for the reference)
# ---------------------------------------------------------------------------
def generate_mask(q_pad, k_pad, with_left_mask):
    """Mirror of Transformer.generate_mask (reference path only)."""
    n, q_len = q_pad.shape
    k_len = k_pad.shape[1]
    if with_left_mask:
        base = jnp.triu(jnp.ones((q_len, k_len), jnp.bool_), k=1)
        base = jnp.broadcast_to(base[None], (n, q_len, k_len))
    else:
        base = jnp.zeros((n, q_len, k_len), jnp.bool_)
    return base | q_pad[:, :, None] | k_pad[:, None, :]


def positional_encoding(d_model, max_seq_len):
    pos = jnp.arange(max_seq_len, dtype=jnp.float32)[:, None]
    two_i = jnp.arange(0, d_model, 2, dtype=jnp.float32)[None, :]
    angle = pos / jnp.power(10000.0, two_i / d_model)
    return jnp.stack([jnp.sin(angle), jnp.cos(angle)],
                     axis=-1).reshape(1, max_seq_len, d_model)


def embed_and_pe(tokens, table, pe, d_model):
    # TODO(synk): embedding gather + positional add kept in plain JAX (the
    # data-dependent gather would need a scalar-prefetch/pl.Element kernel).
    x = table[tokens]
    return x * (d_model ** 0.5) + pe[:, :tokens.shape[1], :]


# ---------------------------------------------------------------------------
# Full Transformer forward (Pallas path)
# ---------------------------------------------------------------------------
def transformer_forward(params, src, dst, pe, pad_idx, heads):
    d_model = params["enc_emb"].shape[1]
    src_pad = (src == pad_idx)
    dst_pad = (dst == pad_idx)

    # --- Encoder: one fused pallas_call per layer ---
    x = embed_and_pe(src, params["enc_emb"], pe, d_model)
    for lp in params["enc_layers"]:
        x = attention_layer(
            x, x, src_pad, src_pad, False, heads,
            lp["self_attn"], (lp["ln1_g"], lp["ln1_b"]),
            ffn=dict(w1=lp["w1"], b1=lp["b1"], w2=lp["w2"], b2=lp["b2"],
                     g=lp["ln2_g"], b=lp["ln2_b"]))
    enc_kv = x

    # --- Decoder: two fused pallas_calls per layer ---
    y = embed_and_pe(dst, params["dec_emb"], pe, d_model)
    for lp in params["dec_layers"]:
        y = attention_layer(
            y, y, dst_pad, dst_pad, True, heads,
            lp["self_attn"], (lp["ln1_g"], lp["ln1_b"]), ffn=None)
        y = attention_layer(
            y, enc_kv, dst_pad, src_pad, False, heads,
            lp["cross_attn"], (lp["ln2_g"], lp["ln2_b"]),
            ffn=dict(w1=lp["w1"], b1=lp["b1"], w2=lp["w2"], b2=lp["b2"],
                     g=lp["ln3_g"], b=lp["ln3_b"]))

    return linear_rows(y, params["wout"], params["bout"])


# ---------------------------------------------------------------------------
# Deterministic parameter init (PyTorch-style linears)
# ---------------------------------------------------------------------------
def _linear_params(key, d_in, d_out):
    kw, kb = jax.random.split(key)
    bound = 1.0 / math.sqrt(d_in)
    w = jax.random.uniform(kw, (d_in, d_out), jnp.float32, -bound, bound)
    b = jax.random.uniform(kb, (1, d_out), jnp.float32, -bound, bound)
    return w, b


def _ln_params(d):
    return jnp.ones((1, d), jnp.float32), jnp.zeros((1, d), jnp.float32)


def _attn_params(key, d_model):
    ks = jax.random.split(key, 4)
    wq, bq = _linear_params(ks[0], d_model, d_model)
    wk, bk = _linear_params(ks[1], d_model, d_model)
    wv, bv = _linear_params(ks[2], d_model, d_model)
    wo, bo = _linear_params(ks[3], d_model, d_model)
    return dict(wq=wq, bq=bq, wk=wk, bk=bk, wv=wv, bv=bv, wo=wo, bo=bo)


def _enc_layer_params(key, d_model, d_ff):
    ks = jax.random.split(key, 3)
    w1, b1 = _linear_params(ks[1], d_model, d_ff)
    w2, b2 = _linear_params(ks[2], d_ff, d_model)
    g1, bt1 = _ln_params(d_model)
    g2, bt2 = _ln_params(d_model)
    return dict(self_attn=_attn_params(ks[0], d_model),
                w1=w1, b1=b1, w2=w2, b2=b2,
                ln1_g=g1, ln1_b=bt1, ln2_g=g2, ln2_b=bt2)


def _dec_layer_params(key, d_model, d_ff):
    ks = jax.random.split(key, 4)
    w1, b1 = _linear_params(ks[2], d_model, d_ff)
    w2, b2 = _linear_params(ks[3], d_ff, d_model)
    g1, bt1 = _ln_params(d_model)
    g2, bt2 = _ln_params(d_model)
    g3, bt3 = _ln_params(d_model)
    return dict(self_attn=_attn_params(ks[0], d_model),
                cross_attn=_attn_params(ks[1], d_model),
                w1=w1, b1=b1, w2=w2, b2=b2,
                ln1_g=g1, ln1_b=bt1, ln2_g=g2, ln2_b=bt2, ln3_g=g3, ln3_b=bt3)


def init_transformer_params(key, src_vocab, dst_vocab, pad_idx, d_model, d_ff, n_layers):
    keys = jax.random.split(key, 2 * n_layers + 3)
    # Embedding std 1/sqrt(d_model): post-PE activations stay O(1), which keeps
    # attention logits moderate and the bf16 MXU path numerically well-behaved.
    emb_scale = 1.0 / math.sqrt(d_model)
    enc_emb = jax.random.normal(keys[0], (src_vocab, d_model), jnp.float32) * emb_scale
    dec_emb = jax.random.normal(keys[1], (dst_vocab, d_model), jnp.float32) * emb_scale
    enc_emb = enc_emb.at[pad_idx].set(0.0)   # nn.Embedding padding_idx row
    dec_emb = dec_emb.at[pad_idx].set(0.0)
    enc_layers = [_enc_layer_params(keys[2 + i], d_model, d_ff) for i in range(n_layers)]
    dec_layers = [_dec_layer_params(keys[2 + n_layers + i], d_model, d_ff)
                  for i in range(n_layers)]
    wout, bout = _linear_params(keys[-1], d_model, dst_vocab)
    return dict(enc_emb=enc_emb, dec_emb=dec_emb,
                enc_layers=enc_layers, dec_layers=dec_layers,
                wout=wout, bout=bout)


# ---------------------------------------------------------------------------
# Pure-JAX f32 reference (mirrors the PyTorch forward, eval mode)
# ---------------------------------------------------------------------------
def _mm(a, b):
    return jnp.matmul(a, b, precision=_HP)


def _ref_ln(x, g, b, eps=LN_EPS):
    mean = jnp.mean(x, axis=-1, keepdims=True)
    var = jnp.mean((x - mean) ** 2, axis=-1, keepdims=True)
    return (x - mean) * jax.lax.rsqrt(var + eps) * g + b


def _ref_mha(q_in, kv_in, mask, p, heads):
    B, Lq, D = q_in.shape
    Lk = kv_in.shape[1]
    dk = D // heads
    q = _mm(q_in, p["wq"]) + p["bq"]
    k = _mm(kv_in, p["wk"]) + p["bk"]
    v = _mm(kv_in, p["wv"]) + p["bv"]
    q = q.reshape(B, Lq, heads, dk).transpose(0, 2, 1, 3)
    k = k.reshape(B, Lk, heads, dk).transpose(0, 2, 1, 3)
    v = v.reshape(B, Lk, heads, dk).transpose(0, 2, 1, 3)
    s = jnp.einsum("bhqd,bhkd->bhqk", q, k, precision=_HP) / math.sqrt(dk)
    if mask is not None:
        s = jnp.where(mask[:, None, :, :], -MY_INF, s)
    s = s - jnp.max(s, axis=-1, keepdims=True)
    a = jnp.exp(s)
    a = a / jnp.sum(a, axis=-1, keepdims=True)
    ctx = jnp.einsum("bhqk,bhkd->bhqd", a, v, precision=_HP)
    ctx = ctx.transpose(0, 2, 1, 3).reshape(B, Lq, D)
    return _mm(ctx, p["wo"]) + p["bo"]


def _ref_ffn(x, w1, b1, w2, b2):
    return _mm(jnp.maximum(_mm(x, w1) + b1, 0.0), w2) + b2


def _ref_encoder_layer(x, src_mask, lp, heads):
    x = _ref_ln(x + _ref_mha(x, x, src_mask, lp["self_attn"], heads),
                lp["ln1_g"], lp["ln1_b"])
    x = _ref_ln(x + _ref_ffn(x, lp["w1"], lp["b1"], lp["w2"], lp["b2"]),
                lp["ln2_g"], lp["ln2_b"])
    return x


def _ref_decoder_layer(x, enc_kv, dst_mask, src_dst_mask, lp, heads):
    x = _ref_ln(x + _ref_mha(x, x, dst_mask, lp["self_attn"], heads),
                lp["ln1_g"], lp["ln1_b"])
    x = _ref_ln(x + _ref_mha(x, enc_kv, src_dst_mask, lp["cross_attn"], heads),
                lp["ln2_g"], lp["ln2_b"])
    x = _ref_ln(x + _ref_ffn(x, lp["w1"], lp["b1"], lp["w2"], lp["b2"]),
                lp["ln3_g"], lp["ln3_b"])
    return x


def ref_transformer(params, src, dst, pe, pad_idx, heads):
    d_model = params["enc_emb"].shape[1]
    src_pad = src == pad_idx
    dst_pad = dst == pad_idx
    src_mask = generate_mask(src_pad, src_pad, False)
    dst_mask = generate_mask(dst_pad, dst_pad, True)
    src_dst_mask = generate_mask(dst_pad, src_pad, False)

    x = params["enc_emb"][src] * (d_model ** 0.5) + pe[:, :src.shape[1], :]
    for lp in params["enc_layers"]:
        x = _ref_encoder_layer(x, src_mask, lp, heads)

    y = params["dec_emb"][dst] * (d_model ** 0.5) + pe[:, :dst.shape[1], :]
    for lp in params["dec_layers"]:
        y = _ref_decoder_layer(y, x, dst_mask, src_dst_mask, lp, heads)

    return _mm(y, params["wout"]) + params["bout"]


# ---------------------------------------------------------------------------
if __name__ == "__main__":
    # Small but lane-dense shapes (d_model/d_ff/vocab multiples of 128).
    SRC_VOCAB, DST_VOCAB, PAD_IDX = 128, 128, 0
    D_MODEL, D_FF, N_LAYERS, HEADS = 128, 256, 2, 4
    MAX_SEQ_LEN = 32
    B, SRC_LEN, DST_LEN = 2, 16, 8

    root = jax.random.PRNGKey(0)
    k_src, k_dst, k_par = jax.random.split(root, 3)

    src = jax.random.randint(k_src, (B, SRC_LEN), 1, SRC_VOCAB)
    dst = jax.random.randint(k_dst, (B, DST_LEN), 1, DST_VOCAB)
    # pad the tail of batch element 1 so the padding masks are exercised
    src = src.at[1, SRC_LEN - 4:].set(PAD_IDX)
    dst = dst.at[1, DST_LEN - 2:].set(PAD_IDX)

    params = init_transformer_params(k_par, SRC_VOCAB, DST_VOCAB, PAD_IDX,
                                     D_MODEL, D_FF, N_LAYERS)
    pe = positional_encoding(D_MODEL, MAX_SEQ_LEN)

    fwd = jax.jit(transformer_forward, static_argnums=(4, 5))
    logits = jax.block_until_ready(fwd(params, src, dst, pe, PAD_IDX, HEADS))

    ref = ref_transformer(params, src, dst, pe, PAD_IDX, HEADS)
    assert logits.shape == (B, DST_LEN, DST_VOCAB)
    max_err = float(jnp.max(jnp.abs(logits - ref)))
    # bf16 activations/weights through 4 layers vs. an f32 reference -> bf16-level
    # tolerance (real bugs produce O(1) errors and still trip this check).
    assert jnp.allclose(logits, ref, atol=0.15, rtol=0.15), \
        f"mismatch vs pure-JAX reference (max abs err {max_err})"

    print("KERNEL_OK")
</pallas_src>

<mosaic_0001>
module attributes {stable_mosaic.version = 11 : i64} {
  func.func @_attn_layer_kernel(%arg0: i32, %arg1: i32, %arg2: memref<1x16x128xbf16, #tpu.memory_space<vmem>>, %arg3: memref<1x16x128xbf16, #tpu.memory_space<vmem>>, %arg4: memref<1x16x1xi32, #tpu.memory_space<vmem>>, %arg5: memref<1x1x16xi32, #tpu.memory_space<vmem>>, %arg6: memref<128x128xbf16, #tpu.memory_space<vmem>>, %arg7: memref<128x128xbf16, #tpu.memory_space<vmem>>, %arg8: memref<128x128xbf16, #tpu.memory_space<vmem>>, %arg9: memref<128x128xbf16, #tpu.memory_space<vmem>>, %arg10: memref<6x128xf32, #tpu.memory_space<vmem>>, %arg11: memref<128x256xbf16, #tpu.memory_space<vmem>>, %arg12: memref<1x256xf32, #tpu.memory_space<vmem>>, %arg13: memref<256x128xbf16, #tpu.memory_space<vmem>>, %arg14: memref<3x128xf32, #tpu.memory_space<vmem>>, %arg15: memref<1x16x128xbf16, #tpu.memory_space<vmem>>, %arg16: memref<4x16x32xbf16, #tpu.memory_space<vmem>>, %arg17: memref<4x16x32xbf16, #tpu.memory_space<vmem>>) attributes {dimension_semantics = [#tpu.dimension_semantics<parallel>, #tpu.dimension_semantics<arbitrary>], iteration_bounds = array<i64: 2, 1>, scalar_prefetch = 0 : i64, scratch_operands = 2 : i64, tpu.core_type = #tpu.core_type<tc>, window_params = [{transform_indices = @transform_0, window_bounds = array<i64: 1, 16, 128>}, {transform_indices = @transform_1, window_bounds = array<i64: 1, 16, 128>}, {transform_indices = @transform_2, window_bounds = array<i64: 1, 16, 1>}, {transform_indices = @transform_3, window_bounds = array<i64: 1, 1, 16>}, {pipeline_mode = #tpu.pipeline_mode<synchronous>, transform_indices = @transform_4, window_bounds = array<i64: 128, 128>}, {pipeline_mode = #tpu.pipeline_mode<synchronous>, transform_indices = @transform_5, window_bounds = array<i64: 128, 128>}, {pipeline_mode = #tpu.pipeline_mode<synchronous>, transform_indices = @transform_6, window_bounds = array<i64: 128, 128>}, {pipeline_mode = #tpu.pipeline_mode<synchronous>, transform_indices = @transform_7, window_bounds = array<i64: 128, 128>}, {pipeline_mode = #tpu.pipeline_mode<synchronous>, transform_indices = @transform_8, window_bounds = array<i64: 6, 128>}, {pipeline_mode = #tpu.pipeline_mode<synchronous>, transform_indices = @transform_9, window_bounds = array<i64: 128, 256>}, {pipeline_mode = #tpu.pipeline_mode<synchronous>, transform_indices = @transform_10, window_bounds = array<i64: 1, 256>}, {pipeline_mode = #tpu.pipeline_mode<synchronous>, transform_indices = @transform_11, window_bounds = array<i64: 256, 128>}, {pipeline_mode = #tpu.pipeline_mode<synchronous>, transform_indices = @transform_12, window_bounds = array<i64: 3, 128>}, {transform_indices = @transform_13, window_bounds = array<i64: 1, 16, 128>}]} {
    %c0 = arith.constant 0 : index
    %c0_0 = arith.constant 0 : index
    %0 = vector.load %arg10[%c0, %c0_0] : memref<6x128xf32, #tpu.memory_space<vmem>>, vector<6x128xf32>
    %1 = vector.extract_strided_slice %0 {offsets = [0, 0], sizes = [1, 128], strides = [1, 1]} : vector<6x128xf32> to vector<1x128xf32>
    %2 = vector.extract_strided_slice %0 {offsets = [1, 0], sizes = [1, 128], strides = [1, 1]} : vector<6x128xf32> to vector<1x128xf32>
    %3 = vector.extract_strided_slice %0 {offsets = [2, 0], sizes = [1, 128], strides = [1, 1]} : vector<6x128xf32> to vector<1x128xf32>
    %4 = vector.extract_strided_slice %0 {offsets = [3, 0], sizes = [1, 128], strides = [1, 1]} : vector<6x128xf32> to vector<1x128xf32>
    %5 = vector.extract_strided_slice %0 {offsets = [4, 0], sizes = [1, 128], strides = [1, 1]} : vector<6x128xf32> to vector<1x128xf32>
    %6 = vector.extract_strided_slice %0 {offsets = [5, 0], sizes = [1, 128], strides = [1, 1]} : vector<6x128xf32> to vector<1x128xf32>
    %c0_i32 = arith.constant 0 : i32
    %7 = arith.cmpi eq, %arg1, %c0_i32 : i32
    %8 = arith.extui %7 : i1 to i32
    %c0_i32_1 = arith.constant 0 : i32
    %9 = arith.cmpi ne, %8, %c0_i32_1 : i32
    scf.if %9 {
      %c0_54 = arith.constant 0 : index
      %c0_55 = arith.constant 0 : index
      %c0_56 = arith.constant 0 : index
      %127 = vector.load %arg3[%c0_54, %c0_55, %c0_56] : memref<1x16x128xbf16, #tpu.memory_space<vmem>>, vector<1x16x128xbf16>
      %128 = vector.shape_cast %127 : vector<1x16x128xbf16> to vector<16x128xbf16>
      %c0_57 = arith.constant 0 : index
      %c0_58 = arith.constant 0 : index
      %129 = vector.load %arg7[%c0_57, %c0_58] : memref<128x128xbf16, #tpu.memory_space<vmem>>, vector<128x128xbf16>
      %cst_59 = arith.constant dense<0.000000e+00> : vector<16x128xf32>
      %130 = tpu.matmul %128, %129, %cst_59 {dimension_numbers = #tpu.dot_dimension_numbers<[1], [0], [0], [1], [0, 0, 1, 1], [], []>} : vector<16x128xbf16>, vector<128x128xbf16>, vector<16x128xf32> -> vector<16x128xf32>
      %131 = vector.broadcast %2 : vector<1x128xf32> to vector<16x128xf32>
      %132 = arith.addf %130, %131 : vector<16x128xf32>
      %c0_60 = arith.constant 0 : index
      %c0_61 = arith.constant 0 : index
      %133 = vector.load %arg8[%c0_60, %c0_61] : memref<128x128xbf16, #tpu.memory_space<vmem>>, vector<128x128xbf16>
      %cst_62 = arith.constant dense<0.000000e+00> : vector<16x128xf32>
      %134 = tpu.matmul %128, %133, %cst_62 {dimension_numbers = #tpu.dot_dimension_numbers<[1], [0], [0], [1], [0, 0, 1, 1], [], []>} : vector<16x128xbf16>, vector<128x128xbf16>, vector<16x128xf32> -> vector<16x128xf32>
      %135 = vector.broadcast %3 : vector<1x128xf32> to vector<16x128xf32>
      %136 = arith.addf %134, %135 : vector<16x128xf32>
      %137 = vector.shape_cast %132 : vector<16x128xf32> to vector<16x4x32xf32>
      %138 = tpu.transpose %137, [1, 0, 2] : vector<16x4x32xf32> -> vector<4x16x32xf32>
      %139 = arith.truncf %138 : vector<4x16x32xf32> to vector<4x16x32xbf16>
      %c0_63 = arith.constant 0 : index
      %c0_64 = arith.constant 0 : index
      %c0_65 = arith.constant 0 : index
      %140 = vector.load %arg16[%c0_63, %c0_64, %c0_65] : memref<4x16x32xbf16, #tpu.memory_space<vmem>>, vector<4x16x32xbf16>
      tpu.vector_store %arg16[%c0_63, %c0_64, %c0_65], %139 {strides = array<i32>} : memref<4x16x32xbf16, #tpu.memory_space<vmem>>, vector<4x16x32xbf16>,
      %141 = vector.shape_cast %136 : vector<16x128xf32> to vector<16x4x32xf32>
      %142 = tpu.transpose %141, [1, 0, 2] : vector<16x4x32xf32> -> vector<4x16x32xf32>
      %143 = arith.truncf %142 : vector<4x16x32xf32> to vector<4x16x32xbf16>
      %c0_66 = arith.constant 0 : index
      %c0_67 = arith.constant 0 : index
      %c0_68 = arith.constant 0 : index
      %144 = vector.load %arg17[%c0_66, %c0_67, %c0_68] : memref<4x16x32xbf16, #tpu.memory_space<vmem>>, vector<4x16x32xbf16>
      tpu.vector_store %arg17[%c0_66, %c0_67, %c0_68], %143 {strides = array<i32>} : memref<4x16x32xbf16, #tpu.memory_space<vmem>>, vector<4x16x32xbf16>,
    } else {
    }
    %c0_2 = arith.constant 0 : index
    %c0_3 = arith.constant 0 : index
    %c0_4 = arith.constant 0 : index
    %10 = vector.load %arg2[%c0_2, %c0_3, %c0_4] : memref<1x16x128xbf16, #tpu.memory_space<vmem>>, vector<1x16x128xbf16>
    %11 = vector.shape_cast %10 : vector<1x16x128xbf16> to vector<16x128xbf16>
    %c0_5 = arith.constant 0 : index
    %c0_6 = arith.constant 0 : index
    %12 = vector.load %arg6[%c0_5, %c0_6] : memref<128x128xbf16, #tpu.memory_space<vmem>>, vector<128x128xbf16>
    %cst = arith.constant dense<0.000000e+00> : vector<16x128xf32>
    %13 = tpu.matmul %11, %12, %cst {dimension_numbers = #tpu.dot_dimension_numbers<[1], [0], [0], [1], [0, 0, 1, 1], [], []>} : vector<16x128xbf16>, vector<128x128xbf16>, vector<16x128xf32> -> vector<16x128xf32>
    %14 = vector.broadcast %1 : vector<1x128xf32> to vector<16x128xf32>
    %15 = arith.addf %13, %14 : vector<16x128xf32>
    %cst_7 = arith.constant 0.176776692 : f32
    %16 = vector.broadcast %cst_7 : f32 to vector<16x128xf32>
    %17 = arith.mulf %15, %16 : vector<16x128xf32>
    %18 = vector.shape_cast %17 : vector<16x128xf32> to vector<16x4x32xf32>
    %19 = tpu.transpose %18, [1, 0, 2] : vector<16x4x32xf32> -> vector<4x16x32xf32>
    %20 = arith.truncf %19 : vector<4x16x32xf32> to vector<4x16x32xbf16>
    %c0_8 = arith.constant 0 : index
    %c0_9 = arith.constant 0 : index
    %c0_10 = arith.constant 0 : index
    %21 = vector.load %arg16[%c0_8, %c0_9, %c0_10] : memref<4x16x32xbf16, #tpu.memory_space<vmem>>, vector<4x16x32xbf16>
    %c0_11 = arith.constant 0 : index
    %c0_12 = arith.constant 0 : index
    %c0_13 = arith.constant 0 : index
    %22 = vector.load %arg17[%c0_11, %c0_12, %c0_13] : memref<4x16x32xbf16, #tpu.memory_space<vmem>>, vector<4x16x32xbf16>
    "tpu.trace_start"() <{level = 10 : i32, message = "hqd,hkd->hqk"}> : () -> ()
    %cst_14 = arith.constant dense<0.000000e+00> : vector<4x16x16xf32>
    %23 = tpu.matmul %20, %21, %cst_14 {dimension_numbers = #tpu.dot_dimension_numbers<[2], [2], [1], [1], [0, 0, 0, 1, 1, 1], [0], [0]>} : vector<4x16x32xbf16>, vector<4x16x32xbf16>, vector<4x16x16xf32> -> vector<4x16x16xf32>
    "tpu.trace_stop"() : () -> ()
    %c0_15 = arith.constant 0 : index
    %c0_16 = arith.constant 0 : index
    %c0_17 = arith.constant 0 : index
    %24 = vector.load %arg4[%c0_15, %c0_16, %c0_17] : memref<1x16x1xi32, #tpu.memory_space<vmem>>, vector<1x16x1xi32>
    %25 = vector.shape_cast %24 : vector<1x16x1xi32> to vector<16x1xi32>
    %c0_i32_18 = arith.constant 0 : i32
    %26 = vector.broadcast %c0_i32_18 : i32 to vector<16x1xi32>
    %27 = arith.cmpi ne, %25, %26 : vector<16x1xi32>
    %c0_19 = arith.constant 0 : index
    %c0_20 = arith.constant 0 : index
    %c0_21 = arith.constant 0 : index
    %28 = vector.load %arg5[%c0_19, %c0_20, %c0_21] : memref<1x1x16xi32, #tpu.memory_space<vmem>>, vector<1x1x16xi32>
    %29 = vector.shape_cast %28 : vector<1x1x16xi32> to vector<1x16xi32>
    %c0_i32_22 = arith.constant 0 : i32
    %30 = vector.broadcast %c0_i32_22 : i32 to vector<1x16xi32>
    %31 = arith.cmpi ne, %29, %30 : vector<1x16xi32>
    %32 = vector.broadcast %27 : vector<16x1xi1> to vector<16x16xi1>
    %33 = vector.broadcast %31 : vector<1x16xi1> to vector<16x16xi1>
    %34 = arith.ori %32, %33 : vector<16x16xi1>
    %35 = vector.shape_cast %34 : vector<16x16xi1> to vector<1x16x16xi1>
    %cst_23 = arith.constant -9.99999995E+11 : f32
    %36 = vector.shape_cast %35 : vector<1x16x16xi1> to vector<1x16x16xi1>
    %37 = vector.broadcast %36 : vector<1x16x16xi1> to vector<4x16x16xi1>
    %38 = vector.broadcast %cst_23 : f32 to vector<4x16x16xf32>
    %39 = arith.select %37, %38, %23 : vector<4x16x16xi1>, vector<4x16x16xf32>
    %cst_24 = arith.constant dense<0xFF800000> : vector<4x16xf32>
    %40 = vector.multi_reduction <maximumf>, %39, %cst_24 [2] : vector<4x16x16xf32> to vector<4x16xf32>
    %41 = vector.shape_cast %40 : vector<4x16xf32> to vector<4x16x1xf32>
    %42 = vector.broadcast %41 : vector<4x16x1xf32> to vector<4x16x16xf32>
    %43 = arith.subf %39, %42 : vector<4x16x16xf32>
    %44 = math.exp %43 : vector<4x16x16xf32>
    %cst_25 = arith.constant dense<0.000000e+00> : vector<4x16xf32>
    %45 = vector.multi_reduction <add>, %44, %cst_25 [2] : vector<4x16x16xf32> to vector<4x16xf32>
    %46 = vector.shape_cast %45 : vector<4x16xf32> to vector<4x16x1xf32>
    %47 = tpu.reciprocal %46 {approx = true} : vector<4x16x1xf32> -> vector<4x16x1xf32>
    %48 = vector.broadcast %47 : vector<4x16x1xf32> to vector<4x16x16xf32>
    %49 = arith.mulf %44, %48 : vector<4x16x16xf32>
    %50 = arith.truncf %49 : vector<4x16x16xf32> to vector<4x16x16xbf16>
    "tpu.trace_start"() <{level = 10 : i32, message = "hqk,hkd->hqd"}> : () -> ()
    %cst_26 = arith.constant dense<0.000000e+00> : vector<4x16x32xf32>
    %51 = tpu.matmul %50, %22, %cst_26 {dimension_numbers = #tpu.dot_dimension_numbers<[2], [1], [1], [2], [0, 0, 0, 1, 1, 2], [0], [0]>} : vector<4x16x16xbf16>, vector<4x16x32xbf16>, vector<4x16x32xf32> -> vector<4x16x32xf32>
    "tpu.trace_stop"() : () -> ()
    %52 = tpu.transpose %51, [1, 0, 2] : vector<4x16x32xf32> -> vector<16x4x32xf32>
    %53 = vector.shape_cast %52 : vector<16x4x32xf32> to vector<16x128xf32>
    %54 = arith.truncf %53 : vector<16x128xf32> to vector<16x128xbf16>
    %c0_27 = arith.constant 0 : index
    %c0_28 = arith.constant 0 : index
    %55 = vector.load %arg9[%c0_27, %c0_28] : memref<128x128xbf16, #tpu.memory_space<vmem>>, vector<128x128xbf16>
    %cst_29 = arith.constant dense<0.000000e+00> : vector<16x128xf32>
    %56 = tpu.matmul %54, %55, %cst_29 {dimension_numbers = #tpu.dot_dimension_numbers<[1], [0], [0], [1], [0, 0, 1, 1], [], []>} : vector<16x128xbf16>, vector<128x128xbf16>, vector<16x128xf32> -> vector<16x128xf32>
    %57 = vector.broadcast %4 : vector<1x128xf32> to vector<16x128xf32>
    %58 = arith.addf %56, %57 : vector<16x128xf32>
    %59 = arith.extf %11 : vector<16x128xbf16> to vector<16x128xf32>
    %60 = arith.addf %59, %58 : vector<16x128xf32>
    %cst_30 = arith.constant dense<0.000000e+00> : vector<16xf32>
    %61 = vector.multi_reduction <add>, %60, %cst_30 [1] : vector<16x128xf32> to vector<16xf32>
    %62 = vector.shape_cast %61 : vector<16xf32> to vector<16x1xf32>
    %cst_31 = arith.constant 1.280000e+02 : f32
    %63 = vector.broadcast %cst_31 : f32 to vector<16x1xf32>
    %64 = arith.divf %62, %63 : vector<16x1xf32>
    %65 = vector.broadcast %64 : vector<16x1xf32> to vector<16x128xf32>
    %66 = arith.subf %60, %65 : vector<16x128xf32>
    %67 = arith.mulf %66, %66 : vector<16x128xf32>
    %cst_32 = arith.constant dense<0.000000e+00> : vector<16xf32>
    %68 = vector.multi_reduction <add>, %67, %cst_32 [1] : vector<16x128xf32> to vector<16xf32>
    %69 = vector.shape_cast %68 : vector<16xf32> to vector<16x1xf32>
    %cst_33 = arith.constant 1.280000e+02 : f32
    %70 = vector.broadcast %cst_33 : f32 to vector<16x1xf32>
    %71 = arith.divf %69, %70 : vector<16x1xf32>
    %72 = vector.broadcast %64 : vector<16x1xf32> to vector<16x128xf32>
    %73 = arith.subf %60, %72 : vector<16x128xf32>
    %cst_34 = arith.constant 9.99999974E-6 : f32
    %74 = vector.broadcast %cst_34 : f32 to vector<16x1xf32>
    %75 = arith.addf %71, %74 : vector<16x1xf32>
    %76 = math.rsqrt %75 : vector<16x1xf32>
    %77 = vector.broadcast %76 : vector<16x1xf32> to vector<16x128xf32>
    %78 = arith.mulf %73, %77 : vector<16x128xf32>
    %79 = vector.broadcast %5 : vector<1x128xf32> to vector<16x128xf32>
    %80 = arith.mulf %78, %79 : vector<16x128xf32>
    %81 = vector.broadcast %6 : vector<1x128xf32> to vector<16x128xf32>
    %82 = arith.addf %80, %81 : vector<16x128xf32>
    %c0_35 = arith.constant 0 : index
    %c0_36 = arith.constant 0 : index
    %83 = vector.load %arg14[%c0_35, %c0_36] : memref<3x128xf32, #tpu.memory_space<vmem>>, vector<3x128xf32>
    %84 = vector.extract_strided_slice %83 {offsets = [0, 0], sizes = [1, 128], strides = [1, 1]} : vector<3x128xf32> to vector<1x128xf32>
    %85 = vector.extract_strided_slice %83 {offsets = [1, 0], sizes = [1, 128], strides = [1, 1]} : vector<3x128xf32> to vector<1x128xf32>
    %86 = vector.extract_strided_slice %83 {offsets = [2, 0], sizes = [1, 128], strides = [1, 1]} : vector<3x128xf32> to vector<1x128xf32>
    %87 = arith.truncf %82 : vector<16x128xf32> to vector<16x128xbf16>
    %c0_37 = arith.constant 0 : index
    %c0_38 = arith.constant 0 : index
    %88 = vector.load %arg11[%c0_37, %c0_38] : memref<128x256xbf16, #tpu.memory_space<vmem>>, vector<128x256xbf16>
    %cst_39 = arith.constant dense<0.000000e+00> : vector<16x256xf32>
    %89 = tpu.matmul %87, %88, %cst_39 {dimension_numbers = #tpu.dot_dimension_numbers<[1], [0], [0], [1], [0, 0, 1, 1], [], []>} : vector<16x128xbf16>, vector<128x256xbf16>, vector<16x256xf32> -> vector<16x256xf32>
    %c0_40 = arith.constant 0 : index
    %c0_41 = arith.constant 0 : index
    %90 = vector.load %arg12[%c0_40, %c0_41] : memref<1x256xf32, #tpu.memory_space<vmem>>, vector<1x256xf32>
    %91 = vector.broadcast %90 : vector<1x256xf32> to vector<16x256xf32>
    %92 = arith.addf %89, %91 : vector<16x256xf32>
    %cst_42 = arith.constant 0.000000e+00 : f32
    %93 = vector.broadcast %cst_42 : f32 to vector<16x256xf32>
    %94 = arith.maximumf %92, %93 : vector<16x256xf32>
    %95 = arith.truncf %94 : vector<16x256xf32> to vector<16x256xbf16>
    %c0_43 = arith.constant 0 : index
    %c0_44 = arith.constant 0 : index
    %96 = vector.load %arg13[%c0_43, %c0_44] : memref<256x128xbf16, #tpu.memory_space<vmem>>, vector<256x128xbf16>
    %cst_45 = arith.constant dense<0.000000e+00> : vector<16x128xf32>
    %97 = tpu.matmul %95, %96, %cst_45 {dimension_numbers = #tpu.dot_dimension_numbers<[1], [0], [0], [1], [0, 0, 1, 1], [], []>} : vector<16x256xbf16>, vector<256x128xbf16>, vector<16x128xf32> -> vector<16x128xf32>
    %98 = vector.broadcast %84 : vector<1x128xf32> to vector<16x128xf32>
    %99 = arith.addf %97, %98 : vector<16x128xf32>
    %100 = arith.addf %82, %99 : vector<16x128xf32>
    %cst_46 = arith.constant dense<0.000000e+00> : vector<16xf32>
    %101 = vector.multi_reduction <add>, %100, %cst_46 [1] : vector<16x128xf32> to vector<16xf32>
    %102 = vector.shape_cast %101 : vector<16xf32> to vector<16x1xf32>
    %cst_47 = arith.constant 1.280000e+02 : f32
    %103 = vector.broadcast %cst_47 : f32 to vector<16x1xf32>
    %104 = arith.divf %102, %103 : vector<16x1xf32>
    %105 = vector.broadcast %104 : vector<16x1xf32> to vector<16x128xf32>
    %106 = arith.subf %100, %105 : vector<16x128xf32>
    %107 = arith.mulf %106, %106 : vector<16x128xf32>
    %cst_48 = arith.constant dense<0.000000e+00> : vector<16xf32>
    %108 = vector.multi_reduction <add>, %107, %cst_48 [1] : vector<16x128xf32> to vector<16xf32>
    %109 = vector.shape_cast %108 : vector<16xf32> to vector<16x1xf32>
    %cst_49 = arith.constant 1.280000e+02 : f32
    %110 = vector.broadcast %cst_49 : f32 to vector<16x1xf32>
    %111 = arith.divf %109, %110 : vector<16x1xf32>
    %112 = vector.broadcast %104 : vector<16x1xf32> to vector<16x128xf32>
    %113 = arith.subf %100, %112 : vector<16x128xf32>
    %cst_50 = arith.constant 9.99999974E-6 : f32
    %114 = vector.broadcast %cst_50 : f32 to vector<16x1xf32>
    %115 = arith.addf %111, %114 : vector<16x1xf32>
    %116 = math.rsqrt %115 : vector<16x1xf32>
    %117 = vector.broadcast %116 : vector<16x1xf32> to vector<16x128xf32>
    %118 = arith.mulf %113, %117 : vector<16x128xf32>
    %119 = vector.broadcast %85 : vector<1x128xf32> to vector<16x128xf32>
    %120 = arith.mulf %118, %119 : vector<16x128xf32>
    %121 = vector.broadcast %86 : vector<1x128xf32> to vector<16x128xf32>
    %122 = arith.addf %120, %121 : vector<16x128xf32>
    %123 = arith.truncf %122 : vector<16x128xf32> to vector<16x128xbf16>
    %c0_51 = arith.constant 0 : index
    %c0_52 = arith.constant 0 : index
    %c0_53 = arith.constant 0 : index
    %124 = vector.load %arg15[%c0_51, %c0_52, %c0_53] : memref<1x16x128xbf16, #tpu.memory_space<vmem>>, vector<1x16x128xbf16>
    %125 = vector.shape_cast %124 : vector<1x16x128xbf16> to vector<16x128xbf16>
    %126 = vector.shape_cast %123 : vector<16x128xbf16> to vector<1x16x128xbf16>
    tpu.vector_store %arg15[%c0_51, %c0_52, %c0_53], %126 {strides = array<i32>} : memref<1x16x128xbf16, #tpu.memory_space<vmem>>, vector<1x16x128xbf16>,
    return
  }
  func.func @transform_0(%arg0: i32, %arg1: i32) -> (i32, i32, i32) {
    %c0_i32 = arith.constant 0 : i32
    %c0_i32_0 = arith.constant 0 : i32
    return %arg0, %arg1, %c0_i32 : i32, i32, i32
  }
  func.func @transform_1(%arg0: i32, %arg1: i32) -> (i32, i32, i32) {
    %c0_i32 = arith.constant 0 : i32
    %c0_i32_0 = arith.constant 0 : i32
    %c0_i32_1 = arith.constant 0 : i32
    return %arg0, %c0_i32, %c0_i32_0 : i32, i32, i32
  }
  func.func @transform_2(%arg0: i32, %arg1: i32) -> (i32, i32, i32) {
    %c0_i32 = arith.constant 0 : i32
    %c0_i32_0 = arith.constant 0 : i32
    return %arg0, %arg1, %c0_i32 : i32, i32, i32
  }
  func.func @transform_3(%arg0: i32, %arg1: i32) -> (i32, i32, i32) {
    %c0_i32 = arith.constant 0 : i32
    %c0_i32_0 = arith.constant 0 : i32
    %c0_i32_1 = arith.constant 0 : i32
    return %arg0, %c0_i32, %c0_i32_0 : i32, i32, i32
  }
  func.func @transform_4(%arg0: i32, %arg1: i32) -> (i32, i32) {
    %c0_i32 = arith.constant 0 : i32
    %c0_i32_0 = arith.constant 0 : i32
    %c0_i32_1 = arith.constant 0 : i32
    return %c0_i32, %c0_i32_0 : i32, i32
  }
  func.func @transform_5(%arg0: i32, %arg1: i32) -> (i32, i32) {
    %c0_i32 = arith.constant 0 : i32
    %c0_i32_0 = arith.constant 0 : i32
    %c0_i32_1 = arith.constant 0 : i32
    return %c0_i32, %c0_i32_0 : i32, i32
  }
  func.func @transform_6(%arg0: i32, %arg1: i32) -> (i32, i32) {
    %c0_i32 = arith.constant 0 : i32
    %c0_i32_0 = arith.constant 0 : i32
    %c0_i32_1 = arith.constant 0 : i32
    return %c0_i32, %c0_i32_0 : i32, i32
  }
  func.func @transform_7(%arg0: i32, %arg1: i32) -> (i32, i32) {
    %c0_i32 = arith.constant 0 : i32
    %c0_i32_0 = arith.constant 0 : i32
    %c0_i32_1 = arith.constant 0 : i32
    return %c0_i32, %c0_i32_0 : i32, i32
  }
  func.func @transform_8(%arg0: i32, %arg1: i32) -> (i32, i32) {
    %c0_i32 = arith.constant 0 : i32
    %c0_i32_0 = arith.constant 0 : i32
    %c0_i32_1 = arith.constant 0 : i32
    return %c0_i32, %c0_i32_0 : i32, i32
  }
  func.func @transform_9(%arg0: i32, %arg1: i32) -> (i32, i32) {
    %c0_i32 = arith.constant 0 : i32
    %c0_i32_0 = arith.constant 0 : i32
    %c0_i32_1 = arith.constant 0 : i32
    return %c0_i32, %c0_i32_0 : i32, i32
  }
  func.func @transform_10(%arg0: i32, %arg1: i32) -> (i32, i32) {
    %c0_i32 = arith.constant 0 : i32
    %c0_i32_0 = arith.constant 0 : i32
    %c0_i32_1 = arith.constant 0 : i32
    return %c0_i32, %c0_i32_0 : i32, i32
  }
  func.func @transform_11(%arg0: i32, %arg1: i32) -> (i32, i32) {
    %c0_i32 = arith.constant 0 : i32
    %c0_i32_0 = arith.constant 0 : i32
    %c0_i32_1 = arith.constant 0 : i32
    return %c0_i32, %c0_i32_0 : i32, i32
  }
  func.func @transform_12(%arg0: i32, %arg1: i32) -> (i32, i32) {
    %c0_i32 = arith.constant 0 : i32
    %c0_i32_0 = arith.constant 0 : i32
    %c0_i32_1 = arith.constant 0 : i32
    return %c0_i32, %c0_i32_0 : i32, i32
  }
  func.func @transform_13(%arg0: i32, %arg1: i32) -> (i32, i32, i32) {
    %c0_i32 = arith.constant 0 : i32
    %c0_i32_0 = arith.constant 0 : i32
    return %arg0, %arg1, %c0_i32 : i32, i32, i32
  }
}

module attributes {stable_mosaic.version = 11 : i64} {
  func.func @_linear_kernel(%arg0: i32, %arg1: i32, %arg2: memref<16x128xbf16, #tpu.memory_space<vmem>>, %arg3: memref<128x128xbf16, #tpu.memory_space<vmem>>, %arg4: memref<1x128xf32, #tpu.memory_space<vmem>>, %arg5: memref<16x128xf32, #tpu.memory_space<vmem>>) attributes {dimension_semantics = [#tpu.dimension_semantics<parallel>, #tpu.dimension_semantics<parallel>], iteration_bounds = array<i64: 1, 1>, scalar_prefetch = 0 : i64, scratch_operands = 0 : i64, tpu.core_type = #tpu.core_type<tc>, window_params = [{transform_indices = @transform_0, window_bounds = array<i64: 16, 128>}, {transform_indices = @transform_1, window_bounds = array<i64: 128, 128>}, {transform_indices = @transform_2, window_bounds = array<i64: 1, 128>}, {transform_indices = @transform_3, window_bounds = array<i64: 16, 128>}]} {
    %c0 = arith.constant 0 : index
    %c0_0 = arith.constant 0 : index
    %0 = vector.load %arg2[%c0, %c0_0] : memref<16x128xbf16, #tpu.memory_space<vmem>>, vector<16x128xbf16>
    %c0_1 = arith.constant 0 : index
    %c0_2 = arith.constant 0 : index
    %1 = vector.load %arg3[%c0_1, %c0_2] : memref<128x128xbf16, #tpu.memory_space<vmem>>, vector<128x128xbf16>
    %cst = arith.constant dense<0.000000e+00> : vector<16x128xf32>
    %2 = tpu.matmul %0, %1, %cst {dimension_numbers = #tpu.dot_dimension_numbers<[1], [0], [0], [1], [0, 0, 1, 1], [], []>} : vector<16x128xbf16>, vector<128x128xbf16>, vector<16x128xf32> -> vector<16x128xf32>
    %c0_3 = arith.constant 0 : index
    %c0_4 = arith.constant 0 : index
    %3 = vector.load %arg4[%c0_3, %c0_4] : memref<1x128xf32, #tpu.memory_space<vmem>>, vector<1x128xf32>
    %4 = vector.broadcast %3 : vector<1x128xf32> to vector<16x128xf32>
    %5 = arith.addf %2, %4 : vector<16x128xf32>
    %c0_5 = arith.constant 0 : index
    %c0_6 = arith.constant 0 : index
    %6 = vector.load %arg5[%c0_5, %c0_6] : memref<16x128xf32, #tpu.memory_space<vmem>>, vector<16x128xf32>
    tpu.vector_store %arg5[%c0_5, %c0_6], %5 {strides = array<i32>} : memref<16x128xf32, #tpu.memory_space<vmem>>, vector<16x128xf32>,
    return
  }
  func.func @transform_0(%arg0: i32, %arg1: i32) -> (i32, i32) {
    %c0_i32 = arith.constant 0 : i32
    %c0_i32_0 = arith.constant 0 : i32
    return %arg0, %c0_i32 : i32, i32
  }
  func.func @transform_1(%arg0: i32, %arg1: i32) -> (i32, i32) {
    %c0_i32 = arith.constant 0 : i32
    %c0_i32_0 = arith.constant 0 : i32
    return %c0_i32, %arg1 : i32, i32
  }
  func.func @transform_2(%arg0: i32, %arg1: i32) -> (i32, i32) {
    %c0_i32 = arith.constant 0 : i32
    %c0_i32_0 = arith.constant 0 : i32
    return %c0_i32, %arg1 : i32, i32
  }
  func.func @transform_3(%arg0: i32, %arg1: i32) -> (i32, i32) {
    %c0_i32 = arith.constant 0 : i32
    return %arg0, %arg1 : i32, i32
  }
}

module attributes {stable_mosaic.version = 11 : i64} {
  func.func @_attn_layer_kernel(%arg0: i32, %arg1: i32, %arg2: memref<1x8x128xbf16, #tpu.memory_space<vmem>>, %arg3: memref<1x8x128xbf16, #tpu.memory_space<vmem>>, %arg4: memref<1x8x1xi32, #tpu.memory_space<vmem>>, %arg5: memref<1x1x8xi32, #tpu.memory_space<vmem>>, %arg6: memref<128x128xbf16, #tpu.memory_space<vmem>>, %arg7: memref<128x128xbf16, #tpu.memory_space<vmem>>, %arg8: memref<128x128xbf16, #tpu.memory_space<vmem>>, %arg9: memref<128x128xbf16, #tpu.memory_space<vmem>>, %arg10: memref<6x128xf32, #tpu.memory_space<vmem>>, %arg11: memref<1x8x128xbf16, #tpu.memory_space<vmem>>, %arg12: memref<4x8x32xbf16, #tpu.memory_space<vmem>>, %arg13: memref<4x8x32xbf16, #tpu.memory_space<vmem>>) attributes {dimension_semantics = [#tpu.dimension_semantics<parallel>, #tpu.dimension_semantics<arbitrary>], iteration_bounds = array<i64: 2, 1>, scalar_prefetch = 0 : i64, scratch_operands = 2 : i64, tpu.core_type = #tpu.core_type<tc>, window_params = [{transform_indices = @transform_0, window_bounds = array<i64: 1, 8, 128>}, {transform_indices = @transform_1, window_bounds = array<i64: 1, 8, 128>}, {transform_indices = @transform_2, window_bounds = array<i64: 1, 8, 1>}, {transform_indices = @transform_3, window_bounds = array<i64: 1, 1, 8>}, {pipeline_mode = #tpu.pipeline_mode<synchronous>, transform_indices = @transform_4, window_bounds = array<i64: 128, 128>}, {pipeline_mode = #tpu.pipeline_mode<synchronous>, transform_indices = @transform_5, window_bounds = array<i64: 128, 128>}, {pipeline_mode = #tpu.pipeline_mode<synchronous>, transform_indices = @transform_6, window_bounds = array<i64: 128, 128>}, {pipeline_mode = #tpu.pipeline_mode<synchronous>, transform_indices = @transform_7, window_bounds = array<i64: 128, 128>}, {pipeline_mode = #tpu.pipeline_mode<synchronous>, transform_indices = @transform_8, window_bounds = array<i64: 6, 128>}, {transform_indices = @transform_9, window_bounds = array<i64: 1, 8, 128>}]} {
    %c0 = arith.constant 0 : index
    %c0_0 = arith.constant 0 : index
    %0 = vector.load %arg10[%c0, %c0_0] : memref<6x128xf32, #tpu.memory_space<vmem>>, vector<6x128xf32>
    %1 = vector.extract_strided_slice %0 {offsets = [0, 0], sizes = [1, 128], strides = [1, 1]} : vector<6x128xf32> to vector<1x128xf32>
    %2 = vector.extract_strided_slice %0 {offsets = [1, 0], sizes = [1, 128], strides = [1, 1]} : vector<6x128xf32> to vector<1x128xf32>
    %3 = vector.extract_strided_slice %0 {offsets = [2, 0], sizes = [1, 128], strides = [1, 1]} : vector<6x128xf32> to vector<1x128xf32>
    %4 = vector.extract_strided_slice %0 {offsets = [3, 0], sizes = [1, 128], strides = [1, 1]} : vector<6x128xf32> to vector<1x128xf32>
    %5 = vector.extract_strided_slice %0 {offsets = [4, 0], sizes = [1, 128], strides = [1, 1]} : vector<6x128xf32> to vector<1x128xf32>
    %6 = vector.extract_strided_slice %0 {offsets = [5, 0], sizes = [1, 128], strides = [1, 1]} : vector<6x128xf32> to vector<1x128xf32>
    %c0_i32 = arith.constant 0 : i32
    %7 = arith.cmpi eq, %arg1, %c0_i32 : i32
    %8 = arith.extui %7 : i1 to i32
    %c0_i32_1 = arith.constant 0 : i32
    %9 = arith.cmpi ne, %8, %c0_i32_1 : i32
    scf.if %9 {
      %c0_38 = arith.constant 0 : index
      %c0_39 = arith.constant 0 : index
      %c0_40 = arith.constant 0 : index
      %94 = vector.load %arg3[%c0_38, %c0_39, %c0_40] : memref<1x8x128xbf16, #tpu.memory_space<vmem>>, vector<1x8x128xbf16>
      %95 = vector.shape_cast %94 : vector<1x8x128xbf16> to vector<8x128xbf16>
      %c0_41 = arith.constant 0 : index
      %c0_42 = arith.constant 0 : index
      %96 = vector.load %arg7[%c0_41, %c0_42] : memref<128x128xbf16, #tpu.memory_space<vmem>>, vector<128x128xbf16>
      %cst_43 = arith.constant dense<0.000000e+00> : vector<8x128xf32>
      %97 = tpu.matmul %95, %96, %cst_43 {dimension_numbers = #tpu.dot_dimension_numbers<[1], [0], [0], [1], [0, 0, 1, 1], [], []>} : vector<8x128xbf16>, vector<128x128xbf16>, vector<8x128xf32> -> vector<8x128xf32>
      %98 = vector.broadcast %2 : vector<1x128xf32> to vector<8x128xf32>
      %99 = arith.addf %97, %98 : vector<8x128xf32>
      %c0_44 = arith.constant 0 : index
      %c0_45 = arith.constant 0 : index
      %100 = vector.load %arg8[%c0_44, %c0_45] : memref<128x128xbf16, #tpu.memory_space<vmem>>, vector<128x128xbf16>
      %cst_46 = arith.constant dense<0.000000e+00> : vector<8x128xf32>
      %101 = tpu.matmul %95, %100, %cst_46 {dimension_numbers = #tpu.dot_dimension_numbers<[1], [0], [0], [1], [0, 0, 1, 1], [], []>} : vector<8x128xbf16>, vector<128x128xbf16>, vector<8x128xf32> -> vector<8x128xf32>
      %102 = vector.broadcast %3 : vector<1x128xf32> to vector<8x128xf32>
      %103 = arith.addf %101, %102 : vector<8x128xf32>
      %104 = vector.shape_cast %99 : vector<8x128xf32> to vector<8x4x32xf32>
      %105 = tpu.transpose %104, [1, 0, 2] : vector<8x4x32xf32> -> vector<4x8x32xf32>
      %106 = arith.truncf %105 : vector<4x8x32xf32> to vector<4x8x32xbf16>
      %c0_47 = arith.constant 0 : index
      %c0_48 = arith.constant 0 : index
      %c0_49 = arith.constant 0 : index
      %107 = vector.load %arg12[%c0_47, %c0_48, %c0_49] : memref<4x8x32xbf16, #tpu.memory_space<vmem>>, vector<4x8x32xbf16>
      tpu.vector_store %arg12[%c0_47, %c0_48, %c0_49], %106 {strides = array<i32>} : memref<4x8x32xbf16, #tpu.memory_space<vmem>>, vector<4x8x32xbf16>,
      %108 = vector.shape_cast %103 : vector<8x128xf32> to vector<8x4x32xf32>
      %109 = tpu.transpose %108, [1, 0, 2] : vector<8x4x32xf32> -> vector<4x8x32xf32>
      %110 = arith.truncf %109 : vector<4x8x32xf32> to vector<4x8x32xbf16>
      %c0_50 = arith.constant 0 : index
      %c0_51 = arith.constant 0 : index
      %c0_52 = arith.constant 0 : index
      %111 = vector.load %arg13[%c0_50, %c0_51, %c0_52] : memref<4x8x32xbf16, #tpu.memory_space<vmem>>, vector<4x8x32xbf16>
      tpu.vector_store %arg13[%c0_50, %c0_51, %c0_52], %110 {strides = array<i32>} : memref<4x8x32xbf16, #tpu.memory_space<vmem>>, vector<4x8x32xbf16>,
    } else {
    }
    %c0_2 = arith.constant 0 : index
    %c0_3 = arith.constant 0 : index
    %c0_4 = arith.constant 0 : index
    %10 = vector.load %arg2[%c0_2, %c0_3, %c0_4] : memref<1x8x128xbf16, #tpu.memory_space<vmem>>, vector<1x8x128xbf16>
    %11 = vector.shape_cast %10 : vector<1x8x128xbf16> to vector<8x128xbf16>
    %c0_5 = arith.constant 0 : index
    %c0_6 = arith.constant 0 : index
    %12 = vector.load %arg6[%c0_5, %c0_6] : memref<128x128xbf16, #tpu.memory_space<vmem>>, vector<128x128xbf16>
    %cst = arith.constant dense<0.000000e+00> : vector<8x128xf32>
    %13 = tpu.matmul %11, %12, %cst {dimension_numbers = #tpu.dot_dimension_numbers<[1], [0], [0], [1], [0, 0, 1, 1], [], []>} : vector<8x128xbf16>, vector<128x128xbf16>, vector<8x128xf32> -> vector<8x128xf32>
    %14 = vector.broadcast %1 : vector<1x128xf32> to vector<8x128xf32>
    %15 = arith.addf %13, %14 : vector<8x128xf32>
    %cst_7 = arith.constant 0.176776692 : f32
    %16 = vector.broadcast %cst_7 : f32 to vector<8x128xf32>
    %17 = arith.mulf %15, %16 : vector<8x128xf32>
    %18 = vector.shape_cast %17 : vector<8x128xf32> to vector<8x4x32xf32>
    %19 = tpu.transpose %18, [1, 0, 2] : vector<8x4x32xf32> -> vector<4x8x32xf32>
    %20 = arith.truncf %19 : vector<4x8x32xf32> to vector<4x8x32xbf16>
    %c0_8 = arith.constant 0 : index
    %c0_9 = arith.constant 0 : index
    %c0_10 = arith.constant 0 : index
    %21 = vector.load %arg12[%c0_8, %c0_9, %c0_10] : memref<4x8x32xbf16, #tpu.memory_space<vmem>>, vector<4x8x32xbf16>
    %c0_11 = arith.constant 0 : index
    %c0_12 = arith.constant 0 : index
    %c0_13 = arith.constant 0 : index
    %22 = vector.load %arg13[%c0_11, %c0_12, %c0_13] : memref<4x8x32xbf16, #tpu.memory_space<vmem>>, vector<4x8x32xbf16>
    "tpu.trace_start"() <{level = 10 : i32, message = "hqd,hkd->hqk"}> : () -> ()
    %cst_14 = arith.constant dense<0.000000e+00> : vector<4x8x8xf32>
    %23 = tpu.matmul %20, %21, %cst_14 {dimension_numbers = #tpu.dot_dimension_numbers<[2], [2], [1], [1], [0, 0, 0, 1, 1, 1], [0], [0]>} : vector<4x8x32xbf16>, vector<4x8x32xbf16>, vector<4x8x8xf32> -> vector<4x8x8xf32>
    "tpu.trace_stop"() : () -> ()
    %c0_15 = arith.constant 0 : index
    %c0_16 = arith.constant 0 : index
    %c0_17 = arith.constant 0 : index
    %24 = vector.load %arg4[%c0_15, %c0_16, %c0_17] : memref<1x8x1xi32, #tpu.memory_space<vmem>>, vector<1x8x1xi32>
    %25 = vector.shape_cast %24 : vector<1x8x1xi32> to vector<8x1xi32>
    %c0_i32_18 = arith.constant 0 : i32
    %26 = vector.broadcast %c0_i32_18 : i32 to vector<8x1xi32>
    %27 = arith.cmpi ne, %25, %26 : vector<8x1xi32>
    %c0_19 = arith.constant 0 : index
    %c0_20 = arith.constant 0 : index
    %c0_21 = arith.constant 0 : index
    %28 = vector.load %arg5[%c0_19, %c0_20, %c0_21] : memref<1x1x8xi32, #tpu.memory_space<vmem>>, vector<1x1x8xi32>
    %29 = vector.shape_cast %28 : vector<1x1x8xi32> to vector<1x8xi32>
    %c0_i32_22 = arith.constant 0 : i32
    %30 = vector.broadcast %c0_i32_22 : i32 to vector<1x8xi32>
    %31 = arith.cmpi ne, %29, %30 : vector<1x8xi32>
    %32 = vector.broadcast %27 : vector<8x1xi1> to vector<8x8xi1>
    %33 = vector.broadcast %31 : vector<1x8xi1> to vector<8x8xi1>
    %34 = arith.ori %32, %33 : vector<8x8xi1>
    %35 = tpu.iota {dimensions = array<i32: 0>} : vector<8x8xi32>
    %c8_i32 = arith.constant 8 : i32
    %36 = arith.muli %arg1, %c8_i32 : i32
    %37 = vector.broadcast %36 : i32 to vector<8x8xi32>
    %38 = arith.addi %35, %37 : vector<8x8xi32>
    %39 = tpu.iota {dimensions = array<i32: 1>} : vector<8x8xi32>
    %40 = arith.cmpi sgt, %39, %38 : vector<8x8xi32>
    %41 = arith.ori %34, %40 : vector<8x8xi1>
    %42 = vector.shape_cast %41 : vector<8x8xi1> to vector<1x8x8xi1>
    %cst_23 = arith.constant -9.99999995E+11 : f32
    %43 = vector.shape_cast %42 : vector<1x8x8xi1> to vector<1x8x8xi1>
    %44 = vector.broadcast %43 : vector<1x8x8xi1> to vector<4x8x8xi1>
    %45 = vector.broadcast %cst_23 : f32 to vector<4x8x8xf32>
    %46 = arith.select %44, %45, %23 : vector<4x8x8xi1>, vector<4x8x8xf32>
    %cst_24 = arith.constant dense<0xFF800000> : vector<4x8xf32>
    %47 = vector.multi_reduction <maximumf>, %46, %cst_24 [2] : vector<4x8x8xf32> to vector<4x8xf32>
    %48 = vector.shape_cast %47 : vector<4x8xf32> to vector<4x8x1xf32>
    %49 = vector.broadcast %48 : vector<4x8x1xf32> to vector<4x8x8xf32>
    %50 = arith.subf %46, %49 : vector<4x8x8xf32>
    %51 = math.exp %50 : vector<4x8x8xf32>
    %cst_25 = arith.constant dense<0.000000e+00> : vector<4x8xf32>
    %52 = vector.multi_reduction <add>, %51, %cst_25 [2] : vector<4x8x8xf32> to vector<4x8xf32>
    %53 = vector.shape_cast %52 : vector<4x8xf32> to vector<4x8x1xf32>
    %54 = tpu.reciprocal %53 {approx = true} : vector<4x8x1xf32> -> vector<4x8x1xf32>
    %55 = vector.broadcast %54 : vector<4x8x1xf32> to vector<4x8x8xf32>
    %56 = arith.mulf %51, %55 : vector<4x8x8xf32>
    %57 = arith.truncf %56 : vector<4x8x8xf32> to vector<4x8x8xbf16>
    "tpu.trace_start"() <{level = 10 : i32, message = "hqk,hkd->hqd"}> : () -> ()
    %cst_26 = arith.constant dense<0.000000e+00> : vector<4x8x32xf32>
    %58 = tpu.matmul %57, %22, %cst_26 {dimension_numbers = #tpu.dot_dimension_numbers<[2], [1], [1], [2], [0, 0, 0, 1, 1, 2], [0], [0]>} : vector<4x8x8xbf16>, vector<4x8x32xbf16>, vector<4x8x32xf32> -> vector<4x8x32xf32>
    "tpu.trace_stop"() : () -> ()
    %59 = tpu.transpose %58, [1, 0, 2] : vector<4x8x32xf32> -> vector<8x4x32xf32>
    %60 = vector.shape_cast %59 : vector<8x4x32xf32> to vector<8x128xf32>
    %61 = arith.truncf %60 : vector<8x128xf32> to vector<8x128xbf16>
    %c0_27 = arith.constant 0 : index
    %c0_28 = arith.constant 0 : index
    %62 = vector.load %arg9[%c0_27, %c0_28] : memref<128x128xbf16, #tpu.memory_space<vmem>>, vector<128x128xbf16>
    %cst_29 = arith.constant dense<0.000000e+00> : vector<8x128xf32>
    %63 = tpu.matmul %61, %62, %cst_29 {dimension_numbers = #tpu.dot_dimension_numbers<[1], [0], [0], [1], [0, 0, 1, 1], [], []>} : vector<8x128xbf16>, vector<128x128xbf16>, vector<8x128xf32> -> vector<8x128xf32>
    %64 = vector.broadcast %4 : vector<1x128xf32> to vector<8x128xf32>
    %65 = arith.addf %63, %64 : vector<8x128xf32>
    %66 = arith.extf %11 : vector<8x128xbf16> to vector<8x128xf32>
    %67 = arith.addf %66, %65 : vector<8x128xf32>
    %cst_30 = arith.constant dense<0.000000e+00> : vector<8xf32>
    %68 = vector.multi_reduction <add>, %67, %cst_30 [1] : vector<8x128xf32> to vector<8xf32>
    %69 = vector.shape_cast %68 : vector<8xf32> to vector<8x1xf32>
    %cst_31 = arith.constant 1.280000e+02 : f32
    %70 = vector.broadcast %cst_31 : f32 to vector<8x1xf32>
    %71 = arith.divf %69, %70 : vector<8x1xf32>
    %72 = vector.broadcast %71 : vector<8x1xf32> to vector<8x128xf32>
    %73 = arith.subf %67, %72 : vector<8x128xf32>
    %74 = arith.mulf %73, %73 : vector<8x128xf32>
    %cst_32 = arith.constant dense<0.000000e+00> : vector<8xf32>
    %75 = vector.multi_reduction <add>, %74, %cst_32 [1] : vector<8x128xf32> to vector<8xf32>
    %76 = vector.shape_cast %75 : vector<8xf32> to vector<8x1xf32>
    %cst_33 = arith.constant 1.280000e+02 : f32
    %77 = vector.broadcast %cst_33 : f32 to vector<8x1xf32>
    %78 = arith.divf %76, %77 : vector<8x1xf32>
    %79 = vector.broadcast %71 : vector<8x1xf32> to vector<8x128xf32>
    %80 = arith.subf %67, %79 : vector<8x128xf32>
    %cst_34 = arith.constant 9.99999974E-6 : f32
    %81 = vector.broadcast %cst_34 : f32 to vector<8x1xf32>
    %82 = arith.addf %78, %81 : vector<8x1xf32>
    %83 = math.rsqrt %82 : vector<8x1xf32>
    %84 = vector.broadcast %83 : vector<8x1xf32> to vector<8x128xf32>
    %85 = arith.mulf %80, %84 : vector<8x128xf32>
    %86 = vector.broadcast %5 : vector<1x128xf32> to vector<8x128xf32>
    %87 = arith.mulf %85, %86 : vector<8x128xf32>
    %88 = vector.broadcast %6 : vector<1x128xf32> to vector<8x128xf32>
    %89 = arith.addf %87, %88 : vector<8x128xf32>
    %90 = arith.truncf %89 : vector<8x128xf32> to vector<8x128xbf16>
    %c0_35 = arith.constant 0 : index
    %c0_36 = arith.constant 0 : index
    %c0_37 = arith.constant 0 : index
    %91 = vector.load %arg11[%c0_35, %c0_36, %c0_37] : memref<1x8x128xbf16, #tpu.memory_space<vmem>>, vector<1x8x128xbf16>
    %92 = vector.shape_cast %91 : vector<1x8x128xbf16> to vector<8x128xbf16>
    %93 = vector.shape_cast %90 : vector<8x128xbf16> to vector<1x8x128xbf16>
    tpu.vector_store %arg11[%c0_35, %c0_36, %c0_37], %93 {strides = array<i32>} : memref<1x8x128xbf16, #tpu.memory_space<vmem>>, vector<1x8x128xbf16>,
    return
  }
  func.func @transform_0(%arg0: i32, %arg1: i32) -> (i32, i32, i32) {
    %c0_i32 = arith.constant 0 : i32
    %c0_i32_0 = arith.constant 0 : i32
    return %arg0, %arg1, %c0_i32 : i32, i32, i32
  }
  func.func @transform_1(%arg0: i32, %arg1: i32) -> (i32, i32, i32) {
    %c0_i32 = arith.constant 0 : i32
    %c0_i32_0 = arith.constant 0 : i32
    %c0_i32_1 = arith.constant 0 : i32
    return %arg0, %c0_i32, %c0_i32_0 : i32, i32, i32
  }
  func.func @transform_2(%arg0: i32, %arg1: i32) -> (i32, i32, i32) {
    %c0_i32 = arith.constant 0 : i32
    %c0_i32_0 = arith.constant 0 : i32
    return %arg0, %arg1, %c0_i32 : i32, i32, i32
  }
  func.func @transform_3(%arg0: i32, %arg1: i32) -> (i32, i32, i32) {
    %c0_i32 = arith.constant 0 : i32
    %c0_i32_0 = arith.constant 0 : i32
    %c0_i32_1 = arith.constant 0 : i32
    return %arg0, %c0_i32, %c0_i32_0 : i32, i32, i32
  }
  func.func @transform_4(%arg0: i32, %arg1: i32) -> (i32, i32) {
    %c0_i32 = arith.constant 0 : i32
    %c0_i32_0 = arith.constant 0 : i32
    %c0_i32_1 = arith.constant 0 : i32
    return %c0_i32, %c0_i32_0 : i32, i32
  }
  func.func @transform_5(%arg0: i32, %arg1: i32) -> (i32, i32) {
    %c0_i32 = arith.constant 0 : i32
    %c0_i32_0 = arith.constant 0 : i32
    %c0_i32_1 = arith.constant 0 : i32
    return %c0_i32, %c0_i32_0 : i32, i32
  }
  func.func @transform_6(%arg0: i32, %arg1: i32) -> (i32, i32) {
    %c0_i32 = arith.constant 0 : i32
    %c0_i32_0 = arith.constant 0 : i32
    %c0_i32_1 = arith.constant 0 : i32
    return %c0_i32, %c0_i32_0 : i32, i32
  }
  func.func @transform_7(%arg0: i32, %arg1: i32) -> (i32, i32) {
    %c0_i32 = arith.constant 0 : i32
    %c0_i32_0 = arith.constant 0 : i32
    %c0_i32_1 = arith.constant 0 : i32
    return %c0_i32, %c0_i32_0 : i32, i32
  }
  func.func @transform_8(%arg0: i32, %arg1: i32) -> (i32, i32) {
    %c0_i32 = arith.constant 0 : i32
    %c0_i32_0 = arith.constant 0 : i32
    %c0_i32_1 = arith.constant 0 : i32
    return %c0_i32, %c0_i32_0 : i32, i32
  }
  func.func @transform_9(%arg0: i32, %arg1: i32) -> (i32, i32, i32) {
    %c0_i32 = arith.constant 0 : i32
    %c0_i32_0 = arith.constant 0 : i32
    return %arg0, %arg1, %c0_i32 : i32, i32, i32
  }
}

module attributes {stable_mosaic.version = 11 : i64} {
  func.func @_attn_layer_kernel(%arg0: i32, %arg1: i32, %arg2: memref<1x8x128xbf16, #tpu.memory_space<vmem>>, %arg3: memref<1x16x128xbf16, #tpu.memory_space<vmem>>, %arg4: memref<1x8x1xi32, #tpu.memory_space<vmem>>, %arg5: memref<1x1x16xi32, #tpu.memory_space<vmem>>, %arg6: memref<128x128xbf16, #tpu.memory_space<vmem>>, %arg7: memref<128x128xbf16, #tpu.memory_space<vmem>>, %arg8: memref<128x128xbf16, #tpu.memory_space<vmem>>, %arg9: memref<128x128xbf16, #tpu.memory_space<vmem>>, %arg10: memref<6x128xf32, #tpu.memory_space<vmem>>, %arg11: memref<128x256xbf16, #tpu.memory_space<vmem>>, %arg12: memref<1x256xf32, #tpu.memory_space<vmem>>, %arg13: memref<256x128xbf16, #tpu.memory_space<vmem>>, %arg14: memref<3x128xf32, #tpu.memory_space<vmem>>, %arg15: memref<1x8x128xbf16, #tpu.memory_space<vmem>>, %arg16: memref<4x16x32xbf16, #tpu.memory_space<vmem>>, %arg17: memref<4x16x32xbf16, #tpu.memory_space<vmem>>) attributes {dimension_semantics = [#tpu.dimension_semantics<parallel>, #tpu.dimension_semantics<arbitrary>], iteration_bounds = array<i64: 2, 1>, scalar_prefetch = 0 : i64, scratch_operands = 2 : i64, tpu.core_type = #tpu.core_type<tc>, window_params = [{transform_indices = @transform_0, window_bounds = array<i64: 1, 8, 128>}, {transform_indices = @transform_1, window_bounds = array<i64: 1, 16, 128>}, {transform_indices = @transform_2, window_bounds = array<i64: 1, 8, 1>}, {transform_indices = @transform_3, window_bounds = array<i64: 1, 1, 16>}, {pipeline_mode = #tpu.pipeline_mode<synchronous>, transform_indices = @transform_4, window_bounds = array<i64: 128, 128>}, {pipeline_mode = #tpu.pipeline_mode<synchronous>, transform_indices = @transform_5, window_bounds = array<i64: 128, 128>}, {pipeline_mode = #tpu.pipeline_mode<synchronous>, transform_indices = @transform_6, window_bounds = array<i64: 128, 128>}, {pipeline_mode = #tpu.pipeline_mode<synchronous>, transform_indices = @transform_7, window_bounds = array<i64: 128, 128>}, {pipeline_mode = #tpu.pipeline_mode<synchronous>, transform_indices = @transform_8, window_bounds = array<i64: 6, 128>}, {pipeline_mode = #tpu.pipeline_mode<synchronous>, transform_indices = @transform_9, window_bounds = array<i64: 128, 256>}, {pipeline_mode = #tpu.pipeline_mode<synchronous>, transform_indices = @transform_10, window_bounds = array<i64: 1, 256>}, {pipeline_mode = #tpu.pipeline_mode<synchronous>, transform_indices = @transform_11, window_bounds = array<i64: 256, 128>}, {pipeline_mode = #tpu.pipeline_mode<synchronous>, transform_indices = @transform_12, window_bounds = array<i64: 3, 128>}, {transform_indices = @transform_13, window_bounds = array<i64: 1, 8, 128>}]} {
    %c0 = arith.constant 0 : index
    %c0_0 = arith.constant 0 : index
    %0 = vector.load %arg10[%c0, %c0_0] : memref<6x128xf32, #tpu.memory_space<vmem>>, vector<6x128xf32>
    %1 = vector.extract_strided_slice %0 {offsets = [0, 0], sizes = [1, 128], strides = [1, 1]} : vector<6x128xf32> to vector<1x128xf32>
    %2 = vector.extract_strided_slice %0 {offsets = [1, 0], sizes = [1, 128], strides = [1, 1]} : vector<6x128xf32> to vector<1x128xf32>
    %3 = vector.extract_strided_slice %0 {offsets = [2, 0], sizes = [1, 128], strides = [1, 1]} : vector<6x128xf32> to vector<1x128xf32>
    %4 = vector.extract_strided_slice %0 {offsets = [3, 0], sizes = [1, 128], strides = [1, 1]} : vector<6x128xf32> to vector<1x128xf32>
    %5 = vector.extract_strided_slice %0 {offsets = [4, 0], sizes = [1, 128], strides = [1, 1]} : vector<6x128xf32> to vector<1x128xf32>
    %6 = vector.extract_strided_slice %0 {offsets = [5, 0], sizes = [1, 128], strides = [1, 1]} : vector<6x128xf32> to vector<1x128xf32>
    %c0_i32 = arith.constant 0 : i32
    %7 = arith.cmpi eq, %arg1, %c0_i32 : i32
    %8 = arith.extui %7 : i1 to i32
    %c0_i32_1 = arith.constant 0 : i32
    %9 = arith.cmpi ne, %8, %c0_i32_1 : i32
    scf.if %9 {
      %c0_54 = arith.constant 0 : index
      %c0_55 = arith.constant 0 : index
      %c0_56 = arith.constant 0 : index
      %127 = vector.load %arg3[%c0_54, %c0_55, %c0_56] : memref<1x16x128xbf16, #tpu.memory_space<vmem>>, vector<1x16x128xbf16>
      %128 = vector.shape_cast %127 : vector<1x16x128xbf16> to vector<16x128xbf16>
      %c0_57 = arith.constant 0 : index
      %c0_58 = arith.constant 0 : index
      %129 = vector.load %arg7[%c0_57, %c0_58] : memref<128x128xbf16, #tpu.memory_space<vmem>>, vector<128x128xbf16>
      %cst_59 = arith.constant dense<0.000000e+00> : vector<16x128xf32>
      %130 = tpu.matmul %128, %129, %cst_59 {dimension_numbers = #tpu.dot_dimension_numbers<[1], [0], [0], [1], [0, 0, 1, 1], [], []>} : vector<16x128xbf16>, vector<128x128xbf16>, vector<16x128xf32> -> vector<16x128xf32>
      %131 = vector.broadcast %2 : vector<1x128xf32> to vector<16x128xf32>
      %132 = arith.addf %130, %131 : vector<16x128xf32>
      %c0_60 = arith.constant 0 : index
      %c0_61 = arith.constant 0 : index
      %133 = vector.load %arg8[%c0_60, %c0_61] : memref<128x128xbf16, #tpu.memory_space<vmem>>, vector<128x128xbf16>
      %cst_62 = arith.constant dense<0.000000e+00> : vector<16x128xf32>
      %134 = tpu.matmul %128, %133, %cst_62 {dimension_numbers = #tpu.dot_dimension_numbers<[1], [0], [0], [1], [0, 0, 1, 1], [], []>} : vector<16x128xbf16>, vector<128x128xbf16>, vector<16x128xf32> -> vector<16x128xf32>
      %135 = vector.broadcast %3 : vector<1x128xf32> to vector<16x128xf32>
      %136 = arith.addf %134, %135 : vector<16x128xf32>
      %137 = vector.shape_cast %132 : vector<16x128xf32> to vector<16x4x32xf32>
      %138 = tpu.transpose %137, [1, 0, 2] : vector<16x4x32xf32> -> vector<4x16x32xf32>
      %139 = arith.truncf %138 : vector<4x16x32xf32> to vector<4x16x32xbf16>
      %c0_63 = arith.constant 0 : index
      %c0_64 = arith.constant 0 : index
      %c0_65 = arith.constant 0 : index
      %140 = vector.load %arg16[%c0_63, %c0_64, %c0_65] : memref<4x16x32xbf16, #tpu.memory_space<vmem>>, vector<4x16x32xbf16>
      tpu.vector_store %arg16[%c0_63, %c0_64, %c0_65], %139 {strides = array<i32>} : memref<4x16x32xbf16, #tpu.memory_space<vmem>>, vector<4x16x32xbf16>,
      %141 = vector.shape_cast %136 : vector<16x128xf32> to vector<16x4x32xf32>
      %142 = tpu.transpose %141, [1, 0, 2] : vector<16x4x32xf32> -> vector<4x16x32xf32>
      %143 = arith.truncf %142 : vector<4x16x32xf32> to vector<4x16x32xbf16>
      %c0_66 = arith.constant 0 : index
      %c0_67 = arith.constant 0 : index
      %c0_68 = arith.constant 0 : index
      %144 = vector.load %arg17[%c0_66, %c0_67, %c0_68] : memref<4x16x32xbf16, #tpu.memory_space<vmem>>, vector<4x16x32xbf16>
      tpu.vector_store %arg17[%c0_66, %c0_67, %c0_68], %143 {strides = array<i32>} : memref<4x16x32xbf16, #tpu.memory_space<vmem>>, vector<4x16x32xbf16>,
    } else {
    }
    %c0_2 = arith.constant 0 : index
    %c0_3 = arith.constant 0 : index
    %c0_4 = arith.constant 0 : index
    %10 = vector.load %arg2[%c0_2, %c0_3, %c0_4] : memref<1x8x128xbf16, #tpu.memory_space<vmem>>, vector<1x8x128xbf16>
    %11 = vector.shape_cast %10 : vector<1x8x128xbf16> to vector<8x128xbf16>
    %c0_5 = arith.constant 0 : index
    %c0_6 = arith.constant 0 : index
    %12 = vector.load %arg6[%c0_5, %c0_6] : memref<128x128xbf16, #tpu.memory_space<vmem>>, vector<128x128xbf16>
    %cst = arith.constant dense<0.000000e+00> : vector<8x128xf32>
    %13 = tpu.matmul %11, %12, %cst {dimension_numbers = #tpu.dot_dimension_numbers<[1], [0], [0], [1], [0, 0, 1, 1], [], []>} : vector<8x128xbf16>, vector<128x128xbf16>, vector<8x128xf32> -> vector<8x128xf32>
    %14 = vector.broadcast %1 : vector<1x128xf32> to vector<8x128xf32>
    %15 = arith.addf %13, %14 : vector<8x128xf32>
    %cst_7 = arith.constant 0.176776692 : f32
    %16 = vector.broadcast %cst_7 : f32 to vector<8x128xf32>
    %17 = arith.mulf %15, %16 : vector<8x128xf32>
    %18 = vector.shape_cast %17 : vector<8x128xf32> to vector<8x4x32xf32>
    %19 = tpu.transpose %18, [1, 0, 2] : vector<8x4x32xf32> -> vector<4x8x32xf32>
    %20 = arith.truncf %19 : vector<4x8x32xf32> to vector<4x8x32xbf16>
    %c0_8 = arith.constant 0 : index
    %c0_9 = arith.constant 0 : index
    %c0_10 = arith.constant 0 : index
    %21 = vector.load %arg16[%c0_8, %c0_9, %c0_10] : memref<4x16x32xbf16, #tpu.memory_space<vmem>>, vector<4x16x32xbf16>
    %c0_11 = arith.constant 0 : index
    %c0_12 = arith.constant 0 : index
    %c0_13 = arith.constant 0 : index
    %22 = vector.load %arg17[%c0_11, %c0_12, %c0_13] : memref<4x16x32xbf16, #tpu.memory_space<vmem>>, vector<4x16x32xbf16>
    "tpu.trace_start"() <{level = 10 : i32, message = "hqd,hkd->hqk"}> : () -> ()
    %cst_14 = arith.constant dense<0.000000e+00> : vector<4x8x16xf32>
    %23 = tpu.matmul %20, %21, %cst_14 {dimension_numbers = #tpu.dot_dimension_numbers<[2], [2], [1], [1], [0, 0, 0, 1, 1, 1], [0], [0]>} : vector<4x8x32xbf16>, vector<4x16x32xbf16>, vector<4x8x16xf32> -> vector<4x8x16xf32>
    "tpu.trace_stop"() : () -> ()
    %c0_15 = arith.constant 0 : index
    %c0_16 = arith.constant 0 : index
    %c0_17 = arith.constant 0 : index
    %24 = vector.load %arg4[%c0_15, %c0_16, %c0_17] : memref<1x8x1xi32, #tpu.memory_space<vmem>>, vector<1x8x1xi32>
    %25 = vector.shape_cast %24 : vector<1x8x1xi32> to vector<8x1xi32>
    %c0_i32_18 = arith.constant 0 : i32
    %26 = vector.broadcast %c0_i32_18 : i32 to vector<8x1xi32>
    %27 = arith.cmpi ne, %25, %26 : vector<8x1xi32>
    %c0_19 = arith.constant 0 : index
    %c0_20 = arith.constant 0 : index
    %c0_21 = arith.constant 0 : index
    %28 = vector.load %arg5[%c0_19, %c0_20, %c0_21] : memref<1x1x16xi32, #tpu.memory_space<vmem>>, vector<1x1x16xi32>
    %29 = vector.shape_cast %28 : vector<1x1x16xi32> to vector<1x16xi32>
    %c0_i32_22 = arith.constant 0 : i32
    %30 = vector.broadcast %c0_i32_22 : i32 to vector<1x16xi32>
    %31 = arith.cmpi ne, %29, %30 : vector<1x16xi32>
    %32 = vector.broadcast %27 : vector<8x1xi1> to vector<8x16xi1>
    %33 = vector.broadcast %31 : vector<1x16xi1> to vector<8x16xi1>
    %34 = arith.ori %32, %33 : vector<8x16xi1>
    %35 = vector.shape_cast %34 : vector<8x16xi1> to vector<1x8x16xi1>
    %cst_23 = arith.constant -9.99999995E+11 : f32
    %36 = vector.shape_cast %35 : vector<1x8x16xi1> to vector<1x8x16xi1>
    %37 = vector.broadcast %36 : vector<1x8x16xi1> to vector<4x8x16xi1>
    %38 = vector.broadcast %cst_23 : f32 to vector<4x8x16xf32>
    %39 = arith.select %37, %38, %23 : vector<4x8x16xi1>, vector<4x8x16xf32>
    %cst_24 = arith.constant dense<0xFF800000> : vector<4x8xf32>
    %40 = vector.multi_reduction <maximumf>, %39, %cst_24 [2] : vector<4x8x16xf32> to vector<4x8xf32>
    %41 = vector.shape_cast %40 : vector<4x8xf32> to vector<4x8x1xf32>
    %42 = vector.broadcast %41 : vector<4x8x1xf32> to vector<4x8x16xf32>
    %43 = arith.subf %39, %42 : vector<4x8x16xf32>
    %44 = math.exp %43 : vector<4x8x16xf32>
    %cst_25 = arith.constant dense<0.000000e+00> : vector<4x8xf32>
    %45 = vector.multi_reduction <add>, %44, %cst_25 [2] : vector<4x8x16xf32> to vector<4x8xf32>
    %46 = vector.shape_cast %45 : vector<4x8xf32> to vector<4x8x1xf32>
    %47 = tpu.reciprocal %46 {approx = true} : vector<4x8x1xf32> -> vector<4x8x1xf32>
    %48 = vector.broadcast %47 : vector<4x8x1xf32> to vector<4x8x16xf32>
    %49 = arith.mulf %44, %48 : vector<4x8x16xf32>
    %50 = arith.truncf %49 : vector<4x8x16xf32> to vector<4x8x16xbf16>
    "tpu.trace_start"() <{level = 10 : i32, message = "hqk,hkd->hqd"}> : () -> ()
    %cst_26 = arith.constant dense<0.000000e+00> : vector<4x8x32xf32>
    %51 = tpu.matmul %50, %22, %cst_26 {dimension_numbers = #tpu.dot_dimension_numbers<[2], [1], [1], [2], [0, 0, 0, 1, 1, 2], [0], [0]>} : vector<4x8x16xbf16>, vector<4x16x32xbf16>, vector<4x8x32xf32> -> vector<4x8x32xf32>
    "tpu.trace_stop"() : () -> ()
    %52 = tpu.transpose %51, [1, 0, 2] : vector<4x8x32xf32> -> vector<8x4x32xf32>
    %53 = vector.shape_cast %52 : vector<8x4x32xf32> to vector<8x128xf32>
    %54 = arith.truncf %53 : vector<8x128xf32> to vector<8x128xbf16>
    %c0_27 = arith.constant 0 : index
    %c0_28 = arith.constant 0 : index
    %55 = vector.load %arg9[%c0_27, %c0_28] : memref<128x128xbf16, #tpu.memory_space<vmem>>, vector<128x128xbf16>
    %cst_29 = arith.constant dense<0.000000e+00> : vector<8x128xf32>
    %56 = tpu.matmul %54, %55, %cst_29 {dimension_numbers = #tpu.dot_dimension_numbers<[1], [0], [0], [1], [0, 0, 1, 1], [], []>} : vector<8x128xbf16>, vector<128x128xbf16>, vector<8x128xf32> -> vector<8x128xf32>
    %57 = vector.broadcast %4 : vector<1x128xf32> to vector<8x128xf32>
    %58 = arith.addf %56, %57 : vector<8x128xf32>
    %59 = arith.extf %11 : vector<8x128xbf16> to vector<8x128xf32>
    %60 = arith.addf %59, %58 : vector<8x128xf32>
    %cst_30 = arith.constant dense<0.000000e+00> : vector<8xf32>
    %61 = vector.multi_reduction <add>, %60, %cst_30 [1] : vector<8x128xf32> to vector<8xf32>
    %62 = vector.shape_cast %61 : vector<8xf32> to vector<8x1xf32>
    %cst_31 = arith.constant 1.280000e+02 : f32
    %63 = vector.broadcast %cst_31 : f32 to vector<8x1xf32>
    %64 = arith.divf %62, %63 : vector<8x1xf32>
    %65 = vector.broadcast %64 : vector<8x1xf32> to vector<8x128xf32>
    %66 = arith.subf %60, %65 : vector<8x128xf32>
    %67 = arith.mulf %66, %66 : vector<8x128xf32>
    %cst_32 = arith.constant dense<0.000000e+00> : vector<8xf32>
    %68 = vector.multi_reduction <add>, %67, %cst_32 [1] : vector<8x128xf32> to vector<8xf32>
    %69 = vector.shape_cast %68 : vector<8xf32> to vector<8x1xf32>
    %cst_33 = arith.constant 1.280000e+02 : f32
    %70 = vector.broadcast %cst_33 : f32 to vector<8x1xf32>
    %71 = arith.divf %69, %70 : vector<8x1xf32>
    %72 = vector.broadcast %64 : vector<8x1xf32> to vector<8x128xf32>
    %73 = arith.subf %60, %72 : vector<8x128xf32>
    %cst_34 = arith.constant 9.99999974E-6 : f32
    %74 = vector.broadcast %cst_34 : f32 to vector<8x1xf32>
    %75 = arith.addf %71, %74 : vector<8x1xf32>
    %76 = math.rsqrt %75 : vector<8x1xf32>
    %77 = vector.broadcast %76 : vector<8x1xf32> to vector<8x128xf32>
    %78 = arith.mulf %73, %77 : vector<8x128xf32>
    %79 = vector.broadcast %5 : vector<1x128xf32> to vector<8x128xf32>
    %80 = arith.mulf %78, %79 : vector<8x128xf32>
    %81 = vector.broadcast %6 : vector<1x128xf32> to vector<8x128xf32>
    %82 = arith.addf %80, %81 : vector<8x128xf32>
    %c0_35 = arith.constant 0 : index
    %c0_36 = arith.constant 0 : index
    %83 = vector.load %arg14[%c0_35, %c0_36] : memref<3x128xf32, #tpu.memory_space<vmem>>, vector<3x128xf32>
    %84 = vector.extract_strided_slice %83 {offsets = [0, 0], sizes = [1, 128], strides = [1, 1]} : vector<3x128xf32> to vector<1x128xf32>
    %85 = vector.extract_strided_slice %83 {offsets = [1, 0], sizes = [1, 128], strides = [1, 1]} : vector<3x128xf32> to vector<1x128xf32>
    %86 = vector.extract_strided_slice %83 {offsets = [2, 0], sizes = [1, 128], strides = [1, 1]} : vector<3x128xf32> to vector<1x128xf32>
    %87 = arith.truncf %82 : vector<8x128xf32> to vector<8x128xbf16>
    %c0_37 = arith.constant 0 : index
    %c0_38 = arith.constant 0 : index
    %88 = vector.load %arg11[%c0_37, %c0_38] : memref<128x256xbf16, #tpu.memory_space<vmem>>, vector<128x256xbf16>
    %cst_39 = arith.constant dense<0.000000e+00> : vector<8x256xf32>
    %89 = tpu.matmul %87, %88, %cst_39 {dimension_numbers = #tpu.dot_dimension_numbers<[1], [0], [0], [1], [0, 0, 1, 1], [], []>} : vector<8x128xbf16>, vector<128x256xbf16>, vector<8x256xf32> -> vector<8x256xf32>
    %c0_40 = arith.constant 0 : index
    %c0_41 = arith.constant 0 : index
    %90 = vector.load %arg12[%c0_40, %c0_41] : memref<1x256xf32, #tpu.memory_space<vmem>>, vector<1x256xf32>
    %91 = vector.broadcast %90 : vector<1x256xf32> to vector<8x256xf32>
    %92 = arith.addf %89, %91 : vector<8x256xf32>
    %cst_42 = arith.constant 0.000000e+00 : f32
    %93 = vector.broadcast %cst_42 : f32 to vector<8x256xf32>
    %94 = arith.maximumf %92, %93 : vector<8x256xf32>
    %95 = arith.truncf %94 : vector<8x256xf32> to vector<8x256xbf16>
    %c0_43 = arith.constant 0 : index
    %c0_44 = arith.constant 0 : index
    %96 = vector.load %arg13[%c0_43, %c0_44] : memref<256x128xbf16, #tpu.memory_space<vmem>>, vector<256x128xbf16>
    %cst_45 = arith.constant dense<0.000000e+00> : vector<8x128xf32>
    %97 = tpu.matmul %95, %96, %cst_45 {dimension_numbers = #tpu.dot_dimension_numbers<[1], [0], [0], [1], [0, 0, 1, 1], [], []>} : vector<8x256xbf16>, vector<256x128xbf16>, vector<8x128xf32> -> vector<8x128xf32>
    %98 = vector.broadcast %84 : vector<1x128xf32> to vector<8x128xf32>
    %99 = arith.addf %97, %98 : vector<8x128xf32>
    %100 = arith.addf %82, %99 : vector<8x128xf32>
    %cst_46 = arith.constant dense<0.000000e+00> : vector<8xf32>
    %101 = vector.multi_reduction <add>, %100, %cst_46 [1] : vector<8x128xf32> to vector<8xf32>
    %102 = vector.shape_cast %101 : vector<8xf32> to vector<8x1xf32>
    %cst_47 = arith.constant 1.280000e+02 : f32
    %103 = vector.broadcast %cst_47 : f32 to vector<8x1xf32>
    %104 = arith.divf %102, %103 : vector<8x1xf32>
    %105 = vector.broadcast %104 : vector<8x1xf32> to vector<8x128xf32>
    %106 = arith.subf %100, %105 : vector<8x128xf32>
    %107 = arith.mulf %106, %106 : vector<8x128xf32>
    %cst_48 = arith.constant dense<0.000000e+00> : vector<8xf32>
    %108 = vector.multi_reduction <add>, %107, %cst_48 [1] : vector<8x128xf32> to vector<8xf32>
    %109 = vector.shape_cast %108 : vector<8xf32> to vector<8x1xf32>
    %cst_49 = arith.constant 1.280000e+02 : f32
    %110 = vector.broadcast %cst_49 : f32 to vector<8x1xf32>
    %111 = arith.divf %109, %110 : vector<8x1xf32>
    %112 = vector.broadcast %104 : vector<8x1xf32> to vector<8x128xf32>
    %113 = arith.subf %100, %112 : vector<8x128xf32>
    %cst_50 = arith.constant 9.99999974E-6 : f32
    %114 = vector.broadcast %cst_50 : f32 to vector<8x1xf32>
    %115 = arith.addf %111, %114 : vector<8x1xf32>
    %116 = math.rsqrt %115 : vector<8x1xf32>
    %117 = vector.broadcast %116 : vector<8x1xf32> to vector<8x128xf32>
    %118 = arith.mulf %113, %117 : vector<8x128xf32>
    %119 = vector.broadcast %85 : vector<1x128xf32> to vector<8x128xf32>
    %120 = arith.mulf %118, %119 : vector<8x128xf32>
    %121 = vector.broadcast %86 : vector<1x128xf32> to vector<8x128xf32>
    %122 = arith.addf %120, %121 : vector<8x128xf32>
    %123 = arith.truncf %122 : vector<8x128xf32> to vector<8x128xbf16>
    %c0_51 = arith.constant 0 : index
    %c0_52 = arith.constant 0 : index
    %c0_53 = arith.constant 0 : index
    %124 = vector.load %arg15[%c0_51, %c0_52, %c0_53] : memref<1x8x128xbf16, #tpu.memory_space<vmem>>, vector<1x8x128xbf16>
    %125 = vector.shape_cast %124 : vector<1x8x128xbf16> to vector<8x128xbf16>
    %126 = vector.shape_cast %123 : vector<8x128xbf16> to vector<1x8x128xbf16>
    tpu.vector_store %arg15[%c0_51, %c0_52, %c0_53], %126 {strides = array<i32>} : memref<1x8x128xbf16, #tpu.memory_space<vmem>>, vector<1x8x128xbf16>,
    return
  }
  func.func @transform_0(%arg0: i32, %arg1: i32) -> (i32, i32, i32) {
    %c0_i32 = arith.constant 0 : i32
    %c0_i32_0 = arith.constant 0 : i32
    return %arg0, %arg1, %c0_i32 : i32, i32, i32
  }
  func.func @transform_1(%arg0: i32, %arg1: i32) -> (i32, i32, i32) {
    %c0_i32 = arith.constant 0 : i32
    %c0_i32_0 = arith.constant 0 : i32
    %c0_i32_1 = arith.constant 0 : i32
    return %arg0, %c0_i32, %c0_i32_0 : i32, i32, i32
  }
  func.func @transform_2(%arg0: i32, %arg1: i32) -> (i32, i32, i32) {
    %c0_i32 = arith.constant 0 : i32
    %c0_i32_0 = arith.constant 0 : i32
    return %arg0, %arg1, %c0_i32 : i32, i32, i32
  }
  func.func @transform_3(%arg0: i32, %arg1: i32) -> (i32, i32, i32) {
    %c0_i32 = arith.constant 0 : i32
    %c0_i32_0 = arith.constant 0 : i32
    %c0_i32_1 = arith.constant 0 : i32
    return %arg0, %c0_i32, %c0_i32_0 : i32, i32, i32
  }
  func.func @transform_4(%arg0: i32, %arg1: i32) -> (i32, i32) {
    %c0_i32 = arith.constant 0 : i32
    %c0_i32_0 = arith.constant 0 : i32
    %c0_i32_1 = arith.constant 0 : i32
    return %c0_i32, %c0_i32_0 : i32, i32
  }
  func.func @transform_5(%arg0: i32, %arg1: i32) -> (i32, i32) {
    %c0_i32 = arith.constant 0 : i32
    %c0_i32_0 = arith.constant 0 : i32
    %c0_i32_1 = arith.constant 0 : i32
    return %c0_i32, %c0_i32_0 : i32, i32
  }
  func.func @transform_6(%arg0: i32, %arg1: i32) -> (i32, i32) {
    %c0_i32 = arith.constant 0 : i32
    %c0_i32_0 = arith.constant 0 : i32
    %c0_i32_1 = arith.constant 0 : i32
    return %c0_i32, %c0_i32_0 : i32, i32
  }
  func.func @transform_7(%arg0: i32, %arg1: i32) -> (i32, i32) {
    %c0_i32 = arith.constant 0 : i32
    %c0_i32_0 = arith.constant 0 : i32
    %c0_i32_1 = arith.constant 0 : i32
    return %c0_i32, %c0_i32_0 : i32, i32
  }
  func.func @transform_8(%arg0: i32, %arg1: i32) -> (i32, i32) {
    %c0_i32 = arith.constant 0 : i32
    %c0_i32_0 = arith.constant 0 : i32
    %c0_i32_1 = arith.constant 0 : i32
    return %c0_i32, %c0_i32_0 : i32, i32
  }
  func.func @transform_9(%arg0: i32, %arg1: i32) -> (i32, i32) {
    %c0_i32 = arith.constant 0 : i32
    %c0_i32_0 = arith.constant 0 : i32
    %c0_i32_1 = arith.constant 0 : i32
    return %c0_i32, %c0_i32_0 : i32, i32
  }
  func.func @transform_10(%arg0: i32, %arg1: i32) -> (i32, i32) {
    %c0_i32 = arith.constant 0 : i32
    %c0_i32_0 = arith.constant 0 : i32
    %c0_i32_1 = arith.constant 0 : i32
    return %c0_i32, %c0_i32_0 : i32, i32
  }
  func.func @transform_11(%arg0: i32, %arg1: i32) -> (i32, i32) {
    %c0_i32 = arith.constant 0 : i32
    %c0_i32_0 = arith.constant 0 : i32
    %c0_i32_1 = arith.constant 0 : i32
    return %c0_i32, %c0_i32_0 : i32, i32
  }
  func.func @transform_12(%arg0: i32, %arg1: i32) -> (i32, i32) {
    %c0_i32 = arith.constant 0 : i32
    %c0_i32_0 = arith.constant 0 : i32
    %c0_i32_1 = arith.constant 0 : i32
    return %c0_i32, %c0_i32_0 : i32, i32
  }
  func.func @transform_13(%arg0: i32, %arg1: i32) -> (i32, i32, i32) {
    %c0_i32 = arith.constant 0 : i32
    %c0_i32_0 = arith.constant 0 : i32
    return %arg0, %arg1, %c0_i32 : i32, i32, i32
  }
}

</mosaic_0001>

<bundles_post_ra>
// kernel: transformer_forward.13
= control target key start
LH: loop header
LB: loop body
LE: loop exit
PB: predicated region body
PF: predicated region fallthrough
CT: control target
= control target key end

     0   :  { %v231_v1 = vmov 0.0   ;;  %vm232_vm0 = vmmov 0   ;;  %s298_s0 = inlined_call_operand.vmem [shape: bf16[16,128], index: 0, kind: input, shape index: {}]   ;;  %s299_s1 = inlined_call_operand.vmem [shape: bf16[128,128], index: 1, kind: input, shape index: {}]   ;;  %s300_s2 = inlined_call_operand.vmem [shape: f32[1,128], index: 2, kind: input, shape index: {}]   ;;  %s301_s3 = inlined_call_operand.hbm [shape: f32[16,128], index: 3, kind: output, shape index: {}]  }
   0x1   :  { %v198_v0 = vld [vmem:[%s299_s1] sm:$0xff]   ;;  %173 = vmatprep.subr.bf16.mxu0 %v231_v1  ;;  %v199_v2 = vld [vmem:[%s299_s1 + $0x8] sm:$0xff]   ;;  %189 = vmatprep.mubr.msk.bf16.mxu0 %vm232_vm0, %v231_v1  ;;  %v200_v3 = vld [vmem:[%s299_s1 + $0x10] sm:$0xff]  }
   0x2   :  { %174 = vmatpush3.bf16.msra.mxu0 %v198_v0 }
   0x3   :  { %175 = vmatprep.subr.bf16.mxu0 %v231_v1 }
   0x6   :  { %176 = vmatpush3.bf16.msra.mxu0 %v199_v2 }
   0x7   :  { %177 = vmatprep.subr.bf16.mxu0 %v231_v1 }
   0x8   :  { %8 = vsyncpa [#allocation3], 0  ;;  %v201_v4 = vld [vmem:[%s299_s1 + $0x18] sm:$0xff]   ;;  %v202_v5 = vld [vmem:[%s299_s1 + $0x20] sm:$0xff]   ;;  %s233_s5 = smov [#allocation2]  }
   0x9   :  { %v203_v6 = vld [vmem:[%s299_s1 + $0x28] sm:$0xff]   ;;  %v204_v7 = vld [vmem:[%s299_s1 + $0x30] sm:$0xff]   ;;  %v205_v8 = vld [vmem:[%s299_s1 + $0x38] sm:$0xff]   ;;  %s143_s6 = sshll.u32 %s233_s5, 4  ;;  %s144_s6 = int_to_ptr.vmem [resolvable:$true] %s143_s6 }
   0xa   :  { %178 = vmatpush3.bf16.msra.mxu0 %v200_v3  ;;  %v206_v9 = vld [vmem:[%s298_s0] sm:$0xff]   ;;  %s207_s1 = scalar_lea.vmem %s144_s6, 256  ;;  %p212_p1 = scmp.lt.s32.totalorder %s144_s6, %s144_s6 }
   0xb   :  { %179 = vmatprep.subr.bf16.mxu0 %v231_v1  ;;  %v154_v10 = vld [vmem:[%s300_s2] ss:$0 sm:$0xff]  ;;  %p208_p0 = scmp.ne.s32.totalorder %s144_s6, %s207_s1  ;;  %p213_p2 = scmp.lt.s32.totalorder %s207_s1, %s207_s1 }
   0xd   :  { %p214_p3 = por %p213_p2, %p212_p1 }
   0xe   :  { %180 = vmatpush3.bf16.msra.mxu0 %v201_v4 }
   0xf   :  { %181 = vmatprep.subr.bf16.mxu0 %v231_v1  ;;  %p215_p4 = pnand %p214_p3, %p208_p0 }
  0x12   :  { %182 = vmatpush3.bf16.msra.mxu0 %v202_v5 }
  0x13   :  { %183 = vmatprep.subr.bf16.mxu0 %v231_v1 }
  0x16   :  { %184 = vmatpush3.bf16.msra.mxu0 %v203_v6 }
  0x17   :  { %185 = vmatprep.subr.bf16.mxu0 %v231_v1 }
  0x1a   :  { %186 = vmatpush3.bf16.msra.mxu0 %v204_v7 }
  0x1b   :  { %187 = vmatprep.subr.bf16.mxu0 %v231_v1 }
  0x1e   :  { %188 = vmatpush3.bf16.msra.mxu0 %v205_v8 }
  0x21   :  { %190 = vmatmul.mubr.bf16.vlgmr.msra.gmra.mrb[0].mxu0 %v206_v9 }
  0xf4   :  { %v129_v11 = vpop.f32.mrb[0].mxu0 }
  0xf5   :  { %v130_v12 = vadd.f32 %v154_v10, %v129_v11  ;;  %v191_v13 = vpop.f32.mrb[1].mxu0 }
  0xf6   :  { %v132_v14 = vpop.f32.mrb[2].mxu0 }
  0xf7   :  { %136 = vst [vmem:[#allocation2] sm:$0xff] %v130_v12  ;;  %v133_v15 = vadd.f32 %v154_v10, %v132_v14  ;;  %v192_v16 = vpop.f32.mrb[3].mxu0 }
  0xf9   :  { %137 = vst [vmem:[#allocation2 + $0x8] sm:$0xff] %v133_v15 }
  0xfa   :  { %218 = shalt.err (!%p215_p4)
}
  0xfb   :  { %s219_s7 = scalar_lea.hbm %s301_s3, 256 }
  0xfc   :  { %p220_p5 = scmp.ne.s32.totalorder %s301_s3, %s219_s7  ;;  %p223_p6 = scmp.lt.u32.totalorder %s219_s7, %s301_s3 }
  0xfe   :  { %p225_p7 = pnand %p223_p6, %p220_p5 }
 0x100   :  { %228 = shalt.err (!%p225_p7)
}
 0x101   :  { %s234_s12 = smov 128   ;;  %s235_s13 = smov 8  }
 0x102   :  { %149 = dma.vmem_to_hbm [thread:$0]  %s144_s6, 256, %s301_s3, [#allocation3], %s234_s12, %s234_s12, %s235_s13  }
 0x103   :  { %229 = dma.done.wait [#allocation3], 256  }
 0x104   :  { %230 = vsyncadd [#allocation3], 4294967040 }
 0x105   :  { %153 = vsyncpa [#allocation3], 1 }

// kernel: transformer_forward.9
= control target key start
LH: loop header
LB: loop body
LE: loop exit
PB: predicated region body
PF: predicated region fallthrough
CT: control target
= control target key end

     0   :  { %s2470_s30 = smov 0   ;;  %s2472_s10 = smov 0   ;;  %s2869_s0 = inlined_call_operand.vmem [shape: bf16[2,8,128], index: 0, kind: input, shape index: {}, may-alias: {0,1}]   ;;  %s2870_s1 = inlined_call_operand.vmem [shape: bf16[2,8,128], index: 1, kind: input, shape index: {}, may-alias: {0,1}]   ;;  %s2871_s2 = inlined_call_operand.vmem [shape: s32[2,8,1], index: 2, kind: input, shape index: {}]   ;;  %s2872_s3 = inlined_call_operand.vmem [shape: s32[2,1,8], index: 3, kind: input, shape index: {}]   ;;  %s2873_s4 = inlined_call_operand.vmem [shape: bf16[128,128], index: 4, kind: input, shape index: {}]   ;;  %s2874_s5 = inlined_call_operand.vmem [shape: bf16[128,128], index: 5, kind: input, shape index: {}]   ;;  %s2875_s6 = inlined_call_operand.vmem [shape: bf16[128,128], index: 6, kind: input, shape index: {}]   ;;  %s2876_s7 = inlined_call_operand.vmem [shape: bf16[128,128], index: 7, kind: input, shape index: {}]   ;;  %s2877_s8 = inlined_call_operand.vmem [shape: f32[6,128], index: 8, kind: input, shape index: {}]   ;;  %s2878_s9 = inlined_call_operand.vmem [shape: bf16[2,8,128], index: 9, kind: output, shape index: {}]  }
   0x1   :  { %s2474_s11 = smov 0  }
   0x2 LB: > { %s31_s12 = sadd.s32 1, %s2406_s10  ;;  %p2070_p0 = scmp.ge.s32.totalorder %s2410_s11, 1  ;;  %s2410_s11 = sphi %s2474_s11, %s19_s11   ;;  %s2406_s10 = sphi %s2472_s10, %s2882_s10   ;;  %s2402_s30 = sphi %s2470_s30, %s2881_s30  }
   0x3   : > { %p33_p1 = scmp.ge.s32.totalorder %s31_s12, 2  ;;  %p336_p2 = scmp.lt.s32.totalorder %s2410_s11, 3 }
   0x5   : > { %s2884_s12 = smov (%p33_p1, %s31_s12), 0  ;;  %p337_p3 = pnand %p2070_p0, %p336_p2 }
   0x6   : > { %v2338_v0 = vld [vmem:[%s2874_s5] sm:$0xff] (!%p337_p3)   ;;  %v2412_v1 = vmov (!%p337_p3), 0.0   ;;  %v2339_v2 = vld [vmem:[%s2874_s5 + $0x8] sm:$0xff] (!%p337_p3)   ;;  %vm2413_vm0 = vmmov (!%p337_p3), 0   ;;  %v2340_v3 = vld [vmem:[%s2874_s5 + $0x10] sm:$0xff] (!%p337_p3)   ;;  %p390_p4 = scmp.lt.s32.totalorder (!%p337_p3), %s2402_s30, 1  ;;  %v441_v20 = vlaneseq (!%p337_p3) }
   0x7   : > { %340 = sbr.rel (%p337_p3) target bundleno = 1861 (0x745), region = 56  ;;  %2177 = vmatprep.subr.bf16.mxu0 (!%p337_p3), %v2412_v1  ;;  %2197 = vmatprep.subr.bf16.mxu1 (!%p337_p3), %v2412_v1  ;;  %v2341_v4 = vld [vmem:[%s2874_s5 + $0x18] sm:$0xff] (!%p337_p3)   ;;  %v2342_v5 = vld [vmem:[%s2874_s5 + $0x20] sm:$0xff] (!%p337_p3)   ;;  %v2343_v6 = vld [vmem:[%s2874_s5 + $0x28] sm:$0xff] (!%p337_p3)   ;;  %s2415_s16 = smov (!%p337_p3), 32   ;;  %v2417_v45 = vmov (!%p337_p3), 0  }
   0x8   : > { %2178 = vmatpush3.bf16.msra.mxu0 (!%p337_p3), %v2338_v0  ;;  %2193 = vmatprep.mubr.msk.bf16.mxu0 (!%p337_p3), %vm2413_vm0, %v2412_v1  ;;  %v2344_v7 = vld [vmem:[%s2874_s5 + $0x30] sm:$0xff] (!%p337_p3)   ;;  %v2345_v8 = vld [vmem:[%s2874_s5 + $0x38] sm:$0xff] (!%p337_p3)   ;;  %v2346_v10 = vld [vmem:[%s2873_s4] sm:$0xff] (!%p337_p3)   ;;  %v2589_v22 = vshrl.u32 (!%p337_p3), %v441_v20, 7  ;;  %s2416_s19 = smov (!%p337_p3), 64   ;;  %vm791_vm2 = vcmask (!%p337_p3), 257024  }
   0x9   : > { %2179 = vmatprep.subr.bf16.mxu0 (!%p337_p3), %v2412_v1  ;;  %2213 = vmatprep.mubr.msk.bf16.mxu1 (!%p337_p3), %vm2413_vm0, %v2412_v1  ;;  %v2347_v11 = vld [vmem:[%s2873_s4 + $0x8] sm:$0xff] (!%p337_p3)   ;;  %v2348_v12 = vld [vmem:[%s2873_s4 + $0x10] sm:$0xff] (!%p337_p3)   ;;  %v2349_v13 = vld [vmem:[%s2873_s4 + $0x18] sm:$0xff] (!%p337_p3)   ;;  %v2418_v48 = vmov (!%p337_p3), 1983009808   ;;  %vm1218_vm3 = vcmask (!%p337_p3), 261120  }
   0xa   : > { %v2350_v14 = vld [vmem:[%s2873_s4 + $0x20] sm:$0xff] (!%p337_p3)   ;;  %v2351_v15 = vld [vmem:[%s2873_s4 + $0x28] sm:$0xff] (!%p337_p3)   ;;  %v2352_v16 = vld [vmem:[%s2873_s4 + $0x30] sm:$0xff] (!%p337_p3)   ;;  %v443_v24 = vsub.s32 (!%p337_p3), 1, %v2589_v22  ;;  %v969_v37 = vsub.s32 (!%p337_p3), 0, %v2589_v22  ;;  %2337 = vset.pattern.permute.xlu0 (!%p337_p3), %v2417_v45  ;;  %v654_v49 = vunpack.c.l.s4 (!%p337_p3), %v2418_v48  ;;  %vm1434_vm10 = vcmask (!%p337_p3), 64512  }
   0xb   : > { %v2353_v17 = vld [vmem:[%s2873_s4 + $0x38] sm:$0xff] (!%p337_p3)   ;;  %v2354_v19 = vld [vmem:[%s2875_s6] sm:$0xff] (!%p337_p3)   ;;  %v2355_v21 = vld [vmem:[%s2875_s6 + $0x8] sm:$0xff] (!%p337_p3)   ;;  %v2419_v50 = vmov (!%p337_p3), 1934713408   ;;  %vm1486_vm11 = vcmask (!%p337_p3), 1043456  }
   0xc   : > { %2180 = vmatpush3.bf16.msra.mxu0 (!%p337_p3), %v2339_v2  ;;  %2198 = vmatpush3.bf16.msra.mxu1 (!%p337_p3), %v2354_v19  ;;  %v2356_v23 = vld [vmem:[%s2875_s6 + $0x10] sm:$0xff] (!%p337_p3)   ;;  %v2599_v25 = vld [vmem:[%s2877_s8] sm:$0x3f] (!%p337_p3)  ;;  %v2357_v26 = vld [vmem:[%s2875_s6 + $0x18] sm:$0xff] (!%p337_p3)   ;;  %v686_v51 = vunpack.c.l.s4 (!%p337_p3), %v2419_v50  ;;  %v655_v52 = vunpack.c.0.s8 (!%p337_p3), %v654_v49  ;;  %vm1817_vm12 = vcmask (!%p337_p3), 523264   ;;  %vm1819_vm13 = vcmask (!%p337_p3), 785408  }
   0xd   : > { %2181 = vmatprep.subr.bf16.mxu0 (!%p337_p3), %v2412_v1  ;;  %2199 = vmatprep.subr.bf16.mxu1 (!%p337_p3), %v2412_v1  ;;  %v444_v27 = vrot.slane (!%p337_p3), %v2599_v25, %v443_v24  ;;  %v2358_v29 = vld [vmem:[%s2875_s6 + $0x20] sm:$0xff] (!%p337_p3)   ;;  %v2359_v34 = vld [vmem:[%s2875_s6 + $0x28] sm:$0xff] (!%p337_p3)   ;;  %v2360_v35 = vld [vmem:[%s2875_s6 + $0x30] sm:$0xff] (!%p337_p3)   ;;  %v970_v38 = vrot.slane (!%p337_p3), %v2599_v25, %v969_v37 }
   0xe   : > { %s2886_s30 = smov (!%p390_p4, %s2402_s30), 1  ;;  %v2361_v36 = vld [vmem:[%s2875_s6 + $0x38] sm:$0xff]   ;;  %v687_v55 = vunpack.c.0.s8 %v686_v51  ;;  %v2648_v56 = vsub.s32 %v655_v52, %v2589_v22 }
   0xf   : > { %s2519_s25 = sshll.u32 %s2886_s30, 2  ;;  %s2073_s24 = sshll.u32 %s2886_s30, 3 }
  0x10   : > { %2182 = vmatpush3.bf16.msra.mxu0 %v2340_v3  ;;  %s400_s15 = scalar_lea.vmem %s2870_s1, %s2519_s25  ;;  %s396_s18 = scalar_lea.vmem %s2869_s0, %s2519_s25  ;;  %2200 = vmatpush3.bf16.msra.mxu1 %v2355_v21  ;;  %v2651_v62 = vsub.s32 %v687_v55, %v2589_v22 }
  0x11   : > { %2183 = vmatprep.subr.bf16.mxu0 %v2412_v1  ;;  %v2534_v9 = vld [vmem:[%s400_s15] sm:$0xf]  ;;  %2201 = vmatprep.subr.bf16.mxu1 %v2412_v1  ;;  %s2414_s15 = smov 96   ;;  %s407_s28 = scalar_lea.vmem %s2871_s2, %s2073_s24 }
  0x12   : > { %v2575_v18 = vld [vmem:[%s396_s18] sm:$0xf]  ;;  %s410_s14 = scalar_lea.vmem %s2872_s3, %s2886_s30 }
  0x13   : > { %v1403_v46 = vld [vmem:[%s407_s28] sm:$0xff] }
  0x14   : > { %2184 = vmatpush3.bf16.msra.mxu0 %v2341_v4  ;;  %2202 = vmatpush3.bf16.msra.mxu1 %v2356_v23  ;;  %vm1404_vm1 = vcmp.ne.s32.totalorder %v1403_v46, 0 }
  0x15   : > { %2185 = vmatprep.subr.bf16.mxu0 %v2412_v1  ;;  %2203 = vmatprep.subr.bf16.mxu1 %v2412_v1  ;;  %v1407_v47 = vsel %vm1404_vm1, 1, %v2417_v45 }
  0x18   : > { %2186 = vmatpush3.bf16.msra.mxu0 %v2342_v5  ;;  %2204 = vmatpush3.bf16.msra.mxu1 %v2357_v26 }
  0x19   : > { %2187 = vmatprep.subr.bf16.mxu0 %v2412_v1  ;;  %2205 = vmatprep.subr.bf16.mxu1 %v2412_v1 }
  0x1c   : > { %2188 = vmatpush3.bf16.msra.mxu0 %v2343_v6  ;;  %2206 = vmatpush3.bf16.msra.mxu1 %v2358_v29 }
  0x1d   : > { %2189 = vmatprep.subr.bf16.mxu0 %v2412_v1  ;;  %2207 = vmatprep.subr.bf16.mxu1 %v2412_v1 }
  0x20   : > { %2190 = vmatpush3.bf16.msra.mxu0 %v2344_v7  ;;  %2208 = vmatpush3.bf16.msra.mxu1 %v2359_v34 }
  0x21   : > { %2191 = vmatprep.subr.bf16.mxu0 %v2412_v1  ;;  %2209 = vmatprep.subr.bf16.mxu1 %v2412_v1 }
  0x24   : > { %2192 = vmatpush3.bf16.msra.mxu0 %v2345_v8  ;;  %2210 = vmatpush3.bf16.msra.mxu1 %v2360_v35 }
  0x25   : > { %2217 = vmatprep.subr.bf16.mxu0 %v2412_v1  ;;  %2211 = vmatprep.subr.bf16.mxu1 %v2412_v1 }
  0x27   : > { %2194 = vmatmul.mubr.bf16.vlgmr.msra.gmra.mrb[0].mxu0 %v2534_v9 }
  0x28   : > { %2218 = vmatpush3.bf16.msra.mxu0 %v2346_v10  ;;  %2233 = vmatprep.mubr.msk.bf16.mxu0 %vm2413_vm0, %v2412_v1 }
  0x29   : > { %2219 = vmatprep.subr.bf16.mxu0 %v2412_v1  ;;  %2212 = vmatpush3.bf16.msra.mxu1 %v2361_v36 }
  0x2a   : > { %2237 = vmatprep.subr.bf16.mxu1 %v2412_v1 }
  0x2c   : > { %2220 = vmatpush3.bf16.msra.mxu0 %v2347_v11  ;;  %2214 = vmatmul.mubr.bf16.vlgmr.msra.gmra.mrb[0].mxu1 %v2534_v9 }
  0x2d   : > { %2221 = vmatprep.subr.bf16.mxu0 %v2412_v1  ;;  %2239 = vmatprep.mubr.msk.bf16.mxu1 %vm2413_vm0, %v2412_v1 }
  0x30   : > { %2222 = vmatpush3.bf16.msra.mxu0 %v2348_v12 }
  0x31   : > { %2223 = vmatprep.subr.bf16.mxu0 %v2412_v1 }
  0x34   : > { %2224 = vmatpush3.bf16.msra.mxu0 %v2349_v13 }
  0x35   : > { %2225 = vmatprep.subr.bf16.mxu0 %v2412_v1 }
  0x38   : > { %2226 = vmatpush3.bf16.msra.mxu0 %v2350_v14 }
  0x39   : > { %2227 = vmatprep.subr.bf16.mxu0 %v2412_v1 }
  0x3c   : > { %2228 = vmatpush3.bf16.msra.mxu0 %v2351_v15 }
  0x3d   : > { %2229 = vmatprep.subr.bf16.mxu0 %v2412_v1 }
  0x40   : > { %2230 = vmatpush3.bf16.msra.mxu0 %v2352_v16 }
  0x41   : > { %2231 = vmatprep.subr.bf16.mxu0 %v2412_v1 }
  0x44   : > { %2232 = vmatpush3.bf16.msra.mxu0 %v2353_v17 }
  0x45   : > { %2285 = vmatprep.subr.bf16.mxu0 %v2412_v1 }
  0x47   : > { %2234 = vmatmul.mubr.bf16.vlgmr.msra.gmra.mrb[4].mxu0 %v2575_v18 }
  0x48   : > { %2301 = vmatprep.mubr.msk.bf16.mxu0 %vm2413_vm0, %v2412_v1 }
  0xfa   : > { %v527_v28 = vpop.f32.mrb[0].mxu0 }
  0xfb   : > { %v528_v30 = vadd.f32 %v527_v28, %v444_v27  ;;  %v2195_v31 = vpop.f32.mrb[1].mxu0 }
  0xfc   : > { %v530_v32 = vpop.f32.mrb[2].mxu0 }
  0xfd   : > { %642 = vrot.lane.b32.xlu0 %v528_v30, %s2414_s15  ;;  %v2196_v33 = vpop.f32.mrb[3].mxu0  ;;  %648 = vrot.lane.b32.xlu1 %v528_v30, %s2415_s16 }
 0x101   : > { %645 = vrot.lane.b32.xlu0 %v528_v30, %s2416_s19 }
 0x11a   : > { %v1053_v39 = vpop.f32.mrb[4].mxu0 }
 0x11b   : > { %v1054_v40 = vadd.f32 %v1053_v39, %v970_v38  ;;  %v2235_v41 = vpop.f32.mrb[5].mxu0 }
 0x11c   : > { %v1056_v42 = vpop.f32.mrb[6].mxu0 }
 0x11d   : > { %v2633_v43 = vmul.f32 0.17677669, %v1054_v40  ;;  %v2236_v44 = vpop.f32.mrb[7].mxu0 }
 0x11f   : > { %1064 = vrot.lane.b32.xlu0 %v2633_v43, %s2416_s19  ;;  %1061 = vrot.lane.b32.xlu1 %v2633_v43, %s2414_s15 }
 0x123   : > { %1067 = vrot.lane.b32.xlu1 %v2633_v43, %s2415_s16  ;;  %1409 = vperm.xlu0 %2337, %v1407_v47  }
 0x16f   : > { %v643_v53 = vpop.permute.xlu0 %642  ;;  %v649_v54 = vpop.permute.xlu1 %648 }
 0x170   : > { %v667_v57 = vcombine.low %v643_v53, %v649_v54  ;;  %v668_v58 = vcombine.high %v643_v53, %v649_v54 }
 0x172   : > { %v675_v63 = vrot.slane %v667_v57, %v2648_v56  ;;  %v682_v0 = vrot.slane %v668_v58, %v2648_v56 }
 0x173   : > { %v646_v59 = vpop.permute.xlu0 %645 }
 0x174   : > { %v651_v60 = vcombine.low %v528_v30, %v646_v59  ;;  %v652_v61 = vcombine.high %v528_v30, %v646_v59 }
 0x176   : > { %v659_v2 = vrot.slane %v651_v60, %v2648_v56  ;;  %v666_v3 = vrot.slane %v652_v61, %v2648_v56 }
 0x178   : > { %v683_v4 = vcombine.low %v659_v2, %v675_v63  ;;  %v684_v5 = vcombine.high %v659_v2, %v675_v63  ;;  %v699_v6 = vcombine.low %v666_v3, %v682_v0  ;;  %v700_v7 = vcombine.high %v666_v3, %v682_v0 }
 0x17a   : > { %v691_v8 = vrot.slane %v683_v4, %v2651_v62  ;;  %v698_v9 = vrot.slane %v684_v5, %v2651_v62  ;;  %v707_v10 = vrot.slane %v699_v6, %v2651_v62  ;;  %v714_v11 = vrot.slane %v700_v7, %v2651_v62 }
 0x17c   : > { %v719_v12 = vcombine.low %v691_v8, %v698_v9  ;;  %v2091_v13 = vcombine.high %v691_v8, %v698_v9  ;;  %v735_v14 = vcombine.low %v707_v10, %v714_v11  ;;  %v2092_v15 = vcombine.high %v707_v10, %v714_v11 }
 0x17e   : > { %v726_v16 = vrot.slane %v719_v12, %v2648_v56  ;;  %v734_v17 = vrot.slane %v2091_v13, %v2648_v56  ;;  %v742_v19 = vrot.slane %v735_v14, %v2648_v56  ;;  %v750_v21 = vrot.slane %v2092_v15, %v2648_v56 }
 0x180   : > { %v751_v23 = vcombine.low %v726_v16, %v734_v17  ;;  %v752_v24 = vcombine.high %v726_v16, %v734_v17  ;;  %v767_v26 = vcombine.low %v742_v19, %v750_v21  ;;  %v768_v27 = vcombine.high %v742_v19, %v750_v21 }
 0x182   : > { %v759_v28 = vrot.slane %v751_v23, %v2651_v62  ;;  %v766_v29 = vrot.slane %v752_v24, %v2651_v62  ;;  %v775_v30 = vrot.slane %v767_v26, %v2651_v62  ;;  %v782_v31 = vrot.slane %v768_v27, %v2651_v62 }
 0x184   : > { %v783_v32 = vcombine.low %v759_v28, %v775_v30  ;;  %v784_v33 = vcombine.high %v759_v28, %v775_v30  ;;  %v785_v34 = vcombine.low %v766_v29, %v782_v31  ;;  %v786_v35 = vcombine.high %v766_v29, %v782_v31 }
 0x186   : > { %v787_v36 = vpack.c.bf16 %v783_v32, %v783_v32  ;;  %v788_v38 = vpack.c.bf16 %v784_v33, %v784_v33  ;;  %v789_v39 = vpack.c.bf16 %v785_v34, %v785_v34  ;;  %v790_v40 = vpack.c.bf16 %v786_v35, %v786_v35 }
 0x188   : > { %792 = vst.msk [vmem:[#allocation2] sm:$0xf] %vm791_vm2, %v787_v36  ;;  %793 = vst.msk [vmem:[#allocation2 + $0x4] sm:$0xf] %vm791_vm2, %v788_v38  ;;  %v635_v36 = vpop.f32.mrb[0].mxu1 }
 0x189   : > { %794 = vst.msk [vmem:[#allocation2 + $0x8] sm:$0xf] %vm791_vm2, %v789_v39  ;;  %795 = vst.msk [vmem:[#allocation2 + $0xc] sm:$0xf] %vm791_vm2, %v790_v40  ;;  %v2215_v38 = vpop.f32.mrb[1].mxu1 }
 0x18a   : > { %v638_v39 = vpop.f32.mrb[2].mxu1 }
 0x18b   : > { %v2216_v40 = vpop.f32.mrb[3].mxu1 }
 0x18f   : > { %v1210_v41 = vld [vmem:[#allocation2] sm:$0xf]  ;;  %v1211_v15 = vld [vmem:[#allocation2 + $0x4] sm:$0xf] }
 0x190   : > { %v1223_v42 = vsel %vm1218_vm3, %v1210_v41, 0  ;;  %v1269_v17 = vsel %vm1218_vm3, %v1211_v15, 0  ;;  %v1212_v24 = vld [vmem:[#allocation2 + $0x8] sm:$0xf]  ;;  %v1213_v31 = vld [vmem:[#allocation2 + $0xc] sm:$0xf] }
 0x191   : > { %2238 = vmatpush3.bf16.xpose.msra.mxu1 %v1223_v42  ;;  %v1065_v44 = vpop.permute.xlu0 %1064  ;;  %v1062_v46 = vpop.permute.xlu1 %1061  ;;  %v1315_v29 = vsel %vm1218_vm3, %v1212_v24, 0  ;;  %v1361_v33 = vsel %vm1218_vm3, %v1213_v31, 0  ;;  %v1405_v41 = vld [vmem:[%s410_s14] sm:$0x1] }
 0x192   : > { %2243 = vmatprep.subr.bf16.mxu1 %v2412_v1  ;;  %v1070_v47 = vcombine.low %v2633_v43, %v1065_v44  ;;  %v1071_v48 = vcombine.high %v2633_v43, %v1065_v44  ;;  %vm1406_vm4 = vcmp.ne.s32.totalorder %v1405_v41, 0 }
 0x193   : > { %v1412_v42 = vsel %vm1406_vm4, 1, %v2417_v45 }
 0x194   : > { %v1078_v52 = vrot.slane %v1070_v47, %v2648_v56  ;;  %v1085_v53 = vrot.slane %v1071_v48, %v2648_v56  ;;  %v1416_v44 = vrot.slane %v1412_v42, %v969_v37  ;;  %v1425_v47 = vand.u32 127, %v441_v20 }
 0x195   : > { %v1068_v49 = vpop.permute.xlu1 %1067 }
 0x196   : > { %v1086_v50 = vcombine.low %v1062_v46, %v1068_v49  ;;  %v1087_v51 = vcombine.high %v1062_v46, %v1068_v49  ;;  %vm1417_vm5 = vcmp.eq.s32.totalorder %v1416_v44, 1  ;;  %vm1426_vm7 = vcmp.gt.s32.totalorder %v1425_v47, %v2589_v22 }
 0x198   : > { %v1094_v54 = vrot.slane %v1086_v50, %v2648_v56  ;;  %v1101_v55 = vrot.slane %v1087_v51, %v2648_v56 }
 0x19a   : > { %v1102_v57 = vcombine.low %v1078_v52, %v1094_v54  ;;  %v1103_v58 = vcombine.high %v1078_v52, %v1094_v54  ;;  %v1118_v59 = vcombine.low %v1085_v53, %v1101_v55  ;;  %v1119_v60 = vcombine.high %v1085_v53, %v1101_v55 }
 0x19c   : > { %v1110_v61 = vrot.slane %v1102_v57, %v2651_v62  ;;  %v1117_v63 = vrot.slane %v1103_v58, %v2651_v62  ;;  %v1126_v43 = vrot.slane %v1118_v59, %v2651_v62  ;;  %v1133_v0 = vrot.slane %v1119_v60, %v2651_v62 }
 0x19e   : > { %v1138_v2 = vcombine.low %v1110_v61, %v1117_v63  ;;  %v2103_v3 = vcombine.high %v1110_v61, %v1117_v63  ;;  %v1154_v4 = vcombine.low %v1126_v43, %v1133_v0  ;;  %v2104_v5 = vcombine.high %v1126_v43, %v1133_v0 }
 0x1a0   : > { %v1145_v6 = vrot.slane %v1138_v2, %v2648_v56  ;;  %v1153_v7 = vrot.slane %v2103_v3, %v2648_v56  ;;  %v1161_v8 = vrot.slane %v1154_v4, %v2648_v56  ;;  %v1169_v9 = vrot.slane %v2104_v5, %v2648_v56 }
 0x1a1   : > { %v551_v5 = vsub.s32 2, %v2589_v22 }
 0x1a2   : > { %v1170_v10 = vcombine.low %v1145_v6, %v1153_v7  ;;  %v1186_v11 = vcombine.low %v1161_v8, %v1169_v9  ;;  %v1171_v19 = vcombine.high %v1145_v6, %v1153_v7  ;;  %v1187_v21 = vcombine.high %v1161_v8, %v1169_v9  ;;  %v1410_v46 = vpop.permute.xlu0 %1409 }
 0x1a3   : > { %vm1411_vm6 = vcmp.eq.s32.totalorder %v1410_v46, 1  ;;  %v552_v9 = vrot.slane %v2599_v25, %v551_v5 }
 0x1a4   : > { %v1178_v12 = vrot.slane %v1170_v10, %v2651_v62  ;;  %v1194_v13 = vrot.slane %v1186_v11, %v2651_v62  ;;  %v1185_v27 = vrot.slane %v1171_v19, %v2651_v62  ;;  %v1201_v28 = vrot.slane %v1187_v21, %v2651_v62  ;;  %vm1418_vm8 = vmor %vm1411_vm6, %vm1417_vm5 }
 0x1a5   : > { %vm2720_vm9 = vmor %vm1418_vm8, %vm1426_vm7  ;;  %v636_v10 = vadd.f32 %v635_v36, %v552_v9 }
 0x1a6   : > { %v1202_v14 = vcombine.low %v1178_v12, %v1194_v13  ;;  %v1203_v23 = vcombine.high %v1178_v12, %v1194_v13  ;;  %v1204_v30 = vcombine.low %v1185_v27, %v1201_v28  ;;  %v1205_v34 = vcombine.high %v1185_v27, %v1201_v28 }
 0x1a8   : > { %v1206_v16 = vpack.c.bf16 %v1202_v14, %v1202_v14  ;;  %v1207_v26 = vpack.c.bf16 %v1203_v23, %v1203_v23  ;;  %v1208_v32 = vpack.c.bf16 %v1204_v30, %v1204_v30  ;;  %v1209_v35 = vpack.c.bf16 %v1205_v34, %v1205_v34 }
 0x1aa   : > { %2240 = vmatmul.mubr.msk.bf16.vlgmr.msra.gmra.mrb[4].mxu1 %vm1218_vm3, %v1206_v16 }
 0x1ab   : > { %2244 = vmatpush3.bf16.xpose.msra.mxu1 %v1269_v17  ;;  %2245 = vmatprep.mubr.msk.bf16.mxu1 %vm2413_vm0, %v2412_v1 }
 0x1ac   : > { %2249 = vmatprep.subr.bf16.mxu1 %v2412_v1 }
 0x1b2   : > { %2246 = vmatmul.mubr.msk.bf16.vlgmr.msra.gmra.mrb[8].mxu1 %vm1218_vm3, %v1207_v26 }
 0x1b3   : > { %2250 = vmatpush3.bf16.xpose.msra.mxu1 %v1315_v29  ;;  %2251 = vmatprep.mubr.msk.bf16.mxu1 %vm2413_vm0, %v2412_v1 }
 0x1b4   : > { %2255 = vmatprep.subr.bf16.mxu1 %v2412_v1 }
 0x1ba   : > { %2252 = vmatmul.mubr.msk.bf16.vlgmr.msra.gmra.mrb[12].mxu1 %vm1218_vm3, %v1208_v32 }
 0x1bb   : > { %2256 = vmatpush3.bf16.xpose.msra.mxu1 %v1361_v33  ;;  %2257 = vmatprep.mubr.msk.bf16.mxu1 %vm2413_vm0, %v2412_v1 }
 0x1bc   : > { %2261 = vmatprep.subr.bf16.mxu1 %v2412_v1 }
 0x1c2   : > { %2258 = vmatmul.mubr.msk.bf16.vlgmr.msra.gmra.mrb[16].mxu1 %vm1218_vm3, %v1209_v35 }
 0x1c3   : > { %2263 = vmatprep.mubr.msk.bf16.mxu1 %vm2413_vm0, %v2412_v1 }
 0x27d   : > { %v1259_v49 = vpop.f32.mrb[4].mxu1 }
 0x27e   : > { %v1430_v45 = vsel %vm2720_vm9, -1e+12, %v1259_v49  ;;  %v2241_v50 = vpop.f32.mrb[5].mxu1 }
 0x27f   : > { %v1262_v51 = vpop.f32.mrb[6].mxu1  ;;  %v1435_v37 = vsel %vm1434_vm10, %v1430_v45, -inf }
 0x280   : > { %1436 = vmax.xlane.f32.xlu1 %v1435_v37  ;;  %v2242_v20 = vpop.f32.mrb[7].mxu1 }
 0x285   : > { %v1305_v52 = vpop.f32.mrb[8].mxu1 }
 0x286   : > { %v1431_v53 = vsel %vm2720_vm9, -1e+12, %v1305_v52  ;;  %v2247_v54 = vpop.f32.mrb[9].mxu1 }
 0x287   : > { %v1308_v55 = vpop.f32.mrb[10].mxu1  ;;  %v1438_v57 = vsel %vm1434_vm10, %v1431_v53, -inf }
 0x288   : > { %1439 = vmax.xlane.f32.xlu0 %v1438_v57  ;;  %v2248_v58 = vpop.f32.mrb[11].mxu1 }
 0x28d   : > { %v1351_v59 = vpop.f32.mrb[12].mxu1 }
 0x28e   : > { %v1432_v60 = vsel %vm2720_vm9, -1e+12, %v1351_v59  ;;  %v2253_v61 = vpop.f32.mrb[13].mxu1 }
 0x28f   : > { %v1354_v63 = vpop.f32.mrb[14].mxu1  ;;  %v1441_v43 = vsel %vm1434_vm10, %v1432_v60, -inf }
 0x290   : > { %1442 = vmax.xlane.f32.xlu1 %v1441_v43  ;;  %v2254_v0 = vpop.f32.mrb[15].mxu1 }
 0x295   : > { %v1397_v2 = vpop.f32.mrb[16].mxu1 }
 0x296   : > { %v1433_v3 = vsel %vm2720_vm9, -1e+12, %v1397_v2  ;;  %v2259_v4 = vpop.f32.mrb[17].mxu1 }
 0x297   : > { %v1400_v6 = vpop.f32.mrb[18].mxu1  ;;  %v1444_v7 = vsel %vm1434_vm10, %v1433_v3, -inf }
 0x298   : > { %1445 = vmax.xlane.f32.xlu0 %v1444_v7  ;;  %v2260_v8 = vpop.f32.mrb[19].mxu1 }
 0x2a1   : > { %797 = vrot.lane.b32.xlu1 %v636_v10, %s2414_s15 }
 0x2a5   : > { %803 = vrot.lane.b32.xlu1 %v636_v10, %s2415_s16 }
 0x2ae   : > { %800 = vrot.lane.b32.xlu0 %v636_v10, %s2416_s19 }
 0x30d   : > { %v1437_v11 = vpop.xlane.xlu1 %1436 }
 0x30e   : > { %v1447_v12 = vsub.f32 %v1430_v45, %v1437_v11 }
 0x310   : > { %v1451_v13 = vmul.f32 1.442695, %v1447_v12 }
 0x312   : > { %2370 = vpow2.f32 %v1451_v13 }
 0x315   : > { %v1440_v14 = vpop.xlane.xlu0 %1439 }
 0x316   : > { %v1448_v15 = vsub.f32 %v1431_v53, %v1440_v14 }
 0x318   : > { %v1453_v16 = vmul.f32 1.442695, %v1448_v15 }
 0x31a   : > { %2372 = vpow2.f32 %v1453_v16 }
 0x31c   : > { %v2741_v17 = vpop.eup %2370 }
 0x31d   : > { %v1443_v19 = vpop.xlane.xlu1 %1442  ;;  %v1459_v21 = vsel %vm1434_vm10, %v2741_v17, 0.0 }
 0x31e   : > { %v1449_v23 = vsub.f32 %v1432_v60, %v1443_v19  ;;  %1460 = vadd.xlane.f32.xlu1 %v1459_v21 }
 0x320   : > { %v1455_v24 = vmul.f32 1.442695, %v1449_v23 }
 0x321   : > { %v798_v26 = vpop.permute.xlu1 %797 }
 0x322   : > { %2374 = vpow2.f32 %v1455_v24 }
 0x324   : > { %v2745_v27 = vpop.eup %2372 }
 0x325   : > { %v804_v28 = vpop.permute.xlu1 %803  ;;  %v1446_v29 = vpop.xlane.xlu0 %1445  ;;  %v1462_v30 = vsel %vm1434_vm10, %v2745_v27, 0.0 }
 0x326   : > { %v1450_v31 = vsub.f32 %v1433_v3, %v1446_v29  ;;  %1463 = vadd.xlane.f32.xlu0 %v1462_v30  ;;  %v822_v32 = vcombine.low %v798_v26, %v804_v28  ;;  %v823_v33 = vcombine.high %v798_v26, %v804_v28 }
 0x328   : > { %v1457_v34 = vmul.f32 1.442695, %v1450_v31  ;;  %v830_v40 = vrot.slane %v822_v32, %v2648_v56  ;;  %v837_v41 = vrot.slane %v823_v33, %v2648_v56 }
 0x329   : > { %v801_v35 = vpop.permute.xlu0 %800 }
 0x32a   : > { %2376 = vpow2.f32 %v1457_v34  ;;  %v806_v36 = vcombine.low %v636_v10, %v801_v35  ;;  %v807_v38 = vcombine.high %v636_v10, %v801_v35 }
 0x32c   : > { %v2749_v39 = vpop.eup %2374  ;;  %v814_v42 = vrot.slane %v806_v36, %v2648_v56  ;;  %v821_v44 = vrot.slane %v807_v38, %v2648_v56 }
 0x32d   : > { %v1465_v46 = vsel %vm1434_vm10, %v2749_v39, 0.0 }
 0x32e   : > { %v838_v47 = vcombine.low %v814_v42, %v830_v40  ;;  %v839_v48 = vcombine.high %v814_v42, %v830_v40  ;;  %v854_v49 = vcombine.low %v821_v44, %v837_v41  ;;  %v855_v45 = vcombine.high %v821_v44, %v837_v41  ;;  %1466 = vadd.xlane.f32.xlu0 %v1465_v46 }
 0x330   : > { %v846_v50 = vrot.slane %v838_v47, %v2651_v62  ;;  %v853_v51 = vrot.slane %v839_v48, %v2651_v62  ;;  %v862_v37 = vrot.slane %v854_v49, %v2651_v62  ;;  %v869_v20 = vrot.slane %v855_v45, %v2651_v62  ;;  %v2363_v48 = vld [vmem:[%s2876_s7 + $0x8] sm:$0xff]   ;;  %v2364_v49 = vld [vmem:[%s2876_s7 + $0x10] sm:$0xff]   ;;  %v2365_v45 = vld [vmem:[%s2876_s7 + $0x18] sm:$0xff]  }
 0x332   : > { %v874_v52 = vcombine.low %v846_v50, %v853_v51  ;;  %v2093_v53 = vcombine.high %v846_v50, %v853_v51  ;;  %v890_v54 = vcombine.low %v862_v37, %v869_v20  ;;  %v2094_v55 = vcombine.high %v862_v37, %v869_v20  ;;  %v2366_v50 = vld [vmem:[%s2876_s7 + $0x20] sm:$0xff]   ;;  %v2367_v51 = vld [vmem:[%s2876_s7 + $0x28] sm:$0xff]  }
 0x334   : > { %v2761_v57 = vpop.eup %2376  ;;  %v881_v58 = vrot.slane %v874_v52, %v2648_v56  ;;  %v889_v59 = vrot.slane %v2093_v53, %v2648_v56  ;;  %v897_v60 = vrot.slane %v890_v54, %v2648_v56  ;;  %v905_v61 = vrot.slane %v2094_v55, %v2648_v56 }
 0x335   : > { %v1468_v63 = vsel %vm1434_vm10, %v2761_v57, 0.0 }
 0x336   : > { %v906_v43 = vcombine.low %v881_v58, %v889_v59  ;;  %v907_v0 = vcombine.high %v881_v58, %v889_v59  ;;  %v922_v2 = vcombine.low %v897_v60, %v905_v61  ;;  %v923_v3 = vcombine.high %v897_v60, %v905_v61  ;;  %1469 = vadd.xlane.f32.xlu1 %v1468_v63 }
 0x338   : > { %v914_v4 = vrot.slane %v906_v43, %v2651_v62  ;;  %v921_v5 = vrot.slane %v907_v0, %v2651_v62  ;;  %v930_v6 = vrot.slane %v922_v2, %v2651_v62  ;;  %v937_v7 = vrot.slane %v923_v3, %v2651_v62 }
 0x33a   : > { %v938_v8 = vcombine.low %v914_v4, %v930_v6  ;;  %v939_v9 = vcombine.high %v914_v4, %v930_v6  ;;  %v940_v10 = vcombine.low %v921_v5, %v937_v7  ;;  %v941_v11 = vcombine.high %v921_v5, %v937_v7 }
 0x33c   : > { %v942_v12 = vpack.c.bf16 %v938_v8, %v938_v8  ;;  %v943_v13 = vpack.c.bf16 %v939_v9, %v939_v9  ;;  %v944_v14 = vpack.c.bf16 %v940_v10, %v940_v10  ;;  %v945_v15 = vpack.c.bf16 %v941_v11, %v941_v11 }
 0x33e   : > { %946 = vst.msk [vmem:[#allocation3] sm:$0xf] %vm791_vm2, %v942_v12  ;;  %947 = vst.msk [vmem:[#allocation3 + $0x4] sm:$0xf] %vm791_vm2, %v943_v13 }
 0x33f   : > { %948 = vst.msk [vmem:[#allocation3 + $0x8] sm:$0xf] %vm791_vm2, %v944_v14  ;;  %949 = vst.msk [vmem:[#allocation3 + $0xc] sm:$0xf] %vm791_vm2, %v945_v15 }
 0x345   : > { %v1214_v16 = vld [vmem:[#allocation3] sm:$0xf]  ;;  %v1215_v28 = vld [vmem:[#allocation3 + $0x4] sm:$0xf] }
 0x346   : > { %v1488_v19 = vsel %vm1486_vm11, %v1214_v16, 0  ;;  %v1534_v30 = vsel %vm1486_vm11, %v1215_v28, 0  ;;  %v1216_v34 = vld [vmem:[#allocation3 + $0x8] sm:$0xf]  ;;  %v1217_v41 = vld [vmem:[#allocation3 + $0xc] sm:$0xf] }
 0x347   : > { %2262 = vmatpush3.bf16.msra.mxu1 %v1488_v19  ;;  %v1580_v36 = vsel %vm1486_vm11, %v1216_v34, 0  ;;  %v2368_v16 = vld [vmem:[%s2876_s7 + $0x30] sm:$0xff]  }
 0x348   : > { %2267 = vmatprep.subr.bf16.mxu1 %v2412_v1 }
 0x3ab   : > { %v1461_v21 = vpop.xlane.xlu1 %1460 }
 0x3ac   : > { %2378 = vrcp.f32 %v1461_v21 }
 0x3b3   : > { %v1464_v23 = vpop.xlane.xlu0 %1463 }
 0x3b4   : > { %2380 = vrcp.f32 %v1464_v23 }
 0x3b6   : > { %v2379_v24 = vpop.eup %2378 }
 0x3b7   : > { %v1475_v26 = vmul.f32 %v2379_v24, %v2741_v17 }
 0x3b9   : > { %v1479_v29 = vpack.c.bf16 %v1475_v26, %v1475_v26 }
 0x3bb   : > { %2264 = vmatmul.mubr.msk.bf16.vlgmr.msra.gmra.mrb[20].mxu1 %vm1434_vm10, %v1479_v29  ;;  %v1467_v31 = vpop.xlane.xlu0 %1466 }
 0x3bc   : > { %2268 = vmatpush3.bf16.msra.mxu1 %v1534_v30  ;;  %2382 = vrcp.f32 %v1467_v31  ;;  %2269 = vmatprep.mubr.msk.bf16.mxu1 %vm2413_vm0, %v2412_v1  ;;  %v2369_v31 = vld [vmem:[%s2876_s7 + $0x38] sm:$0xff]  }
 0x3bd   : > { %2273 = vmatprep.subr.bf16.mxu1 %v2412_v1 }
 0x3be   : > { %v2381_v32 = vpop.eup %2380 }
 0x3bf   : > { %v1476_v33 = vmul.f32 %v2381_v32, %v2745_v27  ;;  %v1626_v27 = vsel %vm1486_vm11, %v1217_v41, 0 }
 0x3c1   : > { %v1480_v35 = vpack.c.bf16 %v1476_v33, %v1476_v33 }
 0x3c3   : > { %v1470_v17 = vpop.xlane.xlu1 %1469  ;;  %2270 = vmatmul.mubr.msk.bf16.vlgmr.msra.gmra.mrb[24].mxu1 %vm1434_vm10, %v1480_v35 }
 0x3c4   : > { %2384 = vrcp.f32 %v1470_v17  ;;  %2274 = vmatpush3.bf16.msra.mxu1 %v1580_v36  ;;  %2275 = vmatprep.mubr.msk.bf16.mxu1 %vm2413_vm0, %v2412_v1 }
 0x3c5   : > { %2279 = vmatprep.subr.bf16.mxu1 %v2412_v1 }
 0x3c6   : > { %v2383_v38 = vpop.eup %2382 }
 0x3c7   : > { %v1477_v40 = vmul.f32 %v2383_v38, %v2749_v39  ;;  %v2362_v39 = vld [vmem:[%s2876_s7] sm:$0xff]  }
 0x3c8   : > { %2286 = vmatpush3.bf16.msra.mxu0 %v2362_v39 }
 0x3c9   : > { %v1481_v42 = vpack.c.bf16 %v1477_v40, %v1477_v40  ;;  %2287 = vmatprep.subr.bf16.mxu0 %v2412_v1 }
 0x3cb   : > { %2276 = vmatmul.mubr.msk.bf16.vlgmr.msra.gmra.mrb[28].mxu1 %vm1434_vm10, %v1481_v42 }
 0x3cc   : > { %2280 = vmatpush3.bf16.msra.mxu1 %v1626_v27  ;;  %2281 = vmatprep.mubr.msk.bf16.mxu1 %vm2413_vm0, %v2412_v1 }
 0x3cd   : > { %2288 = vmatpush3.bf16.msra.mxu0 %v2363_v48 }
 0x3ce   : > { %v2385_v44 = vpop.eup %2384  ;;  %2289 = vmatprep.subr.bf16.mxu0 %v2412_v1 }
 0x3cf   : > { %v1478_v46 = vmul.f32 %v2385_v44, %v2761_v57 }
 0x3d1   : > { %v1482_v47 = vpack.c.bf16 %v1478_v46, %v1478_v46  ;;  %2290 = vmatpush3.bf16.msra.mxu0 %v2364_v49 }
 0x3d2   : > { %2291 = vmatprep.subr.bf16.mxu0 %v2412_v1 }
 0x3d3   : > { %2282 = vmatmul.mubr.msk.bf16.vlgmr.msra.gmra.mrb[32].mxu1 %vm1434_vm10, %v1482_v47 }
 0x3d5   : > { %2292 = vmatpush3.bf16.msra.mxu0 %v2365_v45 }
 0x3d6   : > { %2293 = vmatprep.subr.bf16.mxu0 %v2412_v1 }
 0x3d9   : > { %2294 = vmatpush3.bf16.msra.mxu0 %v2366_v50 }
 0x3da   : > { %2295 = vmatprep.subr.bf16.mxu0 %v2412_v1 }
 0x3dd   : > { %2296 = vmatpush3.bf16.msra.mxu0 %v2367_v51 }
 0x3de   : > { %2297 = vmatprep.subr.bf16.mxu0 %v2412_v1 }
 0x3e1   : > { %2298 = vmatpush3.bf16.msra.mxu0 %v2368_v16 }
 0x3e2   : > { %2299 = vmatprep.subr.bf16.mxu0 %v2412_v1 }
 0x3e5   : > { %2300 = vmatpush3.bf16.msra.mxu0 %v2369_v31 }
 0x48e   : > { %v1524_v37 = vpop.f32.mrb[20].mxu1 }
 0x48f   : > { %v2265_v20 = vpop.f32.mrb[21].mxu1 }
 0x490   : > { %v1527_v52 = vpop.f32.mrb[22].mxu1 }
 0x491   : > { %v2266_v53 = vpop.f32.mrb[23].mxu1  ;;  %v1930_v52 = vunpack.c.l.bf16 %v2575_v18  ;;  %v1951_v18 = vsub.s32 5, %v2589_v22 }
 0x496   : > { %v1570_v54 = vpop.f32.mrb[24].mxu1 }
 0x497   : > { %v2271_v55 = vpop.f32.mrb[25].mxu1 }
 0x498   : > { %v1573_v57 = vpop.f32.mrb[26].mxu1 }
 0x499   : > { %v2272_v58 = vpop.f32.mrb[27].mxu1 }
 0x49e   : > { %v1616_v59 = vpop.f32.mrb[28].mxu1 }
 0x49f   : > { %v1668_v60 = vcombine.low %v1524_v37, %v1616_v59  ;;  %v1669_v61 = vcombine.high %v1524_v37, %v1616_v59  ;;  %v2277_v63 = vpop.f32.mrb[29].mxu1  ;;  %v1840_v37 = vsub.s32 3, %v2589_v22 }
 0x4a0   : > { %v1619_v43 = vpop.f32.mrb[30].mxu1 }
 0x4a1   : > { %v2278_v0 = vpop.f32.mrb[31].mxu1  ;;  %v1676_v7 = vrot.slane %v1668_v60, %v2648_v56  ;;  %v1683_v8 = vrot.slane %v1669_v61, %v2648_v56  ;;  %v1841_v20 = vrot.slane %v2599_v25, %v1840_v37 }
 0x4a6   : > { %v1662_v2 = vpop.f32.mrb[32].mxu1 }
 0x4a7   : > { %v1684_v3 = vcombine.low %v1570_v54, %v1662_v2  ;;  %v1685_v4 = vcombine.high %v1570_v54, %v1662_v2  ;;  %v2283_v5 = vpop.f32.mrb[33].mxu1 }
 0x4a8   : > { %v1665_v6 = vpop.f32.mrb[34].mxu1 }
 0x4a9   : > { %v1692_v9 = vrot.slane %v1684_v3, %v2648_v56  ;;  %v1699_v10 = vrot.slane %v1685_v4, %v2648_v56  ;;  %v2284_v11 = vpop.f32.mrb[35].mxu1  ;;  %v1946_v4 = vsub.s32 4, %v2589_v22 }
 0x4ab   : > { %v1700_v12 = vcombine.low %v1676_v7, %v1692_v9  ;;  %v1701_v13 = vcombine.high %v1676_v7, %v1692_v9  ;;  %v1716_v14 = vcombine.low %v1683_v8, %v1699_v10  ;;  %v1717_v15 = vcombine.high %v1683_v8, %v1699_v10 }
 0x4ac   : > { %v1947_v5 = vrot.slane %v2599_v25, %v1946_v4  ;;  %v1952_v7 = vrot.slane %v2599_v25, %v1951_v18 }
 0x4ad   : > { %v1708_v19 = vrot.slane %v1700_v12, %v2651_v62  ;;  %v1715_v21 = vrot.slane %v1701_v13, %v2651_v62  ;;  %v1724_v23 = vrot.slane %v1716_v14, %v2651_v62  ;;  %v1731_v24 = vrot.slane %v1717_v15, %v2651_v62 }
 0x4af   : > { %v1736_v26 = vcombine.low %v1708_v19, %v1715_v21  ;;  %v2113_v28 = vcombine.high %v1708_v19, %v1715_v21  ;;  %v1752_v29 = vcombine.low %v1724_v23, %v1731_v24  ;;  %v2114_v30 = vcombine.high %v1724_v23, %v1731_v24 }
 0x4b1   : > { %v1743_v32 = vrot.slane %v1736_v26, %v2648_v56  ;;  %v1751_v33 = vrot.slane %v2113_v28, %v2648_v56  ;;  %v1759_v34 = vrot.slane %v1752_v29, %v2648_v56  ;;  %v1767_v35 = vrot.slane %v2114_v30, %v2648_v56 }
 0x4b3   : > { %v1769_v17 = vcombine.high %v1743_v32, %v1751_v33  ;;  %v1785_v36 = vcombine.high %v1759_v34, %v1767_v35  ;;  %v1768_v1 = vcombine.low %v1743_v32, %v1751_v33  ;;  %v1784_v38 = vcombine.low %v1759_v34, %v1767_v35 }
 0x4b5   : > { %v1783_v40 = vrot.slane %v1769_v17, %v2651_v62  ;;  %v1799_v41 = vrot.slane %v1785_v36, %v2651_v62  ;;  %v1776_v42 = vrot.slane %v1768_v1, %v2651_v62  ;;  %v1792_v27 = vrot.slane %v1784_v38, %v2651_v62 }
 0x4b7   : > { %v1802_v44 = vcombine.low %v1783_v40, %v1799_v41  ;;  %v1801_v46 = vcombine.high %v1776_v42, %v1792_v27  ;;  %v1803_v47 = vcombine.high %v1783_v40, %v1799_v41  ;;  %v1800_v39 = vcombine.low %v1776_v42, %v1792_v27 }
 0x4b9   : > { %1809 = vrot.lane.b32.xlu1 %v1802_v44, %s2416_s19  ;;  %1805 = vrot.lane.b32.xlu0 %v1801_v46, %s2415_s16  ;;  %s417_s19 = scalar_lea.vmem %s2878_s9, %s2519_s25 }
 0x4bd   : > { %1813 = vrot.lane.b32.xlu1 %v1803_v47, %s2414_s15 }
 0x52b   : > { %v1810_v56 = vpop.permute.xlu1 %1809  ;;  %v1806_v48 = vpop.permute.xlu0 %1805 }
 0x52c   : > { %v1816_v49 = vsel %vm1218_vm3, %v1800_v39, %v1806_v48 }
 0x52d   : > { %v1818_v50 = vsel %vm1817_vm12, %v1816_v49, %v1810_v56 }
 0x52f   : > { %v1814_v45 = vpop.permute.xlu1 %1813 }
 0x530   : > { %v1820_v51 = vsel %vm1819_vm13, %v1818_v50, %v1814_v45 }
 0x531   : > { %v1821_v62 = vpack.c.bf16 %v1820_v51, %v1820_v51 }
 0x533   : > { %2302 = vmatmul.mubr.bf16.vlgmr.msra.gmra.mrb[8].mxu0 %v1821_v62 }
 0x606   : > { %v1924_v53 = vpop.f32.mrb[8].mxu0 }
 0x607   : > { %v1925_v54 = vadd.f32 %v1924_v53, %v1841_v20  ;;  %v2303_v55 = vpop.f32.mrb[9].mxu0 }
 0x608   : > { %v1927_v57 = vpop.f32.mrb[10].mxu0 }
 0x609   : > { %v2304_v58 = vpop.f32.mrb[11].mxu0  ;;  %v1931_v59 = vadd.f32 %v1930_v52, %v1925_v54 }
 0x60b   : > { %1932 = vadd.xlane.f32.xlu0 %v1931_v59 }
 0x698   : > { %v1933_v60 = vpop.xlane.xlu0 %1932 }
 0x699   : > { %v1935_v61 = vmul.f32 0.0078125, %v1933_v60 }
 0x69b   : > { %v1936_v63 = vsub.f32 %v1931_v59, %v1935_v61 }
 0x69d   : > { %v1937_v43 = vmul.f32 %v1936_v63, %v1936_v63 }
 0x69f   : > { %1938 = vadd.xlane.f32.xlu1 %v1937_v43 }
 0x72c   : > { %v1939_v0 = vpop.xlane.xlu1 %1938 }
 0x72d   : > { %v1940_v2 = vmul.f32 0.0078125, %v1939_v0 }
 0x72f   : > { %v1941_v3 = vadd.f32 1e-05, %v1940_v2 }
 0x731   : > { %2386 = vrsqrt.f32 %v1941_v3 }
 0x73b   : > { %v2387_v6 = vpop.eup %2386 }
 0x73c   : > { %v1943_v8 = vmul.f32 %v2387_v6, %v1936_v63 }
 0x73e   : > { %v1948_v9 = vmul.f32 %v1947_v5, %v1943_v8 }
 0x740   : > { %v1953_v10 = vadd.f32 %v1952_v7, %v1948_v9 }
 0x742   : > { %v1954_v11 = vpack.c.bf16 %v1953_v10, %v1953_v10 }
 0x744   : > { %1955 = vst [vmem:[%s417_s19] sm:$0xf] %v1954_v11 }
 0x745 PF: > { %s19_s11 = sadd.s32 1, %s2410_s11   ;;  %s2881_s30 = smov %s2406_s10 }
 0x746   : > { %p16_p5 = scmp.ge.s32.totalorder %s19_s11, 4   ;;  %s2882_s10 = smov %s2884_s12 }
 0x748   :  { %18 = sbr.rel (!%p16_p5) target bundleno = 2 (0x2), region = 99 }

// kernel: transformer_forward.7
= control target key start
LH: loop header
LB: loop body
LE: loop exit
PB: predicated region body
PF: predicated region fallthrough
CT: control target
= control target key end

     0   :  { %s3845_s25 = smov 0   ;;  %s3847_s26 = smov 0   ;;  %s4513_s0 = inlined_call_operand.vmem [shape: bf16[2,16,128], index: 0, kind: input, shape index: {}, may-alias: {0,1}]   ;;  %s4514_s1 = inlined_call_operand.vmem [shape: bf16[2,16,128], index: 1, kind: input, shape index: {}, may-alias: {0,1}]   ;;  %s4515_s2 = inlined_call_operand.vmem [shape: s32[2,16,1], index: 2, kind: input, shape index: {}]   ;;  %s4516_s3 = inlined_call_operand.vmem [shape: s32[2,1,16], index: 3, kind: input, shape index: {}]   ;;  %s4517_s4 = inlined_call_operand.vmem [shape: bf16[128,128], index: 4, kind: input, shape index: {}]   ;;  %s4518_s5 = inlined_call_operand.vmem [shape: bf16[128,128], index: 5, kind: input, shape index: {}]   ;;  %s4519_s6 = inlined_call_operand.vmem [shape: bf16[128,128], index: 6, kind: input, shape index: {}]   ;;  %s4520_s7 = inlined_call_operand.vmem [shape: bf16[128,128], index: 7, kind: input, shape index: {}]   ;;  %s4521_s8 = inlined_call_operand.vmem [shape: f32[6,128], index: 8, kind: input, shape index: {}]   ;;  %s4522_s9 = inlined_call_operand.vmem [shape: bf16[128,256], index: 9, kind: input, shape index: {}]   ;;  %s4523_s10 = inlined_call_operand.vmem [shape: f32[1,256], index: 10, kind: input, shape index: {}]   ;;  %s4524_s11 = inlined_call_operand.vmem [shape: bf16[256,128], index: 11, kind: input, shape index: {}]   ;;  %s4525_s12 = inlined_call_operand.vmem [shape: f32[3,128], index: 12, kind: input, shape index: {}]   ;;  %s4526_s13 = inlined_call_operand.vmem [shape: bf16[2,16,128], index: 13, kind: output, shape index: {}]  }
   0x1   :  { %s3849_s27 = smov 0  }
   0x2 LB: > { %s35_s28 = sadd.s32 1, %s3761_s26  ;;  %p3261_p0 = scmp.ge.s32.totalorder %s3765_s27, 1  ;;  %s3765_s27 = sphi %s3849_s27, %s23_s27   ;;  %s3761_s26 = sphi %s3847_s26, %s4532_s26   ;;  %s3757_s25 = sphi %s3845_s25, %s4531_s25  }
   0x3   : > { %p37_p1 = scmp.ge.s32.totalorder %s35_s28, 2  ;;  %p443_p2 = scmp.lt.s32.totalorder %s3765_s27, 3 }
   0x5   : > { %s4534_s28 = smov (%p37_p1, %s35_s28), 0  ;;  %p444_p3 = pnand %p3261_p0, %p443_p2 }
   0x6   : > { %v3626_v0 = vld [vmem:[%s4518_s5] sm:$0xff] (!%p444_p3)   ;;  %v3767_v1 = vmov (!%p444_p3), 0.0   ;;  %v3627_v2 = vld [vmem:[%s4518_s5 + $0x8] sm:$0xff] (!%p444_p3)   ;;  %vm3768_vm0 = vmmov (!%p444_p3), 0   ;;  %p513_p4 = scmp.lt.s32.totalorder (!%p444_p3), %s3757_s25, 1  ;;  %v3628_v3 = vld [vmem:[%s4518_s5 + $0x10] sm:$0xff] (!%p444_p3)   ;;  %v574_v19 = vlaneseq (!%p444_p3) }
   0x7   : > { %447 = sbr.rel (%p444_p3) target bundleno = 2637 (0xa4d), region = 72  ;;  %3449 = vmatprep.subr.bf16.mxu0 (!%p444_p3), %v3767_v1  ;;  %3469 = vmatprep.subr.bf16.mxu1 (!%p444_p3), %v3767_v1  ;;  %v3629_v4 = vld [vmem:[%s4518_s5 + $0x18] sm:$0xff] (!%p444_p3)   ;;  %v3630_v5 = vld [vmem:[%s4518_s5 + $0x20] sm:$0xff] (!%p444_p3)   ;;  %v3631_v6 = vld [vmem:[%s4518_s5 + $0x28] sm:$0xff] (!%p444_p3)   ;;  %s3769_s30 = smov (!%p444_p3), 64   ;;  %v3772_v48 = vmov (!%p444_p3), 0  }
   0x8   : > { %3450 = vmatpush3.bf16.msra.mxu0 (!%p444_p3), %v3626_v0  ;;  %3465 = vmatprep.mubr.msk.bf16.mxu0 (!%p444_p3), %vm3768_vm0, %v3767_v1  ;;  %v3632_v7 = vld [vmem:[%s4518_s5 + $0x30] sm:$0xff] (!%p444_p3)   ;;  %v3633_v8 = vld [vmem:[%s4518_s5 + $0x38] sm:$0xff] (!%p444_p3)   ;;  %v3635_v10 = vld [vmem:[%s4517_s4] sm:$0xff] (!%p444_p3)   ;;  %v3959_v21 = vshrl.u32 (!%p444_p3), %v574_v19, 7  ;;  %s3770_s14 = smov (!%p444_p3), 96   ;;  %s3771_s20 = smov (!%p444_p3), 32  }
   0x9   : > { %3451 = vmatprep.subr.bf16.mxu0 (!%p444_p3), %v3767_v1  ;;  %3485 = vmatprep.mubr.msk.bf16.mxu1 (!%p444_p3), %vm3768_vm0, %v3767_v1  ;;  %v3636_v11 = vld [vmem:[%s4517_s4 + $0x8] sm:$0xff] (!%p444_p3)   ;;  %v3637_v12 = vld [vmem:[%s4517_s4 + $0x10] sm:$0xff] (!%p444_p3)   ;;  %v3638_v13 = vld [vmem:[%s4517_s4 + $0x18] sm:$0xff] (!%p444_p3)   ;;  %v3773_v53 = vmov (!%p444_p3), 1983009808   ;;  %vm1078_vm3 = vcmask (!%p444_p3), 261120  }
   0xa   : > { %v3639_v14 = vld [vmem:[%s4517_s4 + $0x20] sm:$0xff] (!%p444_p3)   ;;  %v3640_v15 = vld [vmem:[%s4517_s4 + $0x28] sm:$0xff] (!%p444_p3)   ;;  %v3641_v16 = vld [vmem:[%s4517_s4 + $0x30] sm:$0xff] (!%p444_p3)   ;;  %v3966_v23 = vsub.s32 (!%p444_p3), 1, %v3959_v21  ;;  %v4020_v38 = vsub.s32 (!%p444_p3), 0, %v3959_v21  ;;  %3609 = vset.pattern.permute.xlu0 (!%p444_p3), %v3772_v48  ;;  %3610 = vset.pattern.permute.xlu1 (!%p444_p3), %v3772_v48  ;;  %v805_v54 = vunpack.c.l.s4 (!%p444_p3), %v3773_v53  ;;  %vm2031_vm9 = vcmask (!%p444_p3), 130048  }
   0xb   : > { %v3642_v17 = vld [vmem:[%s4517_s4 + $0x38] sm:$0xff] (!%p444_p3)   ;;  %v3644_v20 = vld [vmem:[%s4519_s6] sm:$0xff] (!%p444_p3)   ;;  %v3645_v22 = vld [vmem:[%s4519_s6 + $0x8] sm:$0xff] (!%p444_p3)   ;;  %v3774_v57 = vmov (!%p444_p3), 1934713408   ;;  %vm2598_vm11 = vcmask (!%p444_p3), 523264  }
   0xc   : > { %3452 = vmatpush3.bf16.msra.mxu0 (!%p444_p3), %v3627_v2  ;;  %3470 = vmatpush3.bf16.msra.mxu1 (!%p444_p3), %v3644_v20  ;;  %v3971_v24 = vld [vmem:[%s4521_s8] sm:$0x3f] (!%p444_p3)  ;;  %v3646_v26 = vld [vmem:[%s4519_s6 + $0x10] sm:$0xff] (!%p444_p3)   ;;  %v3647_v30 = vld [vmem:[%s4519_s6 + $0x18] sm:$0xff] (!%p444_p3)   ;;  %v837_v58 = vunpack.c.l.s4 (!%p444_p3), %v3774_v57  ;;  %v806_v59 = vunpack.c.0.s8 (!%p444_p3), %v805_v54  ;;  %vm2601_vm12 = vcmask (!%p444_p3), 785408  }
   0xd   : > { %3453 = vmatprep.subr.bf16.mxu0 (!%p444_p3), %v3767_v1  ;;  %3471 = vmatprep.subr.bf16.mxu1 (!%p444_p3), %v3767_v1  ;;  %v577_v25 = vrot.slane (!%p444_p3), %v3971_v24, %v3966_v23  ;;  %v3648_v34 = vld [vmem:[%s4519_s6 + $0x20] sm:$0xff] (!%p444_p3)   ;;  %v3649_v35 = vld [vmem:[%s4519_s6 + $0x28] sm:$0xff] (!%p444_p3)   ;;  %v3650_v36 = vld [vmem:[%s4519_s6 + $0x30] sm:$0xff] (!%p444_p3)   ;;  %v1404_v39 = vrot.slane (!%p444_p3), %v3971_v24, %v4020_v38 }
   0xe   : > { %s4536_s25 = smov (!%p513_p4, %s3757_s25), 1  ;;  %v3651_v37 = vld [vmem:[%s4519_s6 + $0x38] sm:$0xff]   ;;  %v838_v62 = vunpack.c.0.s8 %v837_v58  ;;  %v4051_v2 = vsub.s32 %v806_v59, %v3959_v21 }
   0xf   : > { %s3882_s18 = sshll.u32 %s4536_s25, 3  ;;  %s3366_s15 = sshll.u32 %s4536_s25, 4 }
  0x10   : > { %s526_s21 = scalar_lea.vmem %s4514_s1, %s3882_s18  ;;  %3454 = vmatpush3.bf16.msra.mxu0 %v3628_v3  ;;  %3472 = vmatpush3.bf16.msra.mxu1 %v3645_v22  ;;  %s535_s19 = scalar_lea.vmem %s4515_s2, %s3366_s15 }
  0x11   : > { %3455 = vmatprep.subr.bf16.mxu0 %v3767_v1  ;;  %v3909_v9 = vld [vmem:[%s526_s21] sm:$0xff]   ;;  %s3946_s21 = scalar_lea.vmem %s4513_s0, %s3882_s18  ;;  %3473 = vmatprep.subr.bf16.mxu1 %v3767_v1  ;;  %v1996_v50 = vld [vmem:[%s535_s19 + $0x8] sm:$0xff]  ;;  %s539_s24 = scalar_lea.vmem %s4516_s3, %s4536_s25 }
  0x12   : > { %v1383_v18 = vld [vmem:[%s3946_s21] sm:$0xff]   ;;  %vm1998_vm2 = vcmp.ne.s32.totalorder %v1996_v50, 0  ;;  %s548_s29 = scalar_lea.vmem %s4526_s13, %s3882_s18 }
  0x13   : > { %v1995_v49 = vld [vmem:[%s535_s19] sm:$0xff]  ;;  %v2002_v52 = vsel %vm1998_vm2, 1, %v3772_v48 }
  0x14   : > { %3456 = vmatpush3.bf16.msra.mxu0 %v3629_v4  ;;  %3474 = vmatpush3.bf16.msra.mxu1 %v3646_v26  ;;  %vm1997_vm1 = vcmp.ne.s32.totalorder %v1995_v49, 0 }
  0x15   : > { %3457 = vmatprep.subr.bf16.mxu0 %v3767_v1  ;;  %3475 = vmatprep.subr.bf16.mxu1 %v3767_v1  ;;  %v2001_v51 = vsel %vm1997_vm1, 1, %v3772_v48 }
  0x18   : > { %3458 = vmatpush3.bf16.msra.mxu0 %v3630_v5  ;;  %3476 = vmatpush3.bf16.msra.mxu1 %v3647_v30 }
  0x19   : > { %3459 = vmatprep.subr.bf16.mxu0 %v3767_v1  ;;  %3477 = vmatprep.subr.bf16.mxu1 %v3767_v1 }
  0x1c   : > { %3460 = vmatpush3.bf16.msra.mxu0 %v3631_v6  ;;  %3478 = vmatpush3.bf16.msra.mxu1 %v3648_v34 }
  0x1d   : > { %3461 = vmatprep.subr.bf16.mxu0 %v3767_v1  ;;  %3479 = vmatprep.subr.bf16.mxu1 %v3767_v1 }
  0x20   : > { %3462 = vmatpush3.bf16.msra.mxu0 %v3632_v7  ;;  %3480 = vmatpush3.bf16.msra.mxu1 %v3649_v35 }
  0x21   : > { %3463 = vmatprep.subr.bf16.mxu0 %v3767_v1  ;;  %3481 = vmatprep.subr.bf16.mxu1 %v3767_v1 }
  0x24   : > { %3464 = vmatpush3.bf16.msra.mxu0 %v3633_v8  ;;  %3482 = vmatpush3.bf16.msra.mxu1 %v3650_v36 }
  0x25   : > { %3489 = vmatprep.subr.bf16.mxu0 %v3767_v1  ;;  %3483 = vmatprep.subr.bf16.mxu1 %v3767_v1 }
  0x27   : > { %3466 = vmatmul.mubr.bf16.vlgmr.msra.gmra.mrb[0].mxu0 %v3909_v9 }
  0x28   : > { %3490 = vmatpush3.bf16.msra.mxu0 %v3635_v10  ;;  %3505 = vmatprep.mubr.msk.bf16.mxu0 %vm3768_vm0, %v3767_v1 }
  0x29   : > { %3491 = vmatprep.subr.bf16.mxu0 %v3767_v1  ;;  %3484 = vmatpush3.bf16.msra.mxu1 %v3651_v37 }
  0x2a   : > { %3509 = vmatprep.subr.bf16.mxu1 %v3767_v1 }
  0x2c   : > { %3492 = vmatpush3.bf16.msra.mxu0 %v3636_v11  ;;  %3486 = vmatmul.mubr.bf16.vlgmr.msra.gmra.mrb[0].mxu1 %v3909_v9  ;;  %v4056_v11 = vsub.s32 %v838_v62, %v3959_v21 }
  0x2d   : > { %3493 = vmatprep.subr.bf16.mxu0 %v3767_v1  ;;  %3511 = vmatprep.mubr.msk.bf16.mxu1 %vm3768_vm0, %v3767_v1 }
  0x30   : > { %3494 = vmatpush3.bf16.msra.mxu0 %v3637_v12 }
  0x31   : > { %3495 = vmatprep.subr.bf16.mxu0 %v3767_v1 }
  0x34   : > { %3496 = vmatpush3.bf16.msra.mxu0 %v3638_v13 }
  0x35   : > { %3497 = vmatprep.subr.bf16.mxu0 %v3767_v1 }
  0x38   : > { %3498 = vmatpush3.bf16.msra.mxu0 %v3639_v14 }
  0x39   : > { %3499 = vmatprep.subr.bf16.mxu0 %v3767_v1 }
  0x3c   : > { %3500 = vmatpush3.bf16.msra.mxu0 %v3640_v15 }
  0x3d   : > { %3501 = vmatprep.subr.bf16.mxu0 %v3767_v1 }
  0x40   : > { %3502 = vmatpush3.bf16.msra.mxu0 %v3641_v16 }
  0x41   : > { %3503 = vmatprep.subr.bf16.mxu0 %v3767_v1 }
  0x44   : > { %3504 = vmatpush3.bf16.msra.mxu0 %v3642_v17 }
  0x45   : > { %3557 = vmatprep.subr.bf16.mxu0 %v3767_v1 }
  0x47   : > { %3506 = vmatmul.mubr.bf16.vlgmr.msra.gmra.mrb[4].mxu0 %v1383_v18 }
  0x48   : > { %3573 = vmatprep.mubr.msk.bf16.mxu0 %vm3768_vm0, %v3767_v1 }
  0xfa   : > { %v666_v27 = vpop.f32.mrb[0].mxu0 }
  0xfb   : > { %v3980_v28 = vadd.f32 %v666_v27, %v577_v25  ;;  %v3467_v29 = vpop.f32.mrb[1].mxu0 }
  0xfc   : > { %v669_v31 = vpop.f32.mrb[2].mxu0 }
  0xfd   : > { %790 = vrot.lane.b32.xlu1 %v3980_v28, %s3769_s30  ;;  %784 = vrot.lane.b32.xlu0 %v3980_v28, %s3770_s14  ;;  %v3468_v32 = vpop.f32.mrb[3].mxu0  ;;  %v3989_v33 = vadd.f32 %v669_v31, %v577_v25 }
 0x101   : > { %792 = vrot.lane.b32.xlu1 %v3989_v33, %s3769_s30  ;;  %786 = vrot.lane.b32.xlu0 %v3989_v33, %s3770_s14 }
 0x105   : > { %798 = vrot.lane.b32.xlu1 %v3989_v33, %s3771_s20  ;;  %796 = vrot.lane.b32.xlu0 %v3980_v28, %s3771_s20 }
 0x11a   : > { %v1493_v40 = vpop.f32.mrb[4].mxu0 }
 0x11b   : > { %v1494_v41 = vadd.f32 %v1493_v40, %v1404_v39  ;;  %v3507_v42 = vpop.f32.mrb[5].mxu0 }
 0x11c   : > { %v1496_v43 = vpop.f32.mrb[6].mxu0 }
 0x11d   : > { %v4024_v44 = vmul.f32 0.17677669, %v1494_v41  ;;  %v1497_v45 = vadd.f32 %v1496_v43, %v1404_v39  ;;  %v3508_v46 = vpop.f32.mrb[7].mxu0 }
 0x11f   : > { %v4026_v47 = vmul.f32 0.17677669, %v1497_v45  ;;  %1504 = vrot.lane.b32.xlu0 %v4024_v44, %s3770_s14 }
 0x121   : > { %1506 = vrot.lane.b32.xlu1 %v4026_v47, %s3770_s14 }
 0x123   : > { %1510 = vrot.lane.b32.xlu0 %v4024_v44, %s3769_s30 }
 0x125   : > { %1512 = vrot.lane.b32.xlu1 %v4026_v47, %s3769_s30 }
 0x127   : > { %1516 = vrot.lane.b32.xlu0 %v4024_v44, %s3771_s20 }
 0x129   : > { %1518 = vrot.lane.b32.xlu1 %v4026_v47, %s3771_s20 }
 0x12b   : > { %2004 = vperm.xlu0 %3609, %v2001_v51  }
 0x12d   : > { %2007 = vperm.xlu1 %3610, %v2002_v52  }
 0x16f   : > { %v791_v55 = vpop.permute.xlu1 %790  ;;  %v785_v56 = vpop.permute.xlu0 %784 }
 0x170   : > { %v802_v3 = vcombine.low %v3980_v28, %v791_v55  ;;  %v803_v4 = vcombine.high %v3980_v28, %v791_v55 }
 0x172   : > { %v810_v18 = vrot.slane %v802_v3, %v4051_v2  ;;  %v817_v19 = vrot.slane %v803_v4, %v4051_v2 }
 0x173   : > { %v793_v60 = vpop.permute.xlu1 %792  ;;  %v787_v61 = vpop.permute.xlu0 %786 }
 0x174   : > { %v870_v63 = vcombine.low %v3989_v33, %v793_v60  ;;  %v871_v0 = vcombine.high %v3989_v33, %v793_v60 }
 0x176   : > { %v878_v12 = vrot.slane %v870_v63, %v4051_v2  ;;  %v885_v13 = vrot.slane %v871_v0, %v4051_v2 }
 0x177   : > { %v799_v5 = vpop.permute.xlu1 %798  ;;  %v797_v6 = vpop.permute.xlu0 %796 }
 0x178   : > { %v886_v7 = vcombine.low %v787_v61, %v799_v5  ;;  %v887_v8 = vcombine.high %v787_v61, %v799_v5  ;;  %v818_v9 = vcombine.low %v785_v56, %v797_v6  ;;  %v819_v10 = vcombine.high %v785_v56, %v797_v6 }
 0x17a   : > { %v894_v14 = vrot.slane %v886_v7, %v4051_v2  ;;  %v901_v15 = vrot.slane %v887_v8, %v4051_v2  ;;  %v826_v16 = vrot.slane %v818_v9, %v4051_v2  ;;  %v833_v17 = vrot.slane %v819_v10, %v4051_v2 }
 0x17c   : > { %v902_v20 = vcombine.low %v878_v12, %v894_v14  ;;  %v903_v22 = vcombine.high %v878_v12, %v894_v14  ;;  %v918_v25 = vcombine.low %v885_v13, %v901_v15  ;;  %v919_v26 = vcombine.high %v885_v13, %v901_v15 }
 0x17d   : > { %v834_v27 = vcombine.low %v810_v18, %v826_v16  ;;  %v835_v28 = vcombine.high %v810_v18, %v826_v16  ;;  %v850_v29 = vcombine.low %v817_v19, %v833_v17  ;;  %v851_v30 = vcombine.high %v817_v19, %v833_v17 }
 0x17e   : > { %v910_v31 = vrot.slane %v902_v20, %v4056_v11  ;;  %v917_v32 = vrot.slane %v903_v22, %v4056_v11  ;;  %v926_v33 = vrot.slane %v918_v25, %v4056_v11  ;;  %v933_v34 = vrot.slane %v919_v26, %v4056_v11 }
 0x17f   : > { %v842_v35 = vrot.slane %v834_v27, %v4056_v11  ;;  %v849_v36 = vrot.slane %v835_v28, %v4056_v11  ;;  %v858_v37 = vrot.slane %v850_v29, %v4056_v11  ;;  %v865_v39 = vrot.slane %v851_v30, %v4056_v11 }
 0x180   : > { %v1006_v40 = vcombine.low %v910_v31, %v917_v32  ;;  %v3289_v41 = vcombine.high %v910_v31, %v917_v32  ;;  %v1022_v42 = vcombine.low %v926_v33, %v933_v34  ;;  %v3290_v43 = vcombine.high %v926_v33, %v933_v34 }
 0x181   : > { %v938_v45 = vcombine.low %v842_v35, %v849_v36  ;;  %v3287_v46 = vcombine.high %v842_v35, %v849_v36  ;;  %v954_v49 = vcombine.low %v858_v37, %v865_v39  ;;  %v3288_v50 = vcombine.high %v858_v37, %v865_v39 }
 0x182   : > { %v1013_v51 = vrot.slane %v1006_v40, %v4051_v2  ;;  %v1021_v52 = vrot.slane %v3289_v41, %v4051_v2  ;;  %v1029_v53 = vrot.slane %v1022_v42, %v4051_v2  ;;  %v1037_v54 = vrot.slane %v3290_v43, %v4051_v2 }
 0x183   : > { %v945_v55 = vrot.slane %v938_v45, %v4051_v2  ;;  %v953_v56 = vrot.slane %v3287_v46, %v4051_v2  ;;  %v961_v57 = vrot.slane %v954_v49, %v4051_v2  ;;  %v969_v58 = vrot.slane %v3288_v50, %v4051_v2 }
 0x184   : > { %v1038_v59 = vcombine.low %v1013_v51, %v1021_v52  ;;  %v1039_v60 = vcombine.high %v1013_v51, %v1021_v52  ;;  %v1054_v61 = vcombine.low %v1029_v53, %v1037_v54  ;;  %v1055_v62 = vcombine.high %v1029_v53, %v1037_v54 }
 0x185   : > { %v970_v63 = vcombine.low %v945_v55, %v953_v56  ;;  %v971_v0 = vcombine.high %v945_v55, %v953_v56  ;;  %v986_v3 = vcombine.low %v961_v57, %v969_v58  ;;  %v987_v4 = vcombine.high %v961_v57, %v969_v58 }
 0x186   : > { %v1046_v5 = vrot.slane %v1038_v59, %v4056_v11  ;;  %v1053_v6 = vrot.slane %v1039_v60, %v4056_v11  ;;  %v1062_v7 = vrot.slane %v1054_v61, %v4056_v11  ;;  %v1069_v8 = vrot.slane %v1055_v62, %v4056_v11 }
 0x187   : > { %v978_v9 = vrot.slane %v970_v63, %v4056_v11  ;;  %v985_v10 = vrot.slane %v971_v0, %v4056_v11  ;;  %v994_v12 = vrot.slane %v986_v3, %v4056_v11  ;;  %v1001_v13 = vrot.slane %v987_v4, %v4056_v11 }
 0x188   : > { %v1070_v14 = vcombine.low %v1046_v5, %v1062_v7  ;;  %v1071_v15 = vcombine.high %v1046_v5, %v1062_v7  ;;  %v1072_v16 = vcombine.low %v1053_v6, %v1069_v8  ;;  %v1073_v17 = vcombine.high %v1053_v6, %v1069_v8 }
 0x189   : > { %v1002_v18 = vcombine.low %v978_v9, %v994_v12  ;;  %v1003_v19 = vcombine.high %v978_v9, %v994_v12  ;;  %v1004_v20 = vcombine.low %v985_v10, %v1001_v13  ;;  %v1005_v22 = vcombine.high %v985_v10, %v1001_v13 }
 0x18b   : > { %v1074_v25 = vpack.c.bf16 %v1070_v14, %v1002_v18  ;;  %v1075_v26 = vpack.c.bf16 %v1071_v15, %v1003_v19  ;;  %v1076_v27 = vpack.c.bf16 %v1072_v16, %v1004_v20  ;;  %v1077_v28 = vpack.c.bf16 %v1073_v17, %v1005_v22 }
 0x18d   : > { %1079 = vst.msk [vmem:[#allocation2] sm:$0xff] %vm1078_vm3, %v1074_v25  ;;  %1080 = vst.msk [vmem:[#allocation2 + $0x8] sm:$0xff] %vm1078_vm3, %v1075_v26 }
 0x18e   : > { %1081 = vst.msk [vmem:[#allocation2 + $0x10] sm:$0xff] %vm1078_vm3, %v1076_v27  ;;  %1082 = vst.msk [vmem:[#allocation2 + $0x18] sm:$0xff] %vm1078_vm3, %v1077_v28 }
 0x191   : > { %v1505_v29 = vpop.permute.xlu0 %1504 }
 0x193   : > { %v1507_v30 = vpop.permute.xlu1 %1506 }
 0x194   : > { %v1798_v31 = vld [vmem:[#allocation2] sm:$0xff] }
 0x195   : > { %v1811_v32 = vsel %vm1078_vm3, %v1798_v31, 0  ;;  %v1511_v33 = vpop.permute.xlu0 %1510 }
 0x196   : > { %3510 = vmatpush3.bf16.xpose.msra.mxu1 %v1811_v32  ;;  %v1522_v34 = vcombine.low %v4024_v44, %v1511_v33  ;;  %v1523_v35 = vcombine.high %v4024_v44, %v1511_v33 }
 0x197   : > { %v1513_v36 = vpop.permute.xlu1 %1512  ;;  %3515 = vmatprep.subr.bf16.mxu1 %v3767_v1 }
 0x198   : > { %v1530_v41 = vrot.slane %v1522_v34, %v4051_v2  ;;  %v1537_v42 = vrot.slane %v1523_v35, %v4051_v2  ;;  %v1590_v43 = vcombine.low %v4026_v47, %v1513_v36  ;;  %v1591_v45 = vcombine.high %v4026_v47, %v1513_v36 }
 0x199   : > { %v1517_v37 = vpop.permute.xlu0 %1516 }
 0x19a   : > { %v1538_v39 = vcombine.low %v1505_v29, %v1517_v37  ;;  %v1539_v40 = vcombine.high %v1505_v29, %v1517_v37  ;;  %v1598_v56 = vrot.slane %v1590_v43, %v4051_v2  ;;  %v1605_v57 = vrot.slane %v1591_v45, %v4051_v2 }
 0x19b   : > { %v1519_v46 = vpop.permute.xlu1 %1518 }
 0x19c   : > { %v1546_v49 = vrot.slane %v1538_v39, %v4051_v2  ;;  %v1553_v50 = vrot.slane %v1539_v40, %v4051_v2  ;;  %v1606_v44 = vcombine.low %v1507_v30, %v1519_v46  ;;  %v1607_v51 = vcombine.high %v1507_v30, %v1519_v46  ;;  %v1799_v40 = vld [vmem:[#allocation2 + $0x8] sm:$0xff] }
 0x19e   : > { %v1554_v52 = vcombine.low %v1530_v41, %v1546_v49  ;;  %v1555_v53 = vcombine.high %v1530_v41, %v1546_v49  ;;  %v1570_v54 = vcombine.low %v1537_v42, %v1553_v50  ;;  %v1571_v55 = vcombine.high %v1537_v42, %v1553_v50 }
 0x19f   : > { %v1614_v58 = vrot.slane %v1606_v44, %v4051_v2  ;;  %v1621_v59 = vrot.slane %v1607_v51, %v4051_v2  ;;  %v1858_v42 = vsel %vm1078_vm3, %v1799_v40, 0  ;;  %v1800_v51 = vld [vmem:[#allocation2 + $0x10] sm:$0xff] }
 0x1a0   : > { %v1562_v47 = vrot.slane %v1554_v52, %v4056_v11  ;;  %v1569_v60 = vrot.slane %v1555_v53, %v4056_v11  ;;  %v1578_v61 = vrot.slane %v1570_v54, %v4056_v11  ;;  %v1585_v62 = vrot.slane %v1571_v55, %v4056_v11 }
 0x1a1   : > { %v1622_v63 = vcombine.low %v1598_v56, %v1614_v58  ;;  %v1623_v0 = vcombine.high %v1598_v56, %v1614_v58  ;;  %v1638_v3 = vcombine.low %v1605_v57, %v1621_v59  ;;  %v1639_v4 = vcombine.high %v1605_v57, %v1621_v59 }
 0x1a2   : > { %v1658_v5 = vcombine.low %v1562_v47, %v1569_v60  ;;  %v3304_v6 = vcombine.high %v1562_v47, %v1569_v60  ;;  %v1674_v7 = vcombine.low %v1578_v61, %v1585_v62  ;;  %v3305_v8 = vcombine.high %v1578_v61, %v1585_v62  ;;  %v1801_v47 = vld [vmem:[#allocation2 + $0x18] sm:$0xff] }
 0x1a3   : > { %v1630_v9 = vrot.slane %v1622_v63, %v4056_v11  ;;  %v1637_v10 = vrot.slane %v1623_v0, %v4056_v11  ;;  %v1646_v12 = vrot.slane %v1638_v3, %v4056_v11  ;;  %v1653_v13 = vrot.slane %v1639_v4, %v4056_v11  ;;  %v775_v3 = vpop.f32.mrb[0].mxu1 }
 0x1a4   : > { %v1665_v14 = vrot.slane %v1658_v5, %v4051_v2  ;;  %v1673_v15 = vrot.slane %v3304_v6, %v4051_v2  ;;  %v1681_v16 = vrot.slane %v1674_v7, %v4051_v2  ;;  %v1689_v17 = vrot.slane %v3305_v8, %v4051_v2  ;;  %v3487_v4 = vpop.f32.mrb[1].mxu1  ;;  %v1999_v7 = vld [vmem:[%s539_s24] sm:$0x1] }
 0x1a5   : > { %v1726_v18 = vcombine.low %v1630_v9, %v1637_v10  ;;  %v3306_v19 = vcombine.high %v1630_v9, %v1637_v10  ;;  %v1742_v20 = vcombine.low %v1646_v12, %v1653_v13  ;;  %v3307_v22 = vcombine.high %v1646_v12, %v1653_v13  ;;  %v778_v5 = vpop.f32.mrb[2].mxu1 }
 0x1a6   : > { %v1690_v25 = vcombine.low %v1665_v14, %v1673_v15  ;;  %v1706_v26 = vcombine.low %v1681_v16, %v1689_v17  ;;  %v1691_v49 = vcombine.high %v1665_v14, %v1673_v15  ;;  %v1707_v50 = vcombine.high %v1681_v16, %v1689_v17  ;;  %v3488_v6 = vpop.f32.mrb[3].mxu1 }
 0x1a7   : > { %v1733_v27 = vrot.slane %v1726_v18, %v4051_v2  ;;  %v1741_v28 = vrot.slane %v3306_v19, %v4051_v2  ;;  %v1749_v29 = vrot.slane %v1742_v20, %v4051_v2  ;;  %v1757_v30 = vrot.slane %v3307_v22, %v4051_v2 }
 0x1a8   : > { %v1698_v31 = vrot.slane %v1690_v25, %v4056_v11  ;;  %v1714_v32 = vrot.slane %v1706_v26, %v4056_v11  ;;  %v1705_v55 = vrot.slane %v1691_v49, %v4056_v11  ;;  %v1721_v56 = vrot.slane %v1707_v50, %v4056_v11 }
 0x1a9   : > { %v1758_v33 = vcombine.low %v1733_v27, %v1741_v28  ;;  %v1774_v34 = vcombine.low %v1749_v29, %v1757_v30  ;;  %v1759_v43 = vcombine.high %v1733_v27, %v1741_v28  ;;  %v1775_v45 = vcombine.high %v1749_v29, %v1757_v30 }
 0x1aa   : > { %v1722_v37 = vcombine.low %v1698_v31, %v1714_v32  ;;  %v1723_v44 = vcombine.high %v1698_v31, %v1714_v32  ;;  %v1905_v57 = vsel %vm1078_vm3, %v1800_v51, 0  ;;  %v1724_v59 = vcombine.low %v1705_v55, %v1721_v56  ;;  %v2005_v10 = vpop.permute.xlu0 %2004 }
 0x1ab   : > { %v1766_v35 = vrot.slane %v1758_v33, %v4056_v11  ;;  %v1782_v36 = vrot.slane %v1774_v34, %v4056_v11  ;;  %v1773_v52 = vrot.slane %v1759_v43, %v4056_v11  ;;  %v1789_v53 = vrot.slane %v1775_v45, %v4056_v11 }
 0x1ac   : > { %v1952_v61 = vsel %vm1078_vm3, %v1801_v47, 0  ;;  %v1725_v63 = vcombine.high %v1705_v55, %v1721_v56  ;;  %vm2000_vm4 = vcmp.ne.s32.totalorder %v1999_v7, 0  ;;  %v2008_v12 = vpop.permute.xlu1 %2007  ;;  %vm2009_vm6 = vcmp.eq.s32.totalorder %v2005_v10, 1 }
 0x1ad   : > { %v1790_v39 = vcombine.low %v1766_v35, %v1782_v36  ;;  %v1791_v46 = vcombine.high %v1766_v35, %v1782_v36  ;;  %v1792_v58 = vcombine.low %v1773_v52, %v1789_v53  ;;  %v1793_v62 = vcombine.high %v1773_v52, %v1789_v53 }
 0x1ae   : > { %v2011_v8 = vsel %vm2000_vm4, 1, %v3772_v48  ;;  %vm2010_vm7 = vcmp.eq.s32.totalorder %v2008_v12, 1  ;;  %v691_v53 = vsub.s32 2, %v3959_v21 }
 0x1af   : > { %v1794_v41 = vpack.c.bf16 %v1790_v39, %v1722_v37  ;;  %v1795_v54 = vpack.c.bf16 %v1791_v46, %v1723_v44  ;;  %v1796_v60 = vpack.c.bf16 %v1792_v58, %v1724_v59  ;;  %v1797_v0 = vpack.c.bf16 %v1793_v62, %v1725_v63 }
 0x1b0   : > { %v2015_v9 = vrot.slane %v2011_v8, %v4020_v38 }
 0x1b1   : > { %3512 = vmatmul.mubr.msk.bf16.vlgmr.msra.gmra.mrb[4].mxu1 %vm1078_vm3, %v1794_v41 }
 0x1b2   : > { %3516 = vmatpush3.bf16.xpose.msra.mxu1 %v1858_v42  ;;  %3517 = vmatprep.mubr.msk.bf16.mxu1 %vm3768_vm0, %v3767_v1  ;;  %vm2016_vm5 = vcmp.eq.s32.totalorder %v2015_v9, 1 }
 0x1b3   : > { %3521 = vmatprep.subr.bf16.mxu1 %v3767_v1  ;;  %vm4156_vm8 = vmor %vm2009_vm6, %vm2016_vm5 }
 0x1b4   : > { %vm4160_vm10 = vmor %vm2010_vm7, %vm2016_vm5 }
 0x1b9   : > { %3518 = vmatmul.mubr.msk.bf16.vlgmr.msra.gmra.mrb[8].mxu1 %vm1078_vm3, %v1795_v54  ;;  %v692_v54 = vrot.slane %v3971_v24, %v691_v53 }
 0x1ba   : > { %3522 = vmatpush3.bf16.xpose.msra.mxu1 %v1905_v57  ;;  %3523 = vmatprep.mubr.msk.bf16.mxu1 %vm3768_vm0, %v3767_v1 }
 0x1bb   : > { %3527 = vmatprep.subr.bf16.mxu1 %v3767_v1  ;;  %v4192_v55 = vadd.f32 %v778_v5, %v692_v54  ;;  %v4196_v56 = vadd.f32 %v775_v3, %v692_v54 }
 0x1c1   : > { %3524 = vmatmul.mubr.msk.bf16.vlgmr.msra.gmra.mrb[12].mxu1 %vm1078_vm3, %v1796_v60 }
 0x1c2   : > { %3528 = vmatpush3.bf16.xpose.msra.mxu1 %v1952_v61  ;;  %3529 = vmatprep.mubr.msk.bf16.mxu1 %vm3768_vm0, %v3767_v1 }
 0x1c3   : > { %3533 = vmatprep.subr.bf16.mxu1 %v3767_v1 }
 0x1c9   : > { %3530 = vmatmul.mubr.msk.bf16.vlgmr.msra.gmra.mrb[16].mxu1 %vm1078_vm3, %v1797_v0 }
 0x1ca   : > { %3535 = vmatprep.mubr.msk.bf16.mxu1 %vm3768_vm0, %v3767_v1 }
 0x284   : > { %v1847_v14 = vpop.f32.mrb[4].mxu1 }
 0x285   : > { %v2023_v16 = vsel %vm4156_vm8, -1e+12, %v1847_v14  ;;  %v3513_v17 = vpop.f32.mrb[5].mxu1 }
 0x286   : > { %v1850_v18 = vpop.f32.mrb[6].mxu1  ;;  %v2032_v19 = vsel %vm2031_vm9, %v2023_v16, -inf }
 0x287   : > { %v2024_v20 = vsel %vm4160_vm10, -1e+12, %v1850_v18  ;;  %2033 = vmax.xlane.f32.xlu1 %v2032_v19  ;;  %v3514_v22 = vpop.f32.mrb[7].mxu1 }
 0x288   : > { %v2035_v25 = vsel %vm2031_vm9, %v2024_v20, -inf }
 0x289   : > { %2036 = vmax.xlane.f32.xlu0 %v2035_v25 }
 0x28c   : > { %v1894_v26 = vpop.f32.mrb[8].mxu1 }
 0x28d   : > { %v2025_v27 = vsel %vm4156_vm8, -1e+12, %v1894_v26  ;;  %v3519_v28 = vpop.f32.mrb[9].mxu1 }
 0x28e   : > { %v1897_v29 = vpop.f32.mrb[10].mxu1  ;;  %v2038_v30 = vsel %vm2031_vm9, %v2025_v27, -inf }
 0x28f   : > { %v2026_v31 = vsel %vm4160_vm10, -1e+12, %v1897_v29  ;;  %v3520_v32 = vpop.f32.mrb[11].mxu1  ;;  %2039 = vmax.xlane.f32.xlu0 %v2038_v30 }
 0x290   : > { %v2041_v33 = vsel %vm2031_vm9, %v2026_v31, -inf }
 0x291   : > { %2042 = vmax.xlane.f32.xlu1 %v2041_v33 }
 0x294   : > { %v1941_v34 = vpop.f32.mrb[12].mxu1 }
 0x295   : > { %v2027_v35 = vsel %vm4156_vm8, -1e+12, %v1941_v34  ;;  %v3525_v36 = vpop.f32.mrb[13].mxu1 }
 0x296   : > { %v1944_v37 = vpop.f32.mrb[14].mxu1  ;;  %v2044_v39 = vsel %vm2031_vm9, %v2027_v35, -inf }
 0x297   : > { %v2028_v40 = vsel %vm4160_vm10, -1e+12, %v1944_v37  ;;  %v3526_v41 = vpop.f32.mrb[15].mxu1  ;;  %2045 = vmax.xlane.f32.xlu0 %v2044_v39 }
 0x298   : > { %v2047_v42 = vsel %vm2031_vm9, %v2028_v40, -inf }
 0x299   : > { %2048 = vmax.xlane.f32.xlu1 %v2047_v42 }
 0x29c   : > { %v1988_v43 = vpop.f32.mrb[16].mxu1 }
 0x29d   : > { %v2029_v45 = vsel %vm4156_vm8, -1e+12, %v1988_v43  ;;  %v3531_v46 = vpop.f32.mrb[17].mxu1 }
 0x29e   : > { %v1991_v49 = vpop.f32.mrb[18].mxu1  ;;  %v2050_v50 = vsel %vm2031_vm9, %v2029_v45, -inf }
 0x29f   : > { %v2030_v44 = vsel %vm4160_vm10, -1e+12, %v1991_v49  ;;  %v3532_v51 = vpop.f32.mrb[19].mxu1  ;;  %2051 = vmax.xlane.f32.xlu0 %v2050_v50 }
 0x2a0   : > { %v2053_v52 = vsel %vm2031_vm9, %v2030_v44, -inf }
 0x2a1   : > { %2054 = vmax.xlane.f32.xlu1 %v2053_v52 }
 0x2b2   : > { %1087 = vrot.lane.b32.xlu1 %v4192_v55, %s3770_s14 }
 0x2b5   : > { %1085 = vrot.lane.b32.xlu0 %v4196_v56, %s3770_s14 }
 0x2b6   : > { %1091 = vrot.lane.b32.xlu1 %v4196_v56, %s3769_s30 }
 0x2b9   : > { %1093 = vrot.lane.b32.xlu0 %v4192_v55, %s3769_s30 }
 0x2ba   : > { %1097 = vrot.lane.b32.xlu1 %v4196_v56, %s3771_s20 }
 0x2bd   : > { %1099 = vrot.lane.b32.xlu0 %v4192_v55, %s3771_s20 }
 0x314   : > { %v2034_v24 = vpop.xlane.xlu1 %2033 }
 0x315   : > { %v2056_v57 = vsub.f32 %v2023_v16, %v2034_v24 }
 0x316   : > { %v2037_v58 = vpop.xlane.xlu0 %2036 }
 0x317   : > { %v2064_v59 = vmul.f32 1.442695, %v2056_v57  ;;  %v2057_v47 = vsub.f32 %v2024_v20, %v2037_v58 }
 0x319   : > { %3701 = vpow2.f32 %v2064_v59  ;;  %v2066_v60 = vmul.f32 1.442695, %v2057_v47 }
 0x31b   : > { %3703 = vpow2.f32 %v2066_v60 }
 0x31c   : > { %v2040_v61 = vpop.xlane.xlu0 %2039 }
 0x31d   : > { %v2058_v62 = vsub.f32 %v2025_v27, %v2040_v61 }
 0x31e   : > { %v2043_v63 = vpop.xlane.xlu1 %2042 }
 0x31f   : > { %v2068_v0 = vmul.f32 1.442695, %v2058_v62  ;;  %v2059_v3 = vsub.f32 %v2026_v31, %v2043_v63 }
 0x321   : > { %3705 = vpow2.f32 %v2068_v0  ;;  %v2070_v4 = vmul.f32 1.442695, %v2059_v3 }
 0x323   : > { %v4208_v5 = vpop.eup %3701  ;;  %3707 = vpow2.f32 %v2070_v4 }
 0x324   : > { %v2046_v6 = vpop.xlane.xlu0 %2045  ;;  %v2080_v7 = vsel %vm2031_vm9, %v4208_v5, 0.0 }
 0x325   : > { %v4212_v8 = vpop.eup %3703  ;;  %v2060_v9 = vsub.f32 %v2027_v35, %v2046_v6  ;;  %2081 = vadd.xlane.f32.xlu1 %v2080_v7 }
 0x326   : > { %v2049_v10 = vpop.xlane.xlu1 %2048  ;;  %v2083_v12 = vsel %vm2031_vm9, %v4212_v8, 0.0 }
 0x327   : > { %v2072_v13 = vmul.f32 1.442695, %v2060_v9  ;;  %v2061_v14 = vsub.f32 %v2028_v40, %v2049_v10  ;;  %2084 = vadd.xlane.f32.xlu0 %v2083_v12 }
 0x329   : > { %3709 = vpow2.f32 %v2072_v13  ;;  %v2074_v15 = vmul.f32 1.442695, %v2061_v14 }
 0x32b   : > { %v4216_v16 = vpop.eup %3705  ;;  %3711 = vpow2.f32 %v2074_v15 }
 0x32c   : > { %v2052_v17 = vpop.xlane.xlu0 %2051  ;;  %v2086_v18 = vsel %vm2031_vm9, %v4216_v16, 0.0 }
 0x32d   : > { %v4220_v19 = vpop.eup %3707  ;;  %v2062_v20 = vsub.f32 %v2029_v45, %v2052_v17  ;;  %2087 = vadd.xlane.f32.xlu0 %v2086_v18 }
 0x32e   : > { %v2055_v22 = vpop.xlane.xlu1 %2054  ;;  %v2089_v25 = vsel %vm2031_vm9, %v4220_v19, 0.0 }
 0x32f   : > { %v2076_v26 = vmul.f32 1.442695, %v2062_v20  ;;  %v2063_v27 = vsub.f32 %v2030_v44, %v2055_v22  ;;  %2090 = vadd.xlane.f32.xlu1 %v2089_v25 }
 0x330   : > { %v1086_v28 = vpop.permute.xlu0 %1085 }
 0x331   : > { %3713 = vpow2.f32 %v2076_v26  ;;  %v2078_v29 = vmul.f32 1.442695, %v2063_v27 }
 0x332   : > { %v1088_v30 = vpop.permute.xlu1 %1087 }
 0x333   : > { %v4224_v31 = vpop.eup %3709  ;;  %3715 = vpow2.f32 %v2078_v29 }
 0x334   : > { %v1094_v32 = vpop.permute.xlu0 %1093  ;;  %v2092_v33 = vsel %vm2031_vm9, %v4224_v31, 0.0 }
 0x335   : > { %v4228_v34 = vpop.eup %3711  ;;  %2093 = vadd.xlane.f32.xlu0 %v2092_v33  ;;  %v1171_v35 = vcombine.low %v4192_v55, %v1094_v32  ;;  %v1172_v36 = vcombine.high %v4192_v55, %v1094_v32 }
 0x336   : > { %v1092_v37 = vpop.permute.xlu1 %1091  ;;  %v2095_v39 = vsel %vm2031_vm9, %v4228_v34, 0.0 }
 0x337   : > { %2096 = vadd.xlane.f32.xlu1 %v2095_v39  ;;  %v1103_v40 = vcombine.low %v4196_v56, %v1092_v37  ;;  %v1179_v45 = vrot.slane %v1171_v35, %v4051_v2  ;;  %v1186_v46 = vrot.slane %v1172_v36, %v4051_v2  ;;  %v1104_v49 = vcombine.high %v4196_v56, %v1092_v37 }
 0x338   : > { %v1100_v41 = vpop.permute.xlu0 %1099 }
 0x339   : > { %v1187_v42 = vcombine.low %v1088_v30, %v1100_v41  ;;  %v1188_v43 = vcombine.high %v1088_v30, %v1100_v41  ;;  %v1111_v24 = vrot.slane %v1103_v40, %v4051_v2  ;;  %v1118_v61 = vrot.slane %v1104_v49, %v4051_v2 }
 0x33a   : > { %v1098_v50 = vpop.permute.xlu1 %1097 }
 0x33b   : > { %v4238_v44 = vpop.eup %3713  ;;  %v1195_v51 = vrot.slane %v1187_v42, %v4051_v2  ;;  %v1202_v52 = vrot.slane %v1188_v43, %v4051_v2  ;;  %v1119_v54 = vcombine.low %v1086_v28, %v1098_v50  ;;  %v1120_v55 = vcombine.high %v1086_v28, %v1098_v50 }
 0x33c   : > { %v2098_v57 = vsel %vm2031_vm9, %v4238_v44, 0.0 }
 0x33d   : > { %v4245_v58 = vpop.eup %3715  ;;  %v1203_v59 = vcombine.low %v1179_v45, %v1195_v51  ;;  %v1204_v47 = vcombine.high %v1179_v45, %v1195_v51  ;;  %v1219_v60 = vcombine.low %v1186_v46, %v1202_v52  ;;  %v1220_v56 = vcombine.high %v1186_v46, %v1202_v52  ;;  %2099 = vadd.xlane.f32.xlu0 %v2098_v57 }
 0x33e   : > { %v1127_v62 = vrot.slane %v1119_v54, %v4051_v2  ;;  %v1134_v63 = vrot.slane %v1120_v55, %v4051_v2  ;;  %v2101_v0 = vsel %vm2031_vm9, %v4245_v58, 0.0 }
 0x33f   : > { %v1211_v3 = vrot.slane %v1203_v59, %v4056_v11  ;;  %v1218_v4 = vrot.slane %v1204_v47, %v4056_v11  ;;  %v1227_v6 = vrot.slane %v1219_v60, %v4056_v11  ;;  %v1234_v7 = vrot.slane %v1220_v56, %v4056_v11  ;;  %2102 = vadd.xlane.f32.xlu1 %v2101_v0 }
 0x340   : > { %v1135_v9 = vcombine.low %v1111_v24, %v1127_v62  ;;  %v1136_v10 = vcombine.high %v1111_v24, %v1127_v62  ;;  %v1151_v12 = vcombine.low %v1118_v61, %v1134_v63  ;;  %v1152_v13 = vcombine.high %v1118_v61, %v1134_v63 }
 0x341   : > { %v1307_v14 = vcombine.low %v1211_v3, %v1218_v4  ;;  %v3293_v15 = vcombine.high %v1211_v3, %v1218_v4  ;;  %v1323_v17 = vcombine.low %v1227_v6, %v1234_v7  ;;  %v3294_v18 = vcombine.high %v1227_v6, %v1234_v7 }
 0x342   : > { %v1143_v20 = vrot.slane %v1135_v9, %v4056_v11  ;;  %v1150_v22 = vrot.slane %v1136_v10, %v4056_v11  ;;  %v1159_v25 = vrot.slane %v1151_v12, %v4056_v11  ;;  %v1166_v26 = vrot.slane %v1152_v13, %v4056_v11 }
 0x343   : > { %v1314_v27 = vrot.slane %v1307_v14, %v4051_v2  ;;  %v1322_v28 = vrot.slane %v3293_v15, %v4051_v2  ;;  %v1330_v29 = vrot.slane %v1323_v17, %v4051_v2  ;;  %v1338_v30 = vrot.slane %v3294_v18, %v4051_v2 }
 0x344   : > { %v1239_v32 = vcombine.low %v1143_v20, %v1150_v22  ;;  %v3291_v33 = vcombine.high %v1143_v20, %v1150_v22  ;;  %v1255_v35 = vcombine.low %v1159_v25, %v1166_v26  ;;  %v3292_v36 = vcombine.high %v1159_v25, %v1166_v26 }
 0x345   : > { %v1339_v37 = vcombine.low %v1314_v27, %v1322_v28  ;;  %v1340_v39 = vcombine.high %v1314_v27, %v1322_v28  ;;  %v1355_v40 = vcombine.low %v1330_v29, %v1338_v30  ;;  %v1356_v41 = vcombine.high %v1330_v29, %v1338_v30 }
 0x346   : > { %v1246_v42 = vrot.slane %v1239_v32, %v4051_v2  ;;  %v1254_v43 = vrot.slane %v3291_v33, %v4051_v2  ;;  %v1262_v45 = vrot.slane %v1255_v35, %v4051_v2  ;;  %v1270_v46 = vrot.slane %v3292_v36, %v4051_v2 }
 0x347   : > { %v1347_v49 = vrot.slane %v1339_v37, %v4056_v11  ;;  %v1354_v50 = vrot.slane %v1340_v39, %v4056_v11  ;;  %v1363_v51 = vrot.slane %v1355_v40, %v4056_v11  ;;  %v1370_v52 = vrot.slane %v1356_v41, %v4056_v11 }
 0x348   : > { %v1271_v54 = vcombine.low %v1246_v42, %v1254_v43  ;;  %v1272_v55 = vcombine.high %v1246_v42, %v1254_v43  ;;  %v1287_v24 = vcombine.low %v1262_v45, %v1270_v46  ;;  %v1288_v57 = vcombine.high %v1262_v45, %v1270_v46 }
 0x349   : > { %v1371_v61 = vcombine.low %v1347_v49, %v1363_v51  ;;  %v1372_v62 = vcombine.high %v1347_v49, %v1363_v51  ;;  %v1373_v63 = vcombine.low %v1354_v50, %v1370_v52  ;;  %v1374_v0 = vcombine.high %v1354_v50, %v1370_v52 }
 0x34a   : > { %v1279_v59 = vrot.slane %v1271_v54, %v4056_v11  ;;  %v1286_v47 = vrot.slane %v1272_v55, %v4056_v11  ;;  %v1295_v60 = vrot.slane %v1287_v24, %v4056_v11  ;;  %v1302_v56 = vrot.slane %v1288_v57, %v4056_v11  ;;  %v3657_v54 = vld [vmem:[%s4520_s7 + $0x28] sm:$0xff]  }
 0x34c   : > { %v1303_v3 = vcombine.low %v1279_v59, %v1295_v60  ;;  %v1304_v4 = vcombine.high %v1279_v59, %v1295_v60  ;;  %v1305_v6 = vcombine.low %v1286_v47, %v1302_v56  ;;  %v1306_v7 = vcombine.high %v1286_v47, %v1302_v56 }
 0x34e   : > { %v1375_v9 = vpack.c.bf16 %v1371_v61, %v1303_v3  ;;  %v1376_v10 = vpack.c.bf16 %v1372_v62, %v1304_v4  ;;  %v1377_v12 = vpack.c.bf16 %v1373_v63, %v1305_v6  ;;  %v1378_v13 = vpack.c.bf16 %v1374_v0, %v1306_v7 }
 0x350   : > { %1379 = vst.msk [vmem:[#allocation3] sm:$0xff] %vm1078_vm3, %v1375_v9  ;;  %1380 = vst.msk [vmem:[#allocation3 + $0x8] sm:$0xff] %vm1078_vm3, %v1376_v10 }
 0x351   : > { %1381 = vst.msk [vmem:[#allocation3 + $0x10] sm:$0xff] %vm1078_vm3, %v1377_v12  ;;  %1382 = vst.msk [vmem:[#allocation3 + $0x18] sm:$0xff] %vm1078_vm3, %v1378_v13 }
 0x357   : > { %v1802_v14 = vld [vmem:[#allocation3] sm:$0xff]  ;;  %v1803_v30 = vld [vmem:[#allocation3 + $0x8] sm:$0xff] }
 0x358   : > { %3534 = vmatpush3.bf16.msra.mxu1 %v1802_v14  ;;  %v1804_v39 = vld [vmem:[#allocation3 + $0x10] sm:$0xff]  ;;  %v1805_v45 = vld [vmem:[#allocation3 + $0x18] sm:$0xff] }
 0x359   : > { %3539 = vmatprep.subr.bf16.mxu1 %v3767_v1 }
 0x3b2   : > { %v2082_v15 = vpop.xlane.xlu1 %2081 }
 0x3b3   : > { %3717 = vrcp.f32 %v2082_v15 }
 0x3b4   : > { %v2085_v17 = vpop.xlane.xlu0 %2084 }
 0x3b5   : > { %3719 = vrcp.f32 %v2085_v17 }
 0x3ba   : > { %v2088_v18 = vpop.xlane.xlu0 %2087 }
 0x3bb   : > { %3721 = vrcp.f32 %v2088_v18 }
 0x3bc   : > { %v2091_v20 = vpop.xlane.xlu1 %2090 }
 0x3bd   : > { %v3718_v22 = vpop.eup %3717  ;;  %3723 = vrcp.f32 %v2091_v20 }
 0x3be   : > { %v2112_v26 = vmul.f32 %v3718_v22, %v4208_v5 }
 0x3bf   : > { %v3720_v25 = vpop.eup %3719 }
 0x3c0   : > { %v2113_v27 = vmul.f32 %v3720_v25, %v4212_v8 }
 0x3c2   : > { %v2094_v28 = vpop.xlane.xlu0 %2093  ;;  %v2120_v29 = vpack.c.bf16 %v2113_v27, %v2112_v26 }
 0x3c3   : > { %3725 = vrcp.f32 %v2094_v28 }
 0x3c4   : > { %3536 = vmatmul.mubr.msk.bf16.vlgmr.msra.gmra.mrb[20].mxu1 %vm2031_vm9, %v2120_v29  ;;  %v2097_v32 = vpop.xlane.xlu1 %2096 }
 0x3c5   : > { %v3722_v33 = vpop.eup %3721  ;;  %3540 = vmatpush3.bf16.msra.mxu1 %v1803_v30  ;;  %3727 = vrcp.f32 %v2097_v32  ;;  %3541 = vmatprep.mubr.msk.bf16.mxu1 %vm3768_vm0, %v3767_v1 }
 0x3c6   : > { %3545 = vmatprep.subr.bf16.mxu1 %v3767_v1  ;;  %v2114_v5 = vmul.f32 %v3722_v33, %v4216_v16 }
 0x3c7   : > { %v3724_v35 = vpop.eup %3723 }
 0x3c8   : > { %v2115_v8 = vmul.f32 %v3724_v35, %v4220_v19 }
 0x3ca   : > { %v2100_v36 = vpop.xlane.xlu0 %2099  ;;  %v2121_v37 = vpack.c.bf16 %v2115_v8, %v2114_v5 }
 0x3cb   : > { %3729 = vrcp.f32 %v2100_v36 }
 0x3cc   : > { %3542 = vmatmul.mubr.msk.bf16.vlgmr.msra.gmra.mrb[24].mxu1 %vm2031_vm9, %v2121_v37  ;;  %v2103_v40 = vpop.xlane.xlu1 %2102 }
 0x3cd   : > { %v3726_v41 = vpop.eup %3725  ;;  %3546 = vmatpush3.bf16.msra.mxu1 %v1804_v39  ;;  %3731 = vrcp.f32 %v2103_v40  ;;  %3547 = vmatprep.mubr.msk.bf16.mxu1 %vm3768_vm0, %v3767_v1 }
 0x3ce   : > { %3551 = vmatprep.subr.bf16.mxu1 %v3767_v1  ;;  %v2116_v16 = vmul.f32 %v3726_v41, %v4224_v31  ;;  %v3652_v31 = vld [vmem:[%s4520_s7] sm:$0xff]  }
 0x3cf   : > { %v3728_v42 = vpop.eup %3727  ;;  %3558 = vmatpush3.bf16.msra.mxu0 %v3652_v31 }
 0x3d0   : > { %v2117_v19 = vmul.f32 %v3728_v42, %v4228_v34  ;;  %v3653_v34 = vld [vmem:[%s4520_s7 + $0x8] sm:$0xff]   ;;  %3559 = vmatprep.subr.bf16.mxu0 %v3767_v1 }
 0x3d2   : > { %v2122_v43 = vpack.c.bf16 %v2117_v19, %v2116_v16 }
 0x3d3   : > { %3560 = vmatpush3.bf16.msra.mxu0 %v3653_v34 }
 0x3d4   : > { %3548 = vmatmul.mubr.msk.bf16.vlgmr.msra.gmra.mrb[28].mxu1 %vm2031_vm9, %v2122_v43  ;;  %3561 = vmatprep.subr.bf16.mxu0 %v3767_v1 }
 0x3d5   : > { %v3730_v46 = vpop.eup %3729  ;;  %3552 = vmatpush3.bf16.msra.mxu1 %v1805_v45  ;;  %3553 = vmatprep.mubr.msk.bf16.mxu1 %vm3768_vm0, %v3767_v1 }
 0x3d6   : > { %v2118_v50 = vmul.f32 %v3730_v46, %v4238_v44  ;;  %v3654_v44 = vld [vmem:[%s4520_s7 + $0x10] sm:$0xff]  }
 0x3d7   : > { %v3732_v49 = vpop.eup %3731  ;;  %3562 = vmatpush3.bf16.msra.mxu0 %v3654_v44 }
 0x3d8   : > { %v2119_v51 = vmul.f32 %v3732_v49, %v4245_v58  ;;  %3563 = vmatprep.subr.bf16.mxu0 %v3767_v1  ;;  %v3656_v58 = vld [vmem:[%s4520_s7 + $0x20] sm:$0xff]  }
 0x3da   : > { %v2123_v52 = vpack.c.bf16 %v2119_v51, %v2118_v50 }
 0x3dc   : > { %3554 = vmatmul.mubr.msk.bf16.vlgmr.msra.gmra.mrb[32].mxu1 %vm2031_vm9, %v2123_v52 }
 0x3dd   : > { %2895 = vmatprep.mubr.bf16.mxu1 %v3772_v48  ;;  %v3655_v48 = vld [vmem:[%s4520_s7 + $0x18] sm:$0xff]  }
 0x3de   : > { %3564 = vmatpush3.bf16.msra.mxu0 %v3655_v48 }
 0x3df   : > { %3565 = vmatprep.subr.bf16.mxu0 %v3767_v1 }
 0x3e2   : > { %3566 = vmatpush3.bf16.msra.mxu0 %v3656_v58 }
 0x3e3   : > { %3567 = vmatprep.subr.bf16.mxu0 %v3767_v1 }
 0x3e6   : > { %3568 = vmatpush3.bf16.msra.mxu0 %v3657_v54 }
 0x3e7   : > { %3569 = vmatprep.subr.bf16.mxu0 %v3767_v1 }
 0x497   : > { %v2161_v55 = vpop.f32.mrb[20].mxu1 }
 0x498   : > { %v3537_v24 = vpop.f32.mrb[21].mxu1 }
 0x499   : > { %v2164_v57 = vpop.f32.mrb[22].mxu1 }
 0x49a   : > { %v3538_v59 = vpop.f32.mrb[23].mxu1 }
 0x49b   : > { %v3658_v59 = vld [vmem:[%s4520_s7 + $0x30] sm:$0xff]  }
 0x49c   : > { %3570 = vmatpush3.bf16.msra.mxu0 %v3658_v59 }
 0x49d   : > { %3571 = vmatprep.subr.bf16.mxu0 %v3767_v1 }
 0x49f   : > { %v2205_v47 = vpop.f32.mrb[24].mxu1 }
 0x4a0   : > { %v3543_v60 = vpop.f32.mrb[25].mxu1 }
 0x4a1   : > { %v2208_v56 = vpop.f32.mrb[26].mxu1 }
 0x4a2   : > { %v3544_v61 = vpop.f32.mrb[27].mxu1 }
 0x4a7   : > { %v2249_v62 = vpop.f32.mrb[28].mxu1 }
 0x4a8   : > { %v2300_v63 = vcombine.low %v2161_v55, %v2249_v62  ;;  %v2301_v0 = vcombine.high %v2161_v55, %v2249_v62  ;;  %v3549_v3 = vpop.f32.mrb[29].mxu1 }
 0x4a9   : > { %v2252_v4 = vpop.f32.mrb[30].mxu1 }
 0x4aa   : > { %v2368_v6 = vcombine.low %v2164_v57, %v2252_v4  ;;  %v2369_v7 = vcombine.high %v2164_v57, %v2252_v4  ;;  %v3550_v9 = vpop.f32.mrb[31].mxu1  ;;  %v2308_v15 = vrot.slane %v2300_v63, %v4051_v2  ;;  %v2315_v17 = vrot.slane %v2301_v0, %v4051_v2 }
 0x4ac   : > { %v2376_v33 = vrot.slane %v2368_v6, %v4051_v2  ;;  %v2383_v35 = vrot.slane %v2369_v7, %v4051_v2 }
 0x4af   : > { %v2293_v10 = vpop.f32.mrb[32].mxu1 }
 0x4b0   : > { %v2316_v12 = vcombine.low %v2205_v47, %v2293_v10  ;;  %v2317_v13 = vcombine.high %v2205_v47, %v2293_v10  ;;  %v3555_v14 = vpop.f32.mrb[33].mxu1 }
 0x4b1   : > { %v2296_v18 = vpop.f32.mrb[34].mxu1 }
 0x4b2   : > { %v2324_v20 = vrot.slane %v2316_v12, %v4051_v2  ;;  %v2331_v22 = vrot.slane %v2317_v13, %v4051_v2  ;;  %v2384_v25 = vcombine.low %v2208_v56, %v2296_v18  ;;  %v2385_v26 = vcombine.high %v2208_v56, %v2296_v18  ;;  %v3556_v27 = vpop.f32.mrb[35].mxu1 }
 0x4b4   : > { %v2332_v28 = vcombine.low %v2308_v15, %v2324_v20  ;;  %v2333_v29 = vcombine.high %v2308_v15, %v2324_v20  ;;  %v2348_v30 = vcombine.low %v2315_v17, %v2331_v22  ;;  %v2349_v32 = vcombine.high %v2315_v17, %v2331_v22  ;;  %v3659_v15 = vld [vmem:[%s4520_s7 + $0x38] sm:$0xff]  }
 0x4b5   : > { %v2392_v5 = vrot.slane %v2384_v25, %v4051_v2  ;;  %v2399_v8 = vrot.slane %v2385_v26, %v4051_v2  ;;  %3572 = vmatpush3.bf16.msra.mxu0 %v3659_v15  ;;  %v3671_v15 = vld [vmem:[%s4522_s9 + $0x34] ss:$8 sps:$4 sm:$0xff]  }
 0x4b6   : > { %v2340_v36 = vrot.slane %v2332_v28, %v4056_v11  ;;  %v2347_v37 = vrot.slane %v2333_v29, %v4056_v11  ;;  %v2356_v39 = vrot.slane %v2348_v30, %v4056_v11  ;;  %v2363_v40 = vrot.slane %v2349_v32, %v4056_v11 }
 0x4b7   : > { %v2400_v41 = vcombine.low %v2376_v33, %v2392_v5  ;;  %v2401_v42 = vcombine.high %v2376_v33, %v2392_v5  ;;  %v2416_v16 = vcombine.low %v2383_v35, %v2399_v8  ;;  %v2417_v19 = vcombine.high %v2383_v35, %v2399_v8 }
 0x4b8   : > { %v2436_v43 = vcombine.low %v2340_v36, %v2347_v37  ;;  %v3316_v45 = vcombine.high %v2340_v36, %v2347_v37  ;;  %v2452_v46 = vcombine.low %v2356_v39, %v2363_v40  ;;  %v3317_v49 = vcombine.high %v2356_v39, %v2363_v40 }
 0x4b9   : > { %v2408_v50 = vrot.slane %v2400_v41, %v4056_v11  ;;  %v2415_v51 = vrot.slane %v2401_v42, %v4056_v11  ;;  %v2424_v52 = vrot.slane %v2416_v16, %v4056_v11  ;;  %v2431_v31 = vrot.slane %v2417_v19, %v4056_v11 }
 0x4ba   : > { %v2443_v34 = vrot.slane %v2436_v43, %v4051_v2  ;;  %v2451_v44 = vrot.slane %v3316_v45, %v4051_v2  ;;  %v2459_v48 = vrot.slane %v2452_v46, %v4051_v2  ;;  %v2467_v58 = vrot.slane %v3317_v49, %v4051_v2 }
 0x4bb   : > { %v2504_v54 = vcombine.low %v2408_v50, %v2415_v51  ;;  %v3318_v55 = vcombine.high %v2408_v50, %v2415_v51  ;;  %v2520_v24 = vcombine.low %v2424_v52, %v2431_v31  ;;  %v3319_v57 = vcombine.high %v2424_v52, %v2431_v31  ;;  %v4374_v52 = vld [vmem:[%s4521_s8] sm:$0x3f] }
 0x4bc   : > { %v2469_v47 = vcombine.high %v2443_v34, %v2451_v44  ;;  %v2485_v60 = vcombine.high %v2459_v48, %v2467_v58  ;;  %v2468_v56 = vcombine.low %v2443_v34, %v2451_v44  ;;  %v2484_v61 = vcombine.low %v2459_v48, %v2467_v58  ;;  %v3742_v34 = vld [vmem:[%s3946_s21] sm:$0xff]  }
 0x4bd   : > { %v2511_v62 = vrot.slane %v2504_v54, %v4051_v2  ;;  %v2519_v63 = vrot.slane %v3318_v55, %v4051_v2  ;;  %v2527_v0 = vrot.slane %v2520_v24, %v4051_v2  ;;  %v2535_v3 = vrot.slane %v3319_v57, %v4051_v2 }
 0x4be   : > { %v2483_v4 = vrot.slane %v2469_v47, %v4056_v11  ;;  %v2499_v6 = vrot.slane %v2485_v60, %v4056_v11  ;;  %v2476_v7 = vrot.slane %v2468_v56, %v4056_v11  ;;  %v2492_v9 = vrot.slane %v2484_v61, %v4056_v11  ;;  %v3660_v56 = vld [vmem:[%s4522_s9] ss:$8 sps:$4 sm:$0xff]   ;;  %v3662_v61 = vld [vmem:[%s4522_s9 + $0x4] ss:$8 sps:$4 sm:$0xff]  }
 0x4bf   : > { %v2537_v10 = vcombine.high %v2511_v62, %v2519_v63  ;;  %v2553_v12 = vcombine.high %v2527_v0, %v2535_v3  ;;  %v2536_v13 = vcombine.low %v2511_v62, %v2519_v63  ;;  %v2552_v14 = vcombine.low %v2527_v0, %v2535_v3  ;;  %v3665_v62 = vld [vmem:[%s4522_s9 + $0x14] ss:$8 sps:$4 sm:$0xff]   ;;  %2863 = vmatprep.subr.bf16.mxu1 %v3662_v61  ;;  %v3663_v63 = vld [vmem:[%s4522_s9 + $0x10] ss:$8 sps:$4 sm:$0xff]  }
 0x4c0   : > { %v2502_v2 = vcombine.low %v2483_v4, %v2499_v6  ;;  %v2500_v17 = vcombine.low %v2476_v7, %v2492_v9  ;;  %v2501_v18 = vcombine.high %v2476_v7, %v2492_v9  ;;  %v2503_v20 = vcombine.high %v2483_v4, %v2499_v6  ;;  %2864 = vmatpush1.bf16.msra.mxu1 %v3660_v56 }
 0x4c1   : > { %v2551_v22 = vrot.slane %v2537_v10, %v4056_v11  ;;  %v2567_v25 = vrot.slane %v2553_v12, %v4056_v11  ;;  %v2544_v26 = vrot.slane %v2536_v13, %v4056_v11  ;;  %v2560_v1 = vrot.slane %v2552_v14, %v4056_v11  ;;  %2865 = vmatprep.subr.bf16.mxu1 %v3665_v62  ;;  %v3668_v13 = vld [vmem:[%s4522_s9 + $0x24] ss:$8 sps:$4 sm:$0xff]   ;;  %v3666_v14 = vld [vmem:[%s4522_s9 + $0x20] ss:$8 sps:$4 sm:$0xff]  }
 0x4c2   : > { %v2623_v51 = vsub.s32 3, %v3959_v21  ;;  %v2714_v44 = vunpack.c.l.bf16 %v3742_v34  ;;  %v2715_v55 = vunpack.c.h.bf16 %v3742_v34 }
 0x4c3   : > { %v2570_v27 = vcombine.low %v2551_v22, %v2567_v25  ;;  %v2569_v28 = vcombine.high %v2544_v26, %v2560_v1  ;;  %v2568_v29 = vcombine.low %v2544_v26, %v2560_v1  ;;  %v2571_v30 = vcombine.high %v2551_v22, %v2567_v25  ;;  %v3675_v22 = vld [vmem:[%s4522_s9 + $0x50] ss:$8 sps:$4 sm:$0xff]   ;;  %v3680_v25 = vld [vmem:[%s4522_s9 + $0x64] ss:$8 sps:$4 sm:$0xff]   ;;  %v3678_v26 = vld [vmem:[%s4522_s9 + $0x60] ss:$8 sps:$4 sm:$0xff]  }
 0x4c4   : > { %v2624_v31 = vrot.slane %v4374_v52, %v2623_v51  ;;  %2866 = vmatpush1.bf16.msra.mxu1 %v3663_v63  ;;  %v3683_v1 = vld [vmem:[%s4522_s9 + $0x74] ss:$8 sps:$4 sm:$0xff]  }
 0x4c5   : > { %v3616_v32 = vpack.i.bf16 %v2570_v27, %v2502_v2  ;;  %v3611_v33 = vpack.i.bf16 %v2569_v28, %v2501_v18  ;;  %v3621_v35 = vpack.i.bf16 %v2571_v30, %v2503_v20  ;;  %2867 = vmatprep.subr.bf16.mxu1 %v3668_v13  ;;  %v3669_v2 = vld [vmem:[%s4522_s9 + $0x30] ss:$8 sps:$4 sm:$0xff]   ;;  %v3672_v18 = vld [vmem:[%s4522_s9 + $0x40] ss:$8 sps:$4 sm:$0xff]   ;;  %v3677_v20 = vld [vmem:[%s4522_s9 + $0x54] ss:$8 sps:$4 sm:$0xff]  }
 0x4c6   : > { %v3681_v27 = vld [vmem:[%s4522_s9 + $0x70] ss:$8 sps:$4 sm:$0xff]   ;;  %v3684_v28 = vld [vmem:[%s4524_s11 + $0x40] sm:$0xff]   ;;  %v3686_v30 = vld [vmem:[%s4524_s11 + $0x48] sm:$0xff]  }
 0x4c7   : > { %3617 = vrot.lane.b32.xlu1 %v3616_v32, %s3769_s30  ;;  %3612 = vrot.lane.b32.xlu0 %v3611_v33, %s3771_s20  ;;  %v3687_v32 = vld [vmem:[%s4524_s11 + $0x8] sm:$0xff]   ;;  %v3688_v33 = vld [vmem:[%s4524_s11 + $0x50] sm:$0xff]  }
 0x4c8   : > { %2868 = vmatpush1.bf16.msra.mxu1 %v3666_v14  ;;  %3427 = vmatprep.subr.bf16.mxu0 %v3684_v28 }
 0x4c9   : > { %2869 = vmatprep.subr.bf16.mxu1 %v3671_v15 }
 0x4cb   : > { %3622 = vrot.lane.b32.xlu1 %v3621_v35, %s3770_s14  ;;  %v3689_v35 = vld [vmem:[%s4524_s11 + $0x10] sm:$0xff]  }
 0x4cc   : > { %2870 = vmatpush1.bf16.msra.mxu1 %v3669_v2 }
 0x539   : > { %v3618_v5 = vpop.permute.xlu1 %3617  ;;  %v3613_v8 = vpop.permute.xlu0 %3612 }
 0x53a   : > { %v3615_v36 = vunpack.i.h.bf16 %v3613_v8  ;;  %v3614_v37 = vunpack.i.l.bf16 %v3613_v8  ;;  %v3620_v39 = vunpack.i.h.bf16 %v3618_v5  ;;  %v3619_v11 = vunpack.i.l.bf16 %v3618_v5  ;;  %v3690_v5 = vld [vmem:[%s4524_s11 + $0x58] sm:$0xff]  }
 0x53b   : > { %v3691_v8 = vld [vmem:[%s4524_s11 + $0x18] sm:$0xff]  }
 0x53c   : > { %v2596_v40 = vsel %vm1078_vm3, %v2500_v17, %v3614_v37  ;;  %v2597_v41 = vsel %vm1078_vm3, %v2568_v29, %v3615_v36  ;;  %v3674_v17 = vld [vmem:[%s4522_s9 + $0x44] ss:$8 sps:$4 sm:$0xff]  }
 0x53d   : > { %v3623_v42 = vpop.permute.xlu1 %3622  ;;  %v2599_v43 = vsel %vm2598_vm11, %v2596_v40, %v3619_v11  ;;  %v2600_v45 = vsel %vm2598_vm11, %v2597_v41, %v3620_v39  ;;  %2871 = vmatprep.subr.bf16.mxu1 %v3674_v17  ;;  %v3685_v29 = vld [vmem:[%s4524_s11] sm:$0xff]   ;;  %v3694_v39 = vld [vmem:[%s4524_s11 + $0x68] sm:$0xff]  }
 0x53e   : > { %v3625_v16 = vunpack.i.h.bf16 %v3623_v42  ;;  %v3624_v19 = vunpack.i.l.bf16 %v3623_v42  ;;  %2872 = vmatpush1.bf16.msra.mxu1 %v3672_v18  ;;  %v3692_v36 = vld [vmem:[%s4524_s11 + $0x60] sm:$0xff]  }
 0x53f   : > { %2873 = vmatprep.subr.bf16.mxu1 %v3677_v20  ;;  %v3693_v37 = vld [vmem:[%s4524_s11 + $0x20] sm:$0xff]  }
 0x540   : > { %v2602_v46 = vsel %vm2601_vm12, %v2599_v43, %v3624_v19  ;;  %v2603_v49 = vsel %vm2601_vm12, %v2600_v45, %v3625_v16  ;;  %v2743_v43 = vsub.s32 4, %v3959_v21  ;;  %v2753_v17 = vld [vmem:[%s4525_s12] sm:$0x7] }
 0x541   : > { %v2604_v50 = vpack.c.bf16 %v2603_v49, %v2602_v46  ;;  %v2947_v20 = vrot.slane %v2753_v17, %v4020_v38 }
 0x542   : > { %2874 = vmatpush1.bf16.msra.mxu1 %v3675_v22  ;;  %v2744_v49 = vrot.slane %v4374_v52, %v2743_v43  ;;  %v3112_v43 = vrot.slane %v2753_v17, %v3966_v23 }
 0x543   : > { %3574 = vmatmul.mubr.bf16.vlgmr.msra.gmra.mrb[8].mxu0 %v2604_v50  ;;  %2875 = vmatprep.subr.bf16.mxu1 %v3680_v25  ;;  %v2749_v50 = vsub.s32 5, %v3959_v21 }
 0x544   : > { %3428 = vmatpush3.bf16.msra.mxu0 %v3685_v29 }
 0x545   : > { %3429 = vmatprep.subr.bf16.mxu0 %v3686_v30 }
 0x546   : > { %2876 = vmatpush1.bf16.msra.mxu1 %v3678_v26 }
 0x547   : > { %2877 = vmatprep.subr.bf16.mxu1 %v3683_v1 }
 0x548   : > { %3430 = vmatpush3.bf16.msra.mxu0 %v3687_v32 }
 0x549   : > { %3431 = vmatprep.subr.bf16.mxu0 %v3688_v33 }
 0x54a   : > { %2878 = vmatpush1.bf16.msra.mxu1 %v3681_v27 }
 0x54c   : > { %3432 = vmatpush3.bf16.msra.mxu0 %v3689_v35 }
 0x54d   : > { %3433 = vmatprep.subr.bf16.mxu0 %v3690_v5 }
 0x550   : > { %3434 = vmatpush3.bf16.msra.mxu0 %v3691_v8 }
 0x551   : > { %3435 = vmatprep.subr.bf16.mxu0 %v3692_v36 }
 0x554   : > { %3436 = vmatpush3.bf16.msra.mxu0 %v3693_v37 }
 0x555   : > { %3437 = vmatprep.subr.bf16.mxu0 %v3694_v39 }
 0x616   : > { %v2707_v48 = vpop.f32.mrb[8].mxu0 }
 0x617   : > { %v2708_v58 = vadd.f32 %v2707_v48, %v2624_v31  ;;  %v3575_v54 = vpop.f32.mrb[9].mxu0 }
 0x618   : > { %v2710_v24 = vpop.f32.mrb[10].mxu0 }
 0x619   : > { %v2711_v57 = vadd.f32 %v2710_v24, %v2624_v31  ;;  %v3576_v59 = vpop.f32.mrb[11].mxu0  ;;  %v2716_v47 = vadd.f32 %v2714_v44, %v2708_v58  ;;  %v2750_v44 = vrot.slane %v4374_v52, %v2749_v50  ;;  %v3695_v24 = vld [vmem:[%s4524_s11 + $0x28] sm:$0xff]   ;;  %v3698_v52 = vld [vmem:[%s4524_s11 + $0x78] sm:$0xff]   ;;  %v3118_v50 = vrot.slane %v2753_v17, %v691_v53 }
 0x61a   : > { %3438 = vmatpush3.bf16.msra.mxu0 %v3695_v24  ;;  %v3697_v59 = vld [vmem:[%s4524_s11 + $0x30] sm:$0xff]  }
 0x61b   : > { %2718 = vadd.xlane.f32.xlu0 %v2716_v47  ;;  %v2717_v60 = vadd.f32 %v2715_v55, %v2711_v57  ;;  %v3696_v57 = vld [vmem:[%s4524_s11 + $0x70] sm:$0xff]  }
 0x61c   : > { %3439 = vmatprep.subr.bf16.mxu0 %v3696_v57 }
 0x61d   : > { %2720 = vadd.xlane.f32.xlu1 %v2717_v60 }
 0x61e   : > { %3440 = vmatpush3.bf16.msra.mxu0 %v3697_v59 }
 0x61f   : > { %3441 = vmatprep.subr.bf16.mxu0 %v3698_v52 }
 0x6a8   : > { %v2719_v0 = vpop.xlane.xlu0 %2718 }
 0x6a9   : > { %v2723_v3 = vmul.f32 0.0078125, %v2719_v0 }
 0x6aa   : > { %v2721_v4 = vpop.xlane.xlu1 %2720 }
 0x6ab   : > { %v4390_v6 = vsub.f32 %v2716_v47, %v2723_v3  ;;  %v2724_v7 = vmul.f32 0.0078125, %v2721_v4  ;;  %v3699_v47 = vld [vmem:[%s4524_s11 + $0x38] sm:$0xff]  }
 0x6ac   : > { %3442 = vmatpush3.bf16.msra.mxu0 %v3699_v47 }
 0x6ad   : > { %v4392_v9 = vsub.f32 %v2717_v60, %v2724_v7  ;;  %v2727_v10 = vmul.f32 %v4390_v6, %v4390_v6  ;;  %v2771_v60 = vld [vmem:[%s4523_s10] sm:$0x3] }
 0x6ae   : > { %v2776_v56 = vrot.slane %v2771_v60, %v4020_v38  ;;  %v2780_v61 = vrot.slane %v2771_v60, %v3966_v23 }
 0x6af   : > { %2729 = vadd.xlane.f32.xlu0 %v2727_v10  ;;  %v2728_v12 = vmul.f32 %v4392_v9, %v4392_v9 }
 0x6b3   : > { %2731 = vadd.xlane.f32.xlu0 %v2728_v12 }
 0x73c   : > { %v2730_v11 = vpop.xlane.xlu0 %2729 }
 0x73d   : > { %v2733_v40 = vmul.f32 0.0078125, %v2730_v11 }
 0x73f   : > { %v2735_v41 = vadd.f32 1e-05, %v2733_v40 }
 0x740   : > { %v2732_v42 = vpop.xlane.xlu0 %2731 }
 0x741   : > { %3733 = vrsqrt.f32 %v2735_v41  ;;  %v2734_v16 = vmul.f32 0.0078125, %v2732_v42 }
 0x743   : > { %v2736_v19 = vadd.f32 1e-05, %v2734_v16 }
 0x745   : > { %3735 = vrsqrt.f32 %v2736_v19 }
 0x74b   : > { %v3734_v45 = vpop.eup %3733 }
 0x74c   : > { %v2739_v46 = vmul.f32 %v3734_v45, %v4390_v6 }
 0x74e   : > { %v2745_v34 = vmul.f32 %v2744_v49, %v2739_v46 }
 0x74f   : > { %v3736_v51 = vpop.eup %3735 }
 0x750   : > { %v2740_v31 = vmul.f32 %v3736_v51, %v4392_v9  ;;  %v2751_v58 = vadd.f32 %v2750_v44, %v2745_v34 }
 0x752   : > { %v2746_v48 = vmul.f32 %v2744_v49, %v2740_v31 }
 0x754   : > { %v2752_v54 = vadd.f32 %v2750_v44, %v2746_v48 }
 0x756   : > { %v2754_v55 = vpack.c.bf16 %v2752_v54, %v2751_v58 }
 0x758   : > { %2896 = vmatmul.mubr.bf16.vlgmr.msra.gmra.mrb[36].mxu1 %v2754_v55 }
 0x82b   : > { %v2897_v62 = vpop.f32.mrb[36].mxu1 }
 0x82c   : > { %v2898_v63 = vadd.f32 %v2897_v62, %v2776_v56  ;;  %v2899_v0 = vpop.f32.mrb[37].mxu1 }
 0x82d   : > { %v2900_v3 = vadd.f32 %v2899_v0, %v2780_v61  ;;  %v2901_v4 = vpop.f32.mrb[38].mxu1 }
 0x82e   : > { %v2902_v6 = vadd.f32 %v2901_v4, %v2776_v56  ;;  %v2903_v7 = vpop.f32.mrb[39].mxu1  ;;  %v2906_v10 = vmax.f32 %v2898_v63, 0.0 }
 0x82f   : > { %v2904_v9 = vadd.f32 %v2903_v7, %v2780_v61  ;;  %v2907_v13 = vmax.f32 %v2900_v3, 0.0 }
 0x830   : > { %v2908_v12 = vmax.f32 %v2902_v6, 0.0 }
 0x831   : > { %v2909_v14 = vmax.f32 %v2904_v9, 0.0 }
 0x832   : > { %v2910_v15 = vpack.c.bf16 %v2908_v12, %v2906_v10 }
 0x833   : > { %v2911_v2 = vpack.c.bf16 %v2909_v14, %v2907_v13 }
 0x835   : > { %3076 = vmatprep.mubr.bf16.mxu0 %v2911_v2 }
 0x836   : > { %3077 = vmatmul.mubr.bf16.vlgmr.msra.gmra.mrb[12].mxu0 %v2910_v15 }
 0x909   : > { %v3443_v18 = vpop.f32.mrb[12].mxu0 }
 0x90a   : > { %v3444_v22 = vpop.f32.mrb[13].mxu0 }
 0x90b   : > { %v3445_v25 = vadd.f32 %v3444_v22, %v3443_v18  ;;  %v3446_v26 = vpop.f32.mrb[14].mxu0 }
 0x90c   : > { %v3447_v1 = vpop.f32.mrb[15].mxu0 }
 0x90d   : > { %v3079_v27 = vadd.f32 %v3445_v25, %v2947_v20  ;;  %v3448_v28 = vadd.f32 %v3447_v1, %v3446_v26 }
 0x90f   : > { %v3082_v29 = vadd.f32 %v3448_v28, %v2947_v20  ;;  %v3085_v30 = vadd.f32 %v3079_v27, %v2751_v58 }
 0x911   : > { %3087 = vadd.xlane.f32.xlu1 %v3085_v30  ;;  %v3086_v32 = vadd.f32 %v3082_v29, %v2752_v54 }
 0x913   : > { %3089 = vadd.xlane.f32.xlu0 %v3086_v32 }
 0x99e   : > { %v3088_v33 = vpop.xlane.xlu1 %3087 }
 0x99f   : > { %v3091_v35 = vmul.f32 0.0078125, %v3088_v33 }
 0x9a0   : > { %v3090_v5 = vpop.xlane.xlu0 %3089 }
 0x9a1   : > { %v3093_v8 = vsub.f32 %v3085_v30, %v3091_v35  ;;  %v3092_v36 = vmul.f32 0.0078125, %v3090_v5 }
 0x9a3   : > { %v3094_v37 = vsub.f32 %v3086_v32, %v3092_v36  ;;  %v3095_v39 = vmul.f32 %v3093_v8, %v3093_v8 }
 0x9a5   : > { %3097 = vadd.xlane.f32.xlu1 %v3095_v39  ;;  %v3096_v38 = vmul.f32 %v3094_v37, %v3094_v37 }
 0x9a7   : > { %3099 = vadd.xlane.f32.xlu0 %v3096_v38 }
 0xa32   : > { %v3098_v11 = vpop.xlane.xlu1 %3097 }
 0xa33   : > { %v3101_v40 = vmul.f32 0.0078125, %v3098_v11 }
 0xa34   : > { %v3100_v41 = vpop.xlane.xlu0 %3099 }
 0xa35   : > { %v3103_v42 = vadd.f32 1e-05, %v3101_v40  ;;  %v3102_v16 = vmul.f32 0.0078125, %v3100_v41 }
 0xa37   : > { %3737 = vrsqrt.f32 %v3103_v42  ;;  %v3104_v19 = vadd.f32 1e-05, %v3102_v16 }
 0xa39   : > { %3739 = vrsqrt.f32 %v3104_v19 }
 0xa41   : > { %v3738_v45 = vpop.eup %3737 }
 0xa42   : > { %v3107_v46 = vmul.f32 %v3738_v45, %v3093_v8 }
 0xa43   : > { %v3740_v49 = vpop.eup %3739 }
 0xa44   : > { %v3113_v51 = vmul.f32 %v3112_v43, %v3107_v46  ;;  %v3108_v31 = vmul.f32 %v3740_v49, %v3094_v37 }
 0xa46   : > { %v3114_v34 = vmul.f32 %v3112_v43, %v3108_v31  ;;  %v3119_v44 = vadd.f32 %v3118_v50, %v3113_v51 }
 0xa48   : > { %v3120_v48 = vadd.f32 %v3118_v50, %v3114_v34 }
 0xa4a   : > { %v3373_v58 = vpack.c.bf16 %v3120_v48, %v3119_v44 }
 0xa4c   : > { %3374 = vst [vmem:[%s548_s29] sm:$0xff] %v3373_v58  }
 0xa4d PF: > { %s23_s27 = sadd.s32 1, %s3765_s27   ;;  %s4531_s25 = smov %s3761_s26 }
 0xa4e   : > { %p20_p5 = scmp.ge.s32.totalorder %s23_s27, 4   ;;  %s4532_s26 = smov %s4534_s28 }
 0xa50   :  { %22 = sbr.rel (!%p20_p5) target bundleno = 2 (0x2), region = 115 }

// kernel: transformer_forward.10
= control target key start
LH: loop header
LB: loop body
LE: loop exit
PB: predicated region body
PF: predicated region fallthrough
CT: control target
= control target key end

     0   :  { %s3336_s25 = smov 0   ;;  %s3338_s26 = smov 0   ;;  %s3910_s0 = inlined_call_operand.vmem [shape: bf16[2,8,128], index: 0, kind: input, shape index: {}]   ;;  %s3911_s1 = inlined_call_operand.vmem [shape: bf16[2,16,128], index: 1, kind: input, shape index: {}]   ;;  %s3912_s2 = inlined_call_operand.vmem [shape: s32[2,8,1], index: 2, kind: input, shape index: {}]   ;;  %s3913_s3 = inlined_call_operand.vmem [shape: s32[2,1,16], index: 3, kind: input, shape index: {}]   ;;  %s3914_s4 = inlined_call_operand.vmem [shape: bf16[128,128], index: 4, kind: input, shape index: {}]   ;;  %s3915_s5 = inlined_call_operand.vmem [shape: bf16[128,128], index: 5, kind: input, shape index: {}]   ;;  %s3916_s6 = inlined_call_operand.vmem [shape: bf16[128,128], index: 6, kind: input, shape index: {}]   ;;  %s3917_s7 = inlined_call_operand.vmem [shape: bf16[128,128], index: 7, kind: input, shape index: {}]   ;;  %s3918_s8 = inlined_call_operand.vmem [shape: f32[6,128], index: 8, kind: input, shape index: {}]   ;;  %s3919_s9 = inlined_call_operand.vmem [shape: bf16[128,256], index: 9, kind: input, shape index: {}]   ;;  %s3920_s10 = inlined_call_operand.vmem [shape: f32[1,256], index: 10, kind: input, shape index: {}]   ;;  %s3921_s11 = inlined_call_operand.vmem [shape: bf16[256,128], index: 11, kind: input, shape index: {}]   ;;  %s3922_s12 = inlined_call_operand.vmem [shape: f32[3,128], index: 12, kind: input, shape index: {}]   ;;  %s3923_s13 = inlined_call_operand.vmem [shape: bf16[2,8,128], index: 13, kind: output, shape index: {}]  }
   0x1   :  { %s3340_s27 = smov 0  }
   0x2 LB: > { %s35_s28 = sadd.s32 1, %s3252_s26  ;;  %p2809_p0 = scmp.ge.s32.totalorder %s3256_s27, 1  ;;  %s3256_s27 = sphi %s3340_s27, %s23_s27   ;;  %s3252_s26 = sphi %s3338_s26, %s3927_s26   ;;  %s3248_s25 = sphi %s3336_s25, %s3926_s25  }
   0x3   : > { %p37_p1 = scmp.ge.s32.totalorder %s35_s28, 2  ;;  %p437_p2 = scmp.lt.s32.totalorder %s3256_s27, 3 }
   0x5   : > { %s3929_s28 = smov (%p37_p1, %s35_s28), 0  ;;  %p438_p3 = pnand %p2809_p0, %p437_p2 }
   0x6   : > { %v3139_v0 = vld [vmem:[%s3915_s5] sm:$0xff] (!%p438_p3)   ;;  %v3258_v1 = vmov (!%p438_p3), 0.0   ;;  %v3140_v2 = vld [vmem:[%s3915_s5 + $0x8] sm:$0xff] (!%p438_p3)   ;;  %vm3259_vm0 = vmmov (!%p438_p3), 0   ;;  %p500_p4 = scmp.lt.s32.totalorder (!%p438_p3), %s3248_s25, 1  ;;  %v3141_v3 = vld [vmem:[%s3915_s5 + $0x10] sm:$0xff] (!%p438_p3)   ;;  %v553_v19 = vlaneseq (!%p438_p3) }
   0x7   : > { %441 = sbr.rel (%p438_p3) target bundleno = 2618 (0xa3a), region = 72  ;;  %2977 = vmatprep.subr.bf16.mxu0 (!%p438_p3), %v3258_v1  ;;  %2997 = vmatprep.subr.bf16.mxu1 (!%p438_p3), %v3258_v1  ;;  %v3142_v4 = vld [vmem:[%s3915_s5 + $0x18] sm:$0xff] (!%p438_p3)   ;;  %v3143_v5 = vld [vmem:[%s3915_s5 + $0x20] sm:$0xff] (!%p438_p3)   ;;  %v3144_v6 = vld [vmem:[%s3915_s5 + $0x28] sm:$0xff] (!%p438_p3)   ;;  %s3260_s15 = smov (!%p438_p3), 64   ;;  %v3263_v46 = vmov (!%p438_p3), 0  }
   0x8   : > { %2978 = vmatpush3.bf16.msra.mxu0 (!%p438_p3), %v3139_v0  ;;  %2993 = vmatprep.mubr.msk.bf16.mxu0 (!%p438_p3), %vm3259_vm0, %v3258_v1  ;;  %v3145_v7 = vld [vmem:[%s3915_s5 + $0x30] sm:$0xff] (!%p438_p3)   ;;  %v3146_v8 = vld [vmem:[%s3915_s5 + $0x38] sm:$0xff] (!%p438_p3)   ;;  %v3148_v10 = vld [vmem:[%s3914_s4] sm:$0xff] (!%p438_p3)   ;;  %v3451_v21 = vshrl.u32 (!%p438_p3), %v553_v19, 7  ;;  %s3261_s16 = smov (!%p438_p3), 96   ;;  %s3262_s24 = smov (!%p438_p3), 32  }
   0x9   : > { %2979 = vmatprep.subr.bf16.mxu0 (!%p438_p3), %v3258_v1  ;;  %3013 = vmatprep.mubr.msk.bf16.mxu1 (!%p438_p3), %vm3259_vm0, %v3258_v1  ;;  %v3149_v11 = vld [vmem:[%s3914_s4 + $0x8] sm:$0xff] (!%p438_p3)   ;;  %v3150_v12 = vld [vmem:[%s3914_s4 + $0x10] sm:$0xff] (!%p438_p3)   ;;  %v3151_v13 = vld [vmem:[%s3914_s4 + $0x18] sm:$0xff] (!%p438_p3)   ;;  %v3264_v49 = vmov (!%p438_p3), 1983009808   ;;  %vm1057_vm2 = vcmask (!%p438_p3), 261120  }
   0xa   : > { %v3152_v14 = vld [vmem:[%s3914_s4 + $0x20] sm:$0xff] (!%p438_p3)   ;;  %v3153_v15 = vld [vmem:[%s3914_s4 + $0x28] sm:$0xff] (!%p438_p3)   ;;  %v3154_v16 = vld [vmem:[%s3914_s4 + $0x30] sm:$0xff] (!%p438_p3)   ;;  %v3458_v23 = vsub.s32 (!%p438_p3), 1, %v3451_v21  ;;  %v3512_v38 = vsub.s32 (!%p438_p3), 0, %v3451_v21  ;;  %3137 = vset.pattern.permute.xlu1 (!%p438_p3), %v3263_v46  ;;  %3138 = vset.pattern.permute.xlu0 (!%p438_p3), %v3263_v46  ;;  %v784_v50 = vunpack.c.l.s4 (!%p438_p3), %v3264_v49  ;;  %vm1837_vm7 = vcmask (!%p438_p3), 130048  }
   0xb   : > { %v3155_v17 = vld [vmem:[%s3914_s4 + $0x38] sm:$0xff] (!%p438_p3)   ;;  %v3156_v20 = vld [vmem:[%s3916_s6] sm:$0xff] (!%p438_p3)   ;;  %v3157_v22 = vld [vmem:[%s3916_s6 + $0x8] sm:$0xff] (!%p438_p3)   ;;  %v3265_v53 = vmov (!%p438_p3), 1934713408   ;;  %vm2207_vm8 = vcmask (!%p438_p3), 523264  }
   0xc   : > { %2980 = vmatpush3.bf16.msra.mxu0 (!%p438_p3), %v3140_v2  ;;  %2998 = vmatpush3.bf16.msra.mxu1 (!%p438_p3), %v3156_v20  ;;  %v3463_v24 = vld [vmem:[%s3918_s8] sm:$0x3f] (!%p438_p3)  ;;  %v3158_v26 = vld [vmem:[%s3916_s6 + $0x10] sm:$0xff] (!%p438_p3)   ;;  %v3159_v30 = vld [vmem:[%s3916_s6 + $0x18] sm:$0xff] (!%p438_p3)   ;;  %v816_v54 = vunpack.c.l.s4 (!%p438_p3), %v3265_v53  ;;  %v785_v55 = vunpack.c.0.s8 (!%p438_p3), %v784_v50  ;;  %vm2209_vm9 = vcmask (!%p438_p3), 785408  }
   0xd   : > { %2981 = vmatprep.subr.bf16.mxu0 (!%p438_p3), %v3258_v1  ;;  %2999 = vmatprep.subr.bf16.mxu1 (!%p438_p3), %v3258_v1  ;;  %v556_v25 = vrot.slane (!%p438_p3), %v3463_v24, %v3458_v23  ;;  %v3160_v34 = vld [vmem:[%s3916_s6 + $0x20] sm:$0xff] (!%p438_p3)   ;;  %v3161_v35 = vld [vmem:[%s3916_s6 + $0x28] sm:$0xff] (!%p438_p3)   ;;  %v3162_v36 = vld [vmem:[%s3916_s6 + $0x30] sm:$0xff] (!%p438_p3)   ;;  %v1382_v39 = vrot.slane (!%p438_p3), %v3463_v24, %v3512_v38 }
   0xe   : > { %s3931_s25 = smov (!%p500_p4, %s3248_s25), 1  ;;  %v3163_v37 = vld [vmem:[%s3916_s6 + $0x38] sm:$0xff]   ;;  %v817_v58 = vunpack.c.0.s8 %v816_v54  ;;  %v3535_v61 = vsub.s32 %v785_v55, %v3451_v21 }
   0xf   : > { %s2902_s18 = sshll.u32 %s3931_s25, 3  ;;  %s2810_s23 = sshll.u32 %s3931_s25, 2 }
  0x10   : > { %s511_s21 = scalar_lea.vmem %s3911_s1, %s2902_s18  ;;  %2982 = vmatpush3.bf16.msra.mxu0 %v3141_v3  ;;  %s3442_s14 = scalar_lea.vmem %s3910_s0, %s2810_s23  ;;  %3000 = vmatpush3.bf16.msra.mxu1 %v3157_v22 }
  0x11   : > { %2983 = vmatprep.subr.bf16.mxu0 %v3258_v1  ;;  %v3399_v9 = vld [vmem:[%s511_s21] sm:$0xff]   ;;  %3001 = vmatprep.subr.bf16.mxu1 %v3258_v1  ;;  %s518_s22 = scalar_lea.vmem %s3912_s2, %s2902_s18  ;;  %s521_s29 = scalar_lea.vmem %s3913_s3, %s3931_s25 }
  0x12   : > { %v1362_v18 = vld [vmem:[%s3442_s14] sm:$0xf]  ;;  %s528_s30 = scalar_lea.vmem %s3923_s13, %s2810_s23 }
  0x13   : > { %v1815_v47 = vld [vmem:[%s518_s22] sm:$0xff] }
  0x14   : > { %2984 = vmatpush3.bf16.msra.mxu0 %v3142_v4  ;;  %3002 = vmatpush3.bf16.msra.mxu1 %v3158_v26  ;;  %vm1816_vm1 = vcmp.ne.s32.totalorder %v1815_v47, 0 }
  0x15   : > { %2985 = vmatprep.subr.bf16.mxu0 %v3258_v1  ;;  %3003 = vmatprep.subr.bf16.mxu1 %v3258_v1  ;;  %v1819_v48 = vsel %vm1816_vm1, 1, %v3263_v46 }
  0x18   : > { %2986 = vmatpush3.bf16.msra.mxu0 %v3143_v5  ;;  %3004 = vmatpush3.bf16.msra.mxu1 %v3159_v30 }
  0x19   : > { %2987 = vmatprep.subr.bf16.mxu0 %v3258_v1  ;;  %3005 = vmatprep.subr.bf16.mxu1 %v3258_v1 }
  0x1c   : > { %2988 = vmatpush3.bf16.msra.mxu0 %v3144_v6  ;;  %3006 = vmatpush3.bf16.msra.mxu1 %v3160_v34 }
  0x1d   : > { %2989 = vmatprep.subr.bf16.mxu0 %v3258_v1  ;;  %3007 = vmatprep.subr.bf16.mxu1 %v3258_v1 }
  0x20   : > { %2990 = vmatpush3.bf16.msra.mxu0 %v3145_v7  ;;  %3008 = vmatpush3.bf16.msra.mxu1 %v3161_v35  ;;  %v3540_v7 = vsub.s32 %v817_v58, %v3451_v21 }
  0x21   : > { %2991 = vmatprep.subr.bf16.mxu0 %v3258_v1  ;;  %3009 = vmatprep.subr.bf16.mxu1 %v3258_v1 }
  0x24   : > { %2992 = vmatpush3.bf16.msra.mxu0 %v3146_v8  ;;  %3010 = vmatpush3.bf16.msra.mxu1 %v3162_v36 }
  0x25   : > { %3017 = vmatprep.subr.bf16.mxu0 %v3258_v1  ;;  %3011 = vmatprep.subr.bf16.mxu1 %v3258_v1 }
  0x27   : > { %2994 = vmatmul.mubr.bf16.vlgmr.msra.gmra.mrb[0].mxu0 %v3399_v9 }
  0x28   : > { %3018 = vmatpush3.bf16.msra.mxu0 %v3148_v10  ;;  %3033 = vmatprep.mubr.msk.bf16.mxu0 %vm3259_vm0, %v3258_v1 }
  0x29   : > { %3019 = vmatprep.subr.bf16.mxu0 %v3258_v1  ;;  %3012 = vmatpush3.bf16.msra.mxu1 %v3163_v37 }
  0x2a   : > { %3037 = vmatprep.subr.bf16.mxu1 %v3258_v1 }
  0x2c   : > { %3020 = vmatpush3.bf16.msra.mxu0 %v3149_v11  ;;  %3014 = vmatmul.mubr.bf16.vlgmr.msra.gmra.mrb[0].mxu1 %v3399_v9 }
  0x2d   : > { %3021 = vmatprep.subr.bf16.mxu0 %v3258_v1  ;;  %3039 = vmatprep.mubr.msk.bf16.mxu1 %vm3259_vm0, %v3258_v1 }
  0x30   : > { %3022 = vmatpush3.bf16.msra.mxu0 %v3150_v12 }
  0x31   : > { %3023 = vmatprep.subr.bf16.mxu0 %v3258_v1 }
  0x34   : > { %3024 = vmatpush3.bf16.msra.mxu0 %v3151_v13 }
  0x35   : > { %3025 = vmatprep.subr.bf16.mxu0 %v3258_v1 }
  0x38   : > { %3026 = vmatpush3.bf16.msra.mxu0 %v3152_v14 }
  0x39   : > { %3027 = vmatprep.subr.bf16.mxu0 %v3258_v1 }
  0x3c   : > { %3028 = vmatpush3.bf16.msra.mxu0 %v3153_v15 }
  0x3d   : > { %3029 = vmatprep.subr.bf16.mxu0 %v3258_v1 }
  0x40   : > { %3030 = vmatpush3.bf16.msra.mxu0 %v3154_v16 }
  0x41   : > { %3031 = vmatprep.subr.bf16.mxu0 %v3258_v1 }
  0x44   : > { %3032 = vmatpush3.bf16.msra.mxu0 %v3155_v17 }
  0x45   : > { %3085 = vmatprep.subr.bf16.mxu0 %v3258_v1 }
  0x47   : > { %3034 = vmatmul.mubr.bf16.vlgmr.msra.gmra.mrb[4].mxu0 %v1362_v18 }
  0x48   : > { %3101 = vmatprep.mubr.msk.bf16.mxu0 %vm3259_vm0, %v3258_v1 }
  0xfa   : > { %v645_v27 = vpop.f32.mrb[0].mxu0 }
  0xfb   : > { %v3472_v28 = vadd.f32 %v645_v27, %v556_v25  ;;  %v2995_v29 = vpop.f32.mrb[1].mxu0 }
  0xfc   : > { %v648_v31 = vpop.f32.mrb[2].mxu0 }
  0xfd   : > { %769 = vrot.lane.b32.xlu1 %v3472_v28, %s3260_s15  ;;  %763 = vrot.lane.b32.xlu0 %v3472_v28, %s3261_s16  ;;  %v2996_v32 = vpop.f32.mrb[3].mxu0  ;;  %v3481_v33 = vadd.f32 %v648_v31, %v556_v25 }
 0x101   : > { %771 = vrot.lane.b32.xlu1 %v3481_v33, %s3260_s15  ;;  %765 = vrot.lane.b32.xlu0 %v3481_v33, %s3261_s16 }
 0x105   : > { %777 = vrot.lane.b32.xlu1 %v3481_v33, %s3262_s24  ;;  %775 = vrot.lane.b32.xlu0 %v3472_v28, %s3262_s24 }
 0x11a   : > { %v1465_v40 = vpop.f32.mrb[4].mxu0 }
 0x11b   : > { %v1466_v41 = vadd.f32 %v1465_v40, %v1382_v39  ;;  %v3035_v42 = vpop.f32.mrb[5].mxu0 }
 0x11c   : > { %v1468_v43 = vpop.f32.mrb[6].mxu0 }
 0x11d   : > { %v3516_v44 = vmul.f32 0.17677669, %v1466_v41  ;;  %v3036_v45 = vpop.f32.mrb[7].mxu0 }
 0x11f   : > { %1476 = vrot.lane.b32.xlu1 %v3516_v44, %s3260_s15  ;;  %1473 = vrot.lane.b32.xlu0 %v3516_v44, %s3261_s16 }
 0x123   : > { %1479 = vrot.lane.b32.xlu0 %v3516_v44, %s3262_s24  ;;  %1821 = vperm.xlu1 %3137, %v1819_v48  }
 0x16f   : > { %v770_v51 = vpop.permute.xlu1 %769  ;;  %v764_v52 = vpop.permute.xlu0 %763 }
 0x170   : > { %v781_v62 = vcombine.low %v3472_v28, %v770_v51  ;;  %v782_v63 = vcombine.high %v3472_v28, %v770_v51 }
 0x172   : > { %v789_v14 = vrot.slane %v781_v62, %v3535_v61  ;;  %v796_v15 = vrot.slane %v782_v63, %v3535_v61 }
 0x173   : > { %v772_v56 = vpop.permute.xlu1 %771  ;;  %v766_v57 = vpop.permute.xlu0 %765 }
 0x174   : > { %v849_v59 = vcombine.low %v3481_v33, %v772_v56  ;;  %v850_v60 = vcombine.high %v3481_v33, %v772_v56 }
 0x176   : > { %v857_v8 = vrot.slane %v849_v59, %v3535_v61  ;;  %v864_v9 = vrot.slane %v850_v60, %v3535_v61 }
 0x177   : > { %v778_v0 = vpop.permute.xlu1 %777  ;;  %v776_v2 = vpop.permute.xlu0 %775 }
 0x178   : > { %v865_v3 = vcombine.low %v766_v57, %v778_v0  ;;  %v866_v4 = vcombine.high %v766_v57, %v778_v0  ;;  %v797_v5 = vcombine.low %v764_v52, %v776_v2  ;;  %v798_v6 = vcombine.high %v764_v52, %v776_v2 }
 0x17a   : > { %v873_v10 = vrot.slane %v865_v3, %v3535_v61  ;;  %v880_v11 = vrot.slane %v866_v4, %v3535_v61  ;;  %v805_v12 = vrot.slane %v797_v5, %v3535_v61  ;;  %v812_v13 = vrot.slane %v798_v6, %v3535_v61 }
 0x17c   : > { %v881_v16 = vcombine.low %v857_v8, %v873_v10  ;;  %v882_v17 = vcombine.high %v857_v8, %v873_v10  ;;  %v897_v18 = vcombine.low %v864_v9, %v880_v11  ;;  %v898_v19 = vcombine.high %v864_v9, %v880_v11 }
 0x17d   : > { %v813_v20 = vcombine.low %v789_v14, %v805_v12  ;;  %v814_v22 = vcombine.high %v789_v14, %v805_v12  ;;  %v829_v25 = vcombine.low %v796_v15, %v812_v13  ;;  %v830_v26 = vcombine.high %v796_v15, %v812_v13 }
 0x17e   : > { %v889_v27 = vrot.slane %v881_v16, %v3540_v7  ;;  %v896_v28 = vrot.slane %v882_v17, %v3540_v7  ;;  %v905_v29 = vrot.slane %v897_v18, %v3540_v7  ;;  %v912_v30 = vrot.slane %v898_v19, %v3540_v7 }
 0x17f   : > { %v821_v31 = vrot.slane %v813_v20, %v3540_v7  ;;  %v828_v32 = vrot.slane %v814_v22, %v3540_v7  ;;  %v837_v33 = vrot.slane %v829_v25, %v3540_v7  ;;  %v844_v34 = vrot.slane %v830_v26, %v3540_v7 }
 0x180   : > { %v985_v35 = vcombine.low %v889_v27, %v896_v28  ;;  %v2834_v36 = vcombine.high %v889_v27, %v896_v28  ;;  %v1001_v37 = vcombine.low %v905_v29, %v912_v30  ;;  %v2835_v39 = vcombine.high %v905_v29, %v912_v30 }
 0x181   : > { %v917_v40 = vcombine.low %v821_v31, %v828_v32  ;;  %v2832_v41 = vcombine.high %v821_v31, %v828_v32  ;;  %v933_v42 = vcombine.low %v837_v33, %v844_v34  ;;  %v2833_v43 = vcombine.high %v837_v33, %v844_v34 }
 0x182   : > { %v992_v45 = vrot.slane %v985_v35, %v3535_v61  ;;  %v1000_v47 = vrot.slane %v2834_v36, %v3535_v61  ;;  %v1008_v48 = vrot.slane %v1001_v37, %v3535_v61  ;;  %v1016_v49 = vrot.slane %v2835_v39, %v3535_v61 }
 0x183   : > { %v924_v50 = vrot.slane %v917_v40, %v3535_v61  ;;  %v932_v51 = vrot.slane %v2832_v41, %v3535_v61  ;;  %v940_v52 = vrot.slane %v933_v42, %v3535_v61  ;;  %v948_v53 = vrot.slane %v2833_v43, %v3535_v61 }
 0x184   : > { %v1017_v54 = vcombine.low %v992_v45, %v1000_v47  ;;  %v1018_v55 = vcombine.high %v992_v45, %v1000_v47  ;;  %v1033_v56 = vcombine.low %v1008_v48, %v1016_v49  ;;  %v1034_v57 = vcombine.high %v1008_v48, %v1016_v49 }
 0x185   : > { %v949_v58 = vcombine.low %v924_v50, %v932_v51  ;;  %v950_v59 = vcombine.high %v924_v50, %v932_v51  ;;  %v965_v60 = vcombine.low %v940_v52, %v948_v53  ;;  %v966_v62 = vcombine.high %v940_v52, %v948_v53 }
 0x186   : > { %v1025_v63 = vrot.slane %v1017_v54, %v3540_v7  ;;  %v1032_v0 = vrot.slane %v1018_v55, %v3540_v7  ;;  %v1041_v2 = vrot.slane %v1033_v56, %v3540_v7  ;;  %v1048_v3 = vrot.slane %v1034_v57, %v3540_v7 }
 0x187   : > { %v957_v4 = vrot.slane %v949_v58, %v3540_v7  ;;  %v964_v5 = vrot.slane %v950_v59, %v3540_v7  ;;  %v973_v6 = vrot.slane %v965_v60, %v3540_v7  ;;  %v980_v8 = vrot.slane %v966_v62, %v3540_v7 }
 0x188   : > { %v1049_v9 = vcombine.low %v1025_v63, %v1041_v2  ;;  %v1050_v10 = vcombine.high %v1025_v63, %v1041_v2  ;;  %v1051_v11 = vcombine.low %v1032_v0, %v1048_v3  ;;  %v1052_v12 = vcombine.high %v1032_v0, %v1048_v3 }
 0x189   : > { %v981_v13 = vcombine.low %v957_v4, %v973_v6  ;;  %v982_v14 = vcombine.high %v957_v4, %v973_v6  ;;  %v983_v15 = vcombine.low %v964_v5, %v980_v8  ;;  %v984_v16 = vcombine.high %v964_v5, %v980_v8 }
 0x18b   : > { %v1053_v17 = vpack.c.bf16 %v1049_v9, %v981_v13  ;;  %v1054_v18 = vpack.c.bf16 %v1050_v10, %v982_v14  ;;  %v1055_v19 = vpack.c.bf16 %v1051_v11, %v983_v15  ;;  %v1056_v20 = vpack.c.bf16 %v1052_v12, %v984_v16  ;;  %v754_v16 = vpop.f32.mrb[0].mxu1 }
 0x18d   : > { %1058 = vst.msk [vmem:[#allocation2] sm:$0xff] %vm1057_vm2, %v1053_v17  ;;  %1059 = vst.msk [vmem:[#allocation2 + $0x8] sm:$0xff] %vm1057_vm2, %v1054_v18  ;;  %v3015_v17 = vpop.f32.mrb[1].mxu1 }
 0x18e   : > { %1060 = vst.msk [vmem:[#allocation2 + $0x10] sm:$0xff] %vm1057_vm2, %v1055_v19  ;;  %1061 = vst.msk [vmem:[#allocation2 + $0x18] sm:$0xff] %vm1057_vm2, %v1056_v20  ;;  %v757_v18 = vpop.f32.mrb[2].mxu1  ;;  %v1817_v20 = vld [vmem:[%s521_s29] sm:$0x1] }
 0x18f   : > { %v3016_v19 = vpop.f32.mrb[3].mxu1  ;;  %vm1818_vm3 = vcmp.ne.s32.totalorder %v1817_v20, 0 }
 0x191   : > { %v1477_v22 = vpop.permute.xlu1 %1476  ;;  %v1474_v25 = vpop.permute.xlu0 %1473 }
 0x192   : > { %v1482_v26 = vcombine.low %v3516_v44, %v1477_v22  ;;  %v1483_v27 = vcombine.high %v3516_v44, %v1477_v22  ;;  %v1824_v22 = vsel %vm1818_vm3, 1, %v3263_v46 }
 0x194   : > { %v1622_v28 = vld [vmem:[#allocation2] sm:$0xff]  ;;  %v1490_v33 = vrot.slane %v1482_v26, %v3535_v61  ;;  %v1497_v34 = vrot.slane %v1483_v27, %v3535_v61  ;;  %v1623_v60 = vld [vmem:[#allocation2 + $0x8] sm:$0xff] }
 0x195   : > { %v1635_v29 = vsel %vm1057_vm2, %v1622_v28, 0  ;;  %v1480_v30 = vpop.permute.xlu0 %1479  ;;  %v1681_v63 = vsel %vm1057_vm2, %v1623_v60, 0  ;;  %v1624_v4 = vld [vmem:[#allocation2 + $0x10] sm:$0xff]  ;;  %v1625_v11 = vld [vmem:[#allocation2 + $0x18] sm:$0xff] }
 0x196   : > { %3038 = vmatpush3.bf16.xpose.msra.mxu1 %v1635_v29  ;;  %v1498_v31 = vcombine.low %v1474_v25, %v1480_v30  ;;  %v1499_v32 = vcombine.high %v1474_v25, %v1480_v30  ;;  %v1727_v9 = vsel %vm1057_vm2, %v1624_v4, 0  ;;  %v1773_v13 = vsel %vm1057_vm2, %v1625_v11, 0 }
 0x197   : > { %3043 = vmatprep.subr.bf16.mxu1 %v3258_v1  ;;  %v1828_v25 = vrot.slane %v1824_v22, %v3512_v38 }
 0x198   : > { %v1506_v35 = vrot.slane %v1498_v31, %v3535_v61  ;;  %v1513_v36 = vrot.slane %v1499_v32, %v3535_v61 }
 0x199   : > { %vm1829_vm4 = vcmp.eq.s32.totalorder %v1828_v25, 1 }
 0x19a   : > { %v1514_v37 = vcombine.low %v1490_v33, %v1506_v35  ;;  %v1515_v39 = vcombine.high %v1490_v33, %v1506_v35  ;;  %v1530_v44 = vcombine.low %v1497_v34, %v1513_v36  ;;  %v1531_v40 = vcombine.high %v1497_v34, %v1513_v36 }
 0x19c   : > { %v1522_v41 = vrot.slane %v1514_v37, %v3540_v7  ;;  %v1529_v42 = vrot.slane %v1515_v39, %v3540_v7  ;;  %v1538_v43 = vrot.slane %v1530_v44, %v3540_v7  ;;  %v1545_v45 = vrot.slane %v1531_v40, %v3540_v7 }
 0x19e   : > { %v1550_v47 = vcombine.low %v1522_v41, %v1529_v42  ;;  %v2848_v48 = vcombine.high %v1522_v41, %v1529_v42  ;;  %v1566_v49 = vcombine.low %v1538_v43, %v1545_v45  ;;  %v2849_v50 = vcombine.high %v1538_v43, %v1545_v45 }
 0x19f   : > { %v670_v43 = vsub.s32 2, %v3451_v21 }
 0x1a0   : > { %v1557_v51 = vrot.slane %v1550_v47, %v3535_v61  ;;  %v1565_v52 = vrot.slane %v2848_v48, %v3535_v61  ;;  %v1573_v53 = vrot.slane %v1566_v49, %v3535_v61  ;;  %v1581_v54 = vrot.slane %v2849_v50, %v3535_v61 }
 0x1a1   : > { %v671_v49 = vrot.slane %v3463_v24, %v670_v43 }
 0x1a2   : > { %v1582_v55 = vcombine.low %v1557_v51, %v1565_v52  ;;  %v1598_v56 = vcombine.low %v1573_v53, %v1581_v54  ;;  %v1583_v0 = vcombine.high %v1557_v51, %v1565_v52  ;;  %v1599_v2 = vcombine.high %v1573_v53, %v1581_v54  ;;  %v1822_v26 = vpop.permute.xlu1 %1821 }
 0x1a3   : > { %vm1823_vm5 = vcmp.eq.s32.totalorder %v1822_v26, 1  ;;  %v3641_v53 = vadd.f32 %v754_v16, %v671_v49 }
 0x1a4   : > { %v1590_v57 = vrot.slane %v1582_v55, %v3540_v7  ;;  %v1606_v58 = vrot.slane %v1598_v56, %v3540_v7  ;;  %v1597_v6 = vrot.slane %v1583_v0, %v3540_v7  ;;  %v1613_v8 = vrot.slane %v1599_v2, %v3540_v7  ;;  %vm3622_vm6 = vmor %vm1823_vm5, %vm1829_vm4 }
 0x1a6   : > { %v1614_v59 = vcombine.low %v1590_v57, %v1606_v58  ;;  %v1615_v3 = vcombine.high %v1590_v57, %v1606_v58  ;;  %v1616_v10 = vcombine.low %v1597_v6, %v1613_v8  ;;  %v1617_v14 = vcombine.high %v1597_v6, %v1613_v8 }
 0x1a7   : > { %v758_v57 = vadd.f32 %v757_v18, %v671_v49 }
 0x1a8   : > { %v1618_v62 = vpack.c.bf16 %v1614_v59, %v1614_v59  ;;  %v1619_v5 = vpack.c.bf16 %v1615_v3, %v1615_v3  ;;  %v1620_v12 = vpack.c.bf16 %v1616_v10, %v1616_v10  ;;  %v1621_v15 = vpack.c.bf16 %v1617_v14, %v1617_v14 }
 0x1aa   : > { %3040 = vmatmul.mubr.msk.bf16.vlgmr.msra.gmra.mrb[4].mxu1 %vm1057_vm2, %v1618_v62 }
 0x1ab   : > { %3044 = vmatpush3.bf16.xpose.msra.mxu1 %v1681_v63  ;;  %3045 = vmatprep.mubr.msk.bf16.mxu1 %vm3259_vm0, %v3258_v1 }
 0x1ac   : > { %3049 = vmatprep.subr.bf16.mxu1 %v3258_v1 }
 0x1b2   : > { %3046 = vmatmul.mubr.msk.bf16.vlgmr.msra.gmra.mrb[8].mxu1 %vm1057_vm2, %v1619_v5 }
 0x1b3   : > { %3050 = vmatpush3.bf16.xpose.msra.mxu1 %v1727_v9  ;;  %3051 = vmatprep.mubr.msk.bf16.mxu1 %vm3259_vm0, %v3258_v1 }
 0x1b4   : > { %3055 = vmatprep.subr.bf16.mxu1 %v3258_v1 }
 0x1ba   : > { %3052 = vmatmul.mubr.msk.bf16.vlgmr.msra.gmra.mrb[12].mxu1 %vm1057_vm2, %v1620_v12 }
 0x1bb   : > { %3056 = vmatpush3.bf16.xpose.msra.mxu1 %v1773_v13  ;;  %3057 = vmatprep.mubr.msk.bf16.mxu1 %vm3259_vm0, %v3258_v1 }
 0x1bc   : > { %3061 = vmatprep.subr.bf16.mxu1 %v3258_v1 }
 0x1c2   : > { %3058 = vmatmul.mubr.msk.bf16.vlgmr.msra.gmra.mrb[16].mxu1 %vm1057_vm2, %v1621_v15 }
 0x1c3   : > { %3063 = vmatprep.mubr.msk.bf16.mxu1 %vm3259_vm0, %v3258_v1 }
 0x27d   : > { %v1671_v28 = vpop.f32.mrb[4].mxu1 }
 0x27e   : > { %v1833_v29 = vsel %vm3622_vm6, -1e+12, %v1671_v28  ;;  %v3041_v30 = vpop.f32.mrb[5].mxu1 }
 0x27f   : > { %v1674_v31 = vpop.f32.mrb[6].mxu1  ;;  %v1838_v32 = vsel %vm1837_vm7, %v1833_v29, -inf }
 0x280   : > { %1839 = vmax.xlane.f32.xlu0 %v1838_v32  ;;  %v3042_v33 = vpop.f32.mrb[7].mxu1 }
 0x285   : > { %v1717_v34 = vpop.f32.mrb[8].mxu1 }
 0x286   : > { %v1834_v35 = vsel %vm3622_vm6, -1e+12, %v1717_v34  ;;  %v3047_v36 = vpop.f32.mrb[9].mxu1 }
 0x287   : > { %v1720_v37 = vpop.f32.mrb[10].mxu1  ;;  %v1841_v39 = vsel %vm1837_vm7, %v1834_v35, -inf }
 0x288   : > { %1842 = vmax.xlane.f32.xlu1 %v1841_v39  ;;  %v3048_v44 = vpop.f32.mrb[11].mxu1 }
 0x28d   : > { %v1763_v40 = vpop.f32.mrb[12].mxu1 }
 0x28e   : > { %v1835_v41 = vsel %vm3622_vm6, -1e+12, %v1763_v40  ;;  %v3053_v42 = vpop.f32.mrb[13].mxu1 }
 0x28f   : > { %v1766_v45 = vpop.f32.mrb[14].mxu1  ;;  %v1844_v47 = vsel %vm1837_vm7, %v1835_v41, -inf }
 0x290   : > { %1845 = vmax.xlane.f32.xlu0 %v1844_v47  ;;  %v3054_v48 = vpop.f32.mrb[15].mxu1 }
 0x295   : > { %v1809_v50 = vpop.f32.mrb[16].mxu1 }
 0x296   : > { %v1836_v51 = vsel %vm3622_vm6, -1e+12, %v1809_v50  ;;  %v3059_v52 = vpop.f32.mrb[17].mxu1 }
 0x297   : > { %v1812_v54 = vpop.f32.mrb[18].mxu1  ;;  %v1847_v55 = vsel %vm1837_vm7, %v1836_v51, -inf }
 0x298   : > { %1848 = vmax.xlane.f32.xlu0 %v1847_v55  ;;  %v3060_v56 = vpop.f32.mrb[19].mxu1 }
 0x299   : > { %1064 = vrot.lane.b32.xlu1 %v3641_v53, %s3261_s16 }
 0x29d   : > { %1070 = vrot.lane.b32.xlu1 %v3641_v53, %s3260_s15 }
 0x2a1   : > { %1072 = vrot.lane.b32.xlu1 %v758_v57, %s3260_s15 }
 0x2a5   : > { %1078 = vrot.lane.b32.xlu1 %v758_v57, %s3262_s24 }
 0x2ae   : > { %1066 = vrot.lane.b32.xlu0 %v758_v57, %s3261_s16 }
 0x2b2   : > { %1076 = vrot.lane.b32.xlu0 %v3641_v53, %s3262_s24 }
 0x30d   : > { %v1840_v24 = vpop.xlane.xlu0 %1839 }
 0x30e   : > { %v1850_v58 = vsub.f32 %v1833_v29, %v1840_v24 }
 0x310   : > { %v1854_v59 = vmul.f32 1.442695, %v1850_v58 }
 0x312   : > { %3212 = vpow2.f32 %v1854_v59 }
 0x315   : > { %v1843_v60 = vpop.xlane.xlu1 %1842 }
 0x316   : > { %v1851_v62 = vsub.f32 %v1834_v35, %v1843_v60 }
 0x318   : > { %v1856_v63 = vmul.f32 1.442695, %v1851_v62 }
 0x319   : > { %v1065_v0 = vpop.permute.xlu1 %1064 }
 0x31a   : > { %3214 = vpow2.f32 %v1856_v63 }
 0x31c   : > { %v3653_v2 = vpop.eup %3212 }
 0x31d   : > { %v1071_v3 = vpop.permute.xlu1 %1070  ;;  %v1846_v4 = vpop.xlane.xlu0 %1845  ;;  %v1862_v5 = vsel %vm1837_vm7, %v3653_v2, 0.0 }
 0x31e   : > { %v1852_v6 = vsub.f32 %v1835_v41, %v1846_v4  ;;  %1863 = vadd.xlane.f32.xlu0 %v1862_v5  ;;  %v1082_v29 = vcombine.low %v3641_v53, %v1071_v3  ;;  %v1083_v30 = vcombine.high %v3641_v53, %v1071_v3 }
 0x320   : > { %v1858_v8 = vmul.f32 1.442695, %v1852_v6  ;;  %v1090_v45 = vrot.slane %v1082_v29, %v3535_v61  ;;  %v1097_v47 = vrot.slane %v1083_v30, %v3535_v61 }
 0x321   : > { %v1073_v9 = vpop.permute.xlu1 %1072 }
 0x322   : > { %3216 = vpow2.f32 %v1858_v8  ;;  %v1150_v14 = vcombine.low %v758_v57, %v1073_v9  ;;  %v1151_v15 = vcombine.high %v758_v57, %v1073_v9 }
 0x324   : > { %v3657_v10 = vpop.eup %3214  ;;  %v1158_v25 = vrot.slane %v1150_v14, %v3535_v61  ;;  %v1165_v26 = vrot.slane %v1151_v15, %v3535_v61 }
 0x325   : > { %v1849_v11 = vpop.xlane.xlu0 %1848  ;;  %v1865_v12 = vsel %vm1837_vm7, %v3657_v10, 0.0  ;;  %v1079_v16 = vpop.permute.xlu1 %1078 }
 0x326   : > { %1866 = vadd.xlane.f32.xlu1 %v1865_v12  ;;  %v1853_v13 = vsub.f32 %v1836_v51, %v1849_v11 }
 0x328   : > { %v1860_v20 = vmul.f32 1.442695, %v1853_v13 }
 0x329   : > { %v1067_v17 = vpop.permute.xlu0 %1066 }
 0x32a   : > { %v1166_v18 = vcombine.low %v1067_v17, %v1079_v16  ;;  %v1167_v19 = vcombine.high %v1067_v17, %v1079_v16  ;;  %3218 = vpow2.f32 %v1860_v20 }
 0x32c   : > { %v3661_v22 = vpop.eup %3216  ;;  %v1174_v27 = vrot.slane %v1166_v18, %v3535_v61  ;;  %v1181_v28 = vrot.slane %v1167_v19, %v3535_v61 }
 0x32d   : > { %v1077_v31 = vpop.permute.xlu0 %1076  ;;  %v1868_v32 = vsel %vm1837_vm7, %v3661_v22, 0.0 }
 0x32e   : > { %v1182_v33 = vcombine.low %v1158_v25, %v1174_v27  ;;  %v1183_v34 = vcombine.high %v1158_v25, %v1174_v27  ;;  %v1198_v35 = vcombine.low %v1165_v26, %v1181_v28  ;;  %v1199_v36 = vcombine.high %v1165_v26, %v1181_v28  ;;  %1869 = vadd.xlane.f32.xlu0 %v1868_v32 }
 0x32f   : > { %v1098_v37 = vcombine.low %v1065_v0, %v1077_v31  ;;  %v1099_v39 = vcombine.high %v1065_v0, %v1077_v31 }
 0x330   : > { %v1190_v44 = vrot.slane %v1182_v33, %v3540_v7  ;;  %v1197_v40 = vrot.slane %v1183_v34, %v3540_v7  ;;  %v1206_v41 = vrot.slane %v1198_v35, %v3540_v7  ;;  %v1213_v42 = vrot.slane %v1199_v36, %v3540_v7 }
 0x331   : > { %v1106_v48 = vrot.slane %v1098_v37, %v3535_v61  ;;  %v1113_v49 = vrot.slane %v1099_v39, %v3535_v61 }
 0x332   : > { %v1286_v50 = vcombine.low %v1190_v44, %v1197_v40  ;;  %v2838_v51 = vcombine.high %v1190_v44, %v1197_v40  ;;  %v1302_v52 = vcombine.low %v1206_v41, %v1213_v42  ;;  %v2839_v53 = vcombine.high %v1206_v41, %v1213_v42 }
 0x333   : > { %v1114_v54 = vcombine.low %v1090_v45, %v1106_v48  ;;  %v1115_v55 = vcombine.high %v1090_v45, %v1106_v48  ;;  %v1130_v56 = vcombine.low %v1097_v47, %v1113_v49  ;;  %v1131_v57 = vcombine.high %v1097_v47, %v1113_v49 }
 0x334   : > { %v1293_v24 = vrot.slane %v1286_v50, %v3535_v61  ;;  %v1301_v58 = vrot.slane %v2838_v51, %v3535_v61  ;;  %v1309_v59 = vrot.slane %v1302_v52, %v3535_v61  ;;  %v1317_v60 = vrot.slane %v2839_v53, %v3535_v61  ;;  %v3687_v14 = vpop.eup %3218 }
 0x335   : > { %v1122_v62 = vrot.slane %v1114_v54, %v3540_v7  ;;  %v1129_v63 = vrot.slane %v1115_v55, %v3540_v7  ;;  %v1138_v0 = vrot.slane %v1130_v56, %v3540_v7  ;;  %v1145_v3 = vrot.slane %v1131_v57, %v3540_v7 }
 0x336   : > { %v1318_v4 = vcombine.low %v1293_v24, %v1301_v58  ;;  %v1319_v5 = vcombine.high %v1293_v24, %v1301_v58  ;;  %v1334_v6 = vcombine.low %v1309_v59, %v1317_v60  ;;  %v1335_v8 = vcombine.high %v1309_v59, %v1317_v60 }
 0x337   : > { %v1218_v9 = vcombine.low %v1122_v62, %v1129_v63  ;;  %v2836_v11 = vcombine.high %v1122_v62, %v1129_v63  ;;  %v1234_v12 = vcombine.low %v1138_v0, %v1145_v3  ;;  %v2837_v13 = vcombine.high %v1138_v0, %v1145_v3 }
 0x338   : > { %v1326_v19 = vrot.slane %v1318_v4, %v3540_v7  ;;  %v1333_v20 = vrot.slane %v1319_v5, %v3540_v7  ;;  %v1342_v25 = vrot.slane %v1334_v6, %v3540_v7  ;;  %v1349_v26 = vrot.slane %v1335_v8, %v3540_v7  ;;  %v3165_v8 = vld [vmem:[%s3917_s7 + $0x8] sm:$0xff]  }
 0x339   : > { %v1225_v15 = vrot.slane %v1218_v9, %v3535_v61  ;;  %v1233_v16 = vrot.slane %v2836_v11, %v3535_v61  ;;  %v1241_v17 = vrot.slane %v1234_v12, %v3535_v61  ;;  %v1249_v18 = vrot.slane %v2837_v13, %v3535_v61  ;;  %v3166_v9 = vld [vmem:[%s3917_s7 + $0x10] sm:$0xff]   ;;  %v3168_v11 = vld [vmem:[%s3917_s7 + $0x20] sm:$0xff]   ;;  %v3169_v12 = vld [vmem:[%s3917_s7 + $0x28] sm:$0xff]  }
 0x33a   : > { %v1871_v31 = vsel %vm1837_vm7, %v3687_v14, 0.0  ;;  %v1350_v36 = vcombine.low %v1326_v19, %v1342_v25  ;;  %v1351_v37 = vcombine.high %v1326_v19, %v1342_v25  ;;  %v1352_v39 = vcombine.low %v1333_v20, %v1349_v26 }
 0x33b   : > { %v1250_v27 = vcombine.low %v1225_v15, %v1233_v16  ;;  %v1251_v28 = vcombine.high %v1225_v15, %v1233_v16  ;;  %v1266_v29 = vcombine.low %v1241_v17, %v1249_v18  ;;  %v1267_v30 = vcombine.high %v1241_v17, %v1249_v18  ;;  %1872 = vadd.xlane.f32.xlu0 %v1871_v31 }
 0x33c   : > { %v1353_v44 = vcombine.high %v1333_v20, %v1349_v26 }
 0x33d   : > { %v1258_v32 = vrot.slane %v1250_v27, %v3540_v7  ;;  %v1265_v33 = vrot.slane %v1251_v28, %v3540_v7  ;;  %v1274_v34 = vrot.slane %v1266_v29, %v3540_v7  ;;  %v1281_v35 = vrot.slane %v1267_v30, %v3540_v7 }
 0x33f   : > { %v1282_v40 = vcombine.low %v1258_v32, %v1274_v34  ;;  %v1283_v41 = vcombine.high %v1258_v32, %v1274_v34  ;;  %v1284_v42 = vcombine.low %v1265_v33, %v1281_v35  ;;  %v1285_v45 = vcombine.high %v1265_v33, %v1281_v35 }
 0x341   : > { %v1354_v47 = vpack.c.bf16 %v1350_v36, %v1282_v40  ;;  %v1355_v48 = vpack.c.bf16 %v1351_v37, %v1283_v41  ;;  %v1356_v49 = vpack.c.bf16 %v1352_v39, %v1284_v42  ;;  %v1357_v50 = vpack.c.bf16 %v1353_v44, %v1285_v45  ;;  %v3170_v41 = vld [vmem:[%s3917_s7 + $0x30] sm:$0xff]  }
 0x343   : > { %1358 = vst.msk [vmem:[#allocation3] sm:$0xff] %vm1057_vm2, %v1354_v47  ;;  %1359 = vst.msk [vmem:[#allocation3 + $0x8] sm:$0xff] %vm1057_vm2, %v1355_v48 }
 0x344   : > { %1360 = vst.msk [vmem:[#allocation3 + $0x10] sm:$0xff] %vm1057_vm2, %v1356_v49  ;;  %1361 = vst.msk [vmem:[#allocation3 + $0x18] sm:$0xff] %vm1057_vm2, %v1357_v50 }
 0x34a   : > { %v1626_v51 = vld [vmem:[#allocation3] sm:$0xff]  ;;  %v1627_v57 = vld [vmem:[#allocation3 + $0x8] sm:$0xff] }
 0x34b   : > { %3062 = vmatpush3.bf16.msra.mxu1 %v1626_v51  ;;  %v1628_v62 = vld [vmem:[#allocation3 + $0x10] sm:$0xff]  ;;  %v1629_v4 = vld [vmem:[#allocation3 + $0x18] sm:$0xff] }
 0x34c   : > { %3067 = vmatprep.subr.bf16.mxu1 %v3258_v1 }
 0x3ab   : > { %v1864_v52 = vpop.xlane.xlu0 %1863 }
 0x3ac   : > { %3220 = vrcp.f32 %v1864_v52 }
 0x3b3   : > { %v1867_v53 = vpop.xlane.xlu1 %1866 }
 0x3b4   : > { %3222 = vrcp.f32 %v1867_v53  ;;  %v3171_v53 = vld [vmem:[%s3917_s7 + $0x38] sm:$0xff]  }
 0x3b6   : > { %v3221_v54 = vpop.eup %3220 }
 0x3b7   : > { %v1878_v55 = vmul.f32 %v3221_v54, %v3653_v2 }
 0x3b9   : > { %v1882_v56 = vpack.c.bf16 %v1878_v55, %v1878_v55 }
 0x3bb   : > { %3064 = vmatmul.mubr.msk.bf16.vlgmr.msra.gmra.mrb[20].mxu1 %vm1837_vm7, %v1882_v56  ;;  %v1870_v24 = vpop.xlane.xlu0 %1869 }
 0x3bc   : > { %3068 = vmatpush3.bf16.msra.mxu1 %v1627_v57  ;;  %3224 = vrcp.f32 %v1870_v24  ;;  %3069 = vmatprep.mubr.msk.bf16.mxu1 %vm3259_vm0, %v3258_v1 }
 0x3bd   : > { %3073 = vmatprep.subr.bf16.mxu1 %v3258_v1 }
 0x3be   : > { %v3223_v58 = vpop.eup %3222 }
 0x3bf   : > { %v1879_v59 = vmul.f32 %v3223_v58, %v3657_v10 }
 0x3c1   : > { %v1883_v60 = vpack.c.bf16 %v1879_v59, %v1879_v59 }
 0x3c3   : > { %3070 = vmatmul.mubr.msk.bf16.vlgmr.msra.gmra.mrb[24].mxu1 %vm1837_vm7, %v1883_v60 }
 0x3c4   : > { %3074 = vmatpush3.bf16.msra.mxu1 %v1628_v62  ;;  %3075 = vmatprep.mubr.msk.bf16.mxu1 %vm3259_vm0, %v3258_v1 }
 0x3c5   : > { %3079 = vmatprep.subr.bf16.mxu1 %v3258_v1 }
 0x3c6   : > { %v3225_v2 = vpop.eup %3224 }
 0x3c7   : > { %v1880_v63 = vmul.f32 %v3225_v2, %v3661_v22  ;;  %v3164_v22 = vld [vmem:[%s3917_s7] sm:$0xff]  }
 0x3c8   : > { %v1873_v3 = vpop.xlane.xlu0 %1872  ;;  %3086 = vmatpush3.bf16.msra.mxu0 %v3164_v22 }
 0x3c9   : > { %v1884_v0 = vpack.c.bf16 %v1880_v63, %v1880_v63  ;;  %3226 = vrcp.f32 %v1873_v3  ;;  %3087 = vmatprep.subr.bf16.mxu0 %v3258_v1 }
 0x3cb   : > { %3076 = vmatmul.mubr.msk.bf16.vlgmr.msra.gmra.mrb[28].mxu1 %vm1837_vm7, %v1884_v0 }
 0x3cc   : > { %3080 = vmatpush3.bf16.msra.mxu1 %v1629_v4  ;;  %3081 = vmatprep.mubr.msk.bf16.mxu1 %vm3259_vm0, %v3258_v1 }
 0x3cd   : > { %3088 = vmatpush3.bf16.msra.mxu0 %v3165_v8 }
 0x3ce   : > { %3089 = vmatprep.subr.bf16.mxu0 %v3258_v1 }
 0x3d1   : > { %3090 = vmatpush3.bf16.msra.mxu0 %v3166_v9 }
 0x3d2   : > { %3091 = vmatprep.subr.bf16.mxu0 %v3258_v1 }
 0x3d3   : > { %v3227_v10 = vpop.eup %3226 }
 0x3d4   : > { %v1881_v5 = vmul.f32 %v3227_v10, %v3687_v14 }
 0x3d6   : > { %v1885_v6 = vpack.c.bf16 %v1881_v5, %v1881_v5 }
 0x3d8   : > { %3082 = vmatmul.mubr.msk.bf16.vlgmr.msra.gmra.mrb[32].mxu1 %vm1837_vm7, %v1885_v6 }
 0x3d9   : > { %2486 = vmatprep.mubr.bf16.mxu1 %v3263_v46  ;;  %v3167_v46 = vld [vmem:[%s3917_s7 + $0x18] sm:$0xff]  }
 0x3da   : > { %3092 = vmatpush3.bf16.msra.mxu0 %v3167_v46 }
 0x3db   : > { %3093 = vmatprep.subr.bf16.mxu0 %v3258_v1 }
 0x3de   : > { %3094 = vmatpush3.bf16.msra.mxu0 %v3168_v11 }
 0x3df   : > { %3095 = vmatprep.subr.bf16.mxu0 %v3258_v1 }
 0x3e2   : > { %3096 = vmatpush3.bf16.msra.mxu0 %v3169_v12 }
 0x3e3   : > { %3097 = vmatprep.subr.bf16.mxu0 %v3258_v1 }
 0x3e6   : > { %3098 = vmatpush3.bf16.msra.mxu0 %v3170_v41  ;;  %v3186_v41 = vld [vmem:[%s3919_s9 + $0x44] ss:$8 sps:$4 sm:$0xff]  }
 0x3e7   : > { %3099 = vmatprep.subr.bf16.mxu0 %v3258_v1 }
 0x3ea   : > { %3100 = vmatpush3.bf16.msra.mxu0 %v3171_v53  ;;  %v3197_v53 = vld [vmem:[%s3921_s11] sm:$0xff]  }
 0x48e   : > { %v1923_v13 = vpop.f32.mrb[20].mxu1 }
 0x48f   : > { %v3065_v14 = vpop.f32.mrb[21].mxu1 }
 0x490   : > { %v1926_v15 = vpop.f32.mrb[22].mxu1  ;;  %v2230_v14 = vsub.s32 3, %v3451_v21 }
 0x491   : > { %v3066_v16 = vpop.f32.mrb[23].mxu1  ;;  %v3780_v15 = vld [vmem:[%s3918_s8] sm:$0x3f] }
 0x492   : > { %v2231_v16 = vrot.slane %v3780_v15, %v2230_v14 }
 0x496   : > { %v1966_v17 = vpop.f32.mrb[24].mxu1 }
 0x497   : > { %v3071_v18 = vpop.f32.mrb[25].mxu1 }
 0x498   : > { %v1969_v19 = vpop.f32.mrb[26].mxu1 }
 0x499   : > { %v3072_v20 = vpop.f32.mrb[27].mxu1 }
 0x49e   : > { %v2009_v25 = vpop.f32.mrb[28].mxu1 }
 0x49f   : > { %v2058_v26 = vcombine.low %v1923_v13, %v2009_v25  ;;  %v2059_v27 = vcombine.high %v1923_v13, %v2009_v25  ;;  %v3077_v28 = vpop.f32.mrb[29].mxu1 }
 0x4a0   : > { %v2012_v29 = vpop.f32.mrb[30].mxu1 }
 0x4a1   : > { %v3078_v30 = vpop.f32.mrb[31].mxu1  ;;  %v2066_v36 = vrot.slane %v2058_v26, %v3535_v61  ;;  %v2073_v37 = vrot.slane %v2059_v27, %v3535_v61  ;;  %v3172_v29 = vld [vmem:[%s3919_s9] ss:$8 sps:$4 sm:$0xff]  }
 0x4a2   : > { %v3174_v30 = vld [vmem:[%s3919_s9 + $0x4] ss:$8 sps:$4 sm:$0xff]  }
 0x4a3   : > { %2454 = vmatprep.subr.bf16.mxu1 %v3174_v30  ;;  %v2344_v30 = vld [vmem:[%s3922_s12] sm:$0x7] }
 0x4a4   : > { %2455 = vmatpush1.bf16.msra.mxu1 %v3172_v29 }
 0x4ab   : > { %v2052_v31 = vpop.f32.mrb[32].mxu1 }
 0x4ac   : > { %v2074_v32 = vcombine.low %v1966_v17, %v2052_v31  ;;  %v2075_v33 = vcombine.high %v1966_v17, %v2052_v31  ;;  %v3083_v34 = vpop.f32.mrb[33].mxu1  ;;  %v3233_v17 = vld [vmem:[%s3442_s14] sm:$0xf]  ;;  %v3177_v31 = vld [vmem:[%s3919_s9 + $0x14] ss:$8 sps:$4 sm:$0xff]  }
 0x4ad   : > { %v2055_v35 = vpop.f32.mrb[34].mxu1  ;;  %v2320_v18 = vunpack.c.l.bf16 %v3233_v17  ;;  %2456 = vmatprep.subr.bf16.mxu1 %v3177_v31  ;;  %v3178_v34 = vld [vmem:[%s3919_s9 + $0x20] ss:$8 sps:$4 sm:$0xff]  }
 0x4ae   : > { %v2082_v39 = vrot.slane %v2074_v32, %v3535_v61  ;;  %v2089_v44 = vrot.slane %v2075_v33, %v3535_v61  ;;  %v3084_v40 = vpop.f32.mrb[35].mxu1  ;;  %v3175_v32 = vld [vmem:[%s3919_s9 + $0x10] ss:$8 sps:$4 sm:$0xff]   ;;  %v3180_v33 = vld [vmem:[%s3919_s9 + $0x24] ss:$8 sps:$4 sm:$0xff]  }
 0x4af   : > { %2457 = vmatpush1.bf16.msra.mxu1 %v3175_v32  ;;  %v3181_v40 = vld [vmem:[%s3919_s9 + $0x30] ss:$8 sps:$4 sm:$0xff]   ;;  %v2534_v32 = vrot.slane %v2344_v30, %v3512_v38 }
 0x4b0   : > { %v2090_v42 = vcombine.low %v2066_v36, %v2082_v39  ;;  %v2091_v45 = vcombine.high %v2066_v36, %v2082_v39  ;;  %v2106_v47 = vcombine.low %v2073_v37, %v2089_v44  ;;  %v2107_v48 = vcombine.high %v2073_v37, %v2089_v44  ;;  %2458 = vmatprep.subr.bf16.mxu1 %v3180_v33  ;;  %v3183_v44 = vld [vmem:[%s3919_s9 + $0x34] ss:$8 sps:$4 sm:$0xff]  }
 0x4b2   : > { %v2098_v49 = vrot.slane %v2090_v42, %v3540_v7  ;;  %v2105_v50 = vrot.slane %v2091_v45, %v3540_v7  ;;  %v2114_v51 = vrot.slane %v2106_v47, %v3540_v7  ;;  %v2121_v52 = vrot.slane %v2107_v48, %v3540_v7  ;;  %v3184_v42 = vld [vmem:[%s3919_s9 + $0x40] ss:$8 sps:$4 sm:$0xff]   ;;  %v3189_v45 = vld [vmem:[%s3919_s9 + $0x54] ss:$8 sps:$4 sm:$0xff]   ;;  %v3187_v47 = vld [vmem:[%s3919_s9 + $0x50] ss:$8 sps:$4 sm:$0xff]  }
 0x4b3   : > { %2459 = vmatpush1.bf16.msra.mxu1 %v3178_v34  ;;  %v3192_v48 = vld [vmem:[%s3919_s9 + $0x64] ss:$8 sps:$4 sm:$0xff]  }
 0x4b4   : > { %v2126_v54 = vcombine.low %v2098_v49, %v2105_v50  ;;  %v2858_v55 = vcombine.high %v2098_v49, %v2105_v50  ;;  %v2142_v56 = vcombine.low %v2114_v51, %v2121_v52  ;;  %v2859_v57 = vcombine.high %v2114_v51, %v2121_v52  ;;  %2460 = vmatprep.subr.bf16.mxu1 %v3183_v44  ;;  %v3190_v49 = vld [vmem:[%s3919_s9 + $0x60] ss:$8 sps:$4 sm:$0xff]   ;;  %v3195_v50 = vld [vmem:[%s3919_s9 + $0x74] ss:$8 sps:$4 sm:$0xff]   ;;  %v3193_v51 = vld [vmem:[%s3919_s9 + $0x70] ss:$8 sps:$4 sm:$0xff]  }
 0x4b5   : > { %v3196_v52 = vld [vmem:[%s3921_s11 + $0x40] sm:$0xff]  }
 0x4b6   : > { %v2133_v24 = vrot.slane %v2126_v54, %v3535_v61  ;;  %v2141_v58 = vrot.slane %v2858_v55, %v3535_v61  ;;  %v2149_v59 = vrot.slane %v2142_v56, %v3535_v61  ;;  %v2157_v60 = vrot.slane %v2859_v57, %v3535_v61  ;;  %v3198_v54 = vld [vmem:[%s3921_s11 + $0x48] sm:$0xff]   ;;  %2955 = vmatprep.subr.bf16.mxu0 %v3196_v52  ;;  %v3200_v56 = vld [vmem:[%s3921_s11 + $0x50] sm:$0xff]  }
 0x4b7   : > { %2461 = vmatpush1.bf16.msra.mxu1 %v3181_v40  ;;  %v3199_v55 = vld [vmem:[%s3921_s11 + $0x8] sm:$0xff]   ;;  %v3201_v57 = vld [vmem:[%s3921_s11 + $0x10] sm:$0xff]  }
 0x4b8   : > { %v2159_v62 = vcombine.high %v2133_v24, %v2141_v58  ;;  %v2175_v2 = vcombine.high %v2149_v59, %v2157_v60  ;;  %v2158_v1 = vcombine.low %v2133_v24, %v2141_v58  ;;  %v2174_v63 = vcombine.low %v2149_v59, %v2157_v60  ;;  %2462 = vmatprep.subr.bf16.mxu1 %v3186_v41  ;;  %v3202_v24 = vld [vmem:[%s3921_s11 + $0x58] sm:$0xff]   ;;  %v3204_v59 = vld [vmem:[%s3921_s11 + $0x60] sm:$0xff]  }
 0x4b9   : > { %v3203_v58 = vld [vmem:[%s3921_s11 + $0x18] sm:$0xff]   ;;  %v3205_v60 = vld [vmem:[%s3921_s11 + $0x20] sm:$0xff]  }
 0x4ba   : > { %v2173_v0 = vrot.slane %v2159_v62, %v3540_v7  ;;  %v2189_v3 = vrot.slane %v2175_v2, %v3540_v7  ;;  %v2166_v4 = vrot.slane %v2158_v1, %v3540_v7  ;;  %v2182_v10 = vrot.slane %v2174_v63, %v3540_v7  ;;  %v3206_v62 = vld [vmem:[%s3921_s11 + $0x68] sm:$0xff]  }
 0x4bb   : > { %2463 = vmatpush1.bf16.msra.mxu1 %v3184_v42  ;;  %v3207_v2 = vld [vmem:[%s3921_s11 + $0x28] sm:$0xff]  }
 0x4bc   : > { %v2192_v5 = vcombine.low %v2173_v0, %v2189_v3  ;;  %v2191_v6 = vcombine.high %v2166_v4, %v2182_v10  ;;  %v2193_v22 = vcombine.high %v2173_v0, %v2189_v3  ;;  %v2190_v8 = vcombine.low %v2166_v4, %v2182_v10  ;;  %2464 = vmatprep.subr.bf16.mxu1 %v3189_v45 }
 0x4bd   : > { %v2336_v3 = vsub.s32 4, %v3451_v21  ;;  %v2341_v4 = vsub.s32 5, %v3451_v21 }
 0x4be   : > { %2199 = vrot.lane.b32.xlu0 %v2192_v5, %s3260_s15  ;;  %2195 = vrot.lane.b32.xlu1 %v2191_v6, %s3262_s24 }
 0x4bf   : > { %2465 = vmatpush1.bf16.msra.mxu1 %v3187_v47  ;;  %v2337_v10 = vrot.slane %v3780_v15, %v2336_v3 }
 0x4c0   : > { %2466 = vmatprep.subr.bf16.mxu1 %v3192_v48 }
 0x4c2   : > { %2203 = vrot.lane.b32.xlu1 %v2193_v22, %s3261_s16  ;;  %v2342_v22 = vrot.slane %v3780_v15, %v2341_v4 }
 0x4c3   : > { %2467 = vmatpush1.bf16.msra.mxu1 %v3190_v49  ;;  %v2686_v49 = vrot.slane %v2344_v30, %v3458_v23 }
 0x4c4   : > { %2468 = vmatprep.subr.bf16.mxu1 %v3195_v50  ;;  %v2691_v50 = vrot.slane %v2344_v30, %v670_v43 }
 0x4c7   : > { %2469 = vmatpush1.bf16.msra.mxu1 %v3193_v51 }
 0x530   : > { %v2196_v61 = vpop.permute.xlu1 %2195  ;;  %v2200_v9 = vpop.permute.xlu0 %2199 }
 0x531   : > { %v2206_v46 = vsel %vm1057_vm2, %v2190_v8, %v2196_v61 }
 0x532   : > { %v2208_v12 = vsel %vm2207_vm8, %v2206_v46, %v2200_v9  ;;  %v3208_v46 = vld [vmem:[%s3921_s11 + $0x70] sm:$0xff]  }
 0x534   : > { %v2204_v11 = vpop.permute.xlu1 %2203 }
 0x535   : > { %v2210_v7 = vsel %vm2209_vm9, %v2208_v12, %v2204_v11  ;;  %v3209_v11 = vld [vmem:[%s3921_s11 + $0x30] sm:$0xff]   ;;  %v3210_v12 = vld [vmem:[%s3921_s11 + $0x78] sm:$0xff]  }
 0x536   : > { %v2211_v13 = vpack.c.bf16 %v2210_v7, %v2210_v7  ;;  %v3211_v7 = vld [vmem:[%s3921_s11 + $0x38] sm:$0xff]  }
 0x538   : > { %3102 = vmatmul.mubr.bf16.vlgmr.msra.gmra.mrb[8].mxu0 %v2211_v13  ;;  %v2362_v13 = vld [vmem:[%s3920_s10] sm:$0x3] }
 0x539   : > { %2956 = vmatpush3.bf16.msra.mxu0 %v3197_v53  ;;  %v2367_v14 = vrot.slane %v2362_v13, %v3512_v38  ;;  %v2371_v15 = vrot.slane %v2362_v13, %v3458_v23 }
 0x53a   : > { %2957 = vmatprep.subr.bf16.mxu0 %v3198_v54 }
 0x53d   : > { %2958 = vmatpush3.bf16.msra.mxu0 %v3199_v55 }
 0x53e   : > { %2959 = vmatprep.subr.bf16.mxu0 %v3200_v56 }
 0x541   : > { %2960 = vmatpush3.bf16.msra.mxu0 %v3201_v57 }
 0x542   : > { %2961 = vmatprep.subr.bf16.mxu0 %v3202_v24 }
 0x545   : > { %2962 = vmatpush3.bf16.msra.mxu0 %v3203_v58 }
 0x546   : > { %2963 = vmatprep.subr.bf16.mxu0 %v3204_v59 }
 0x549   : > { %2964 = vmatpush3.bf16.msra.mxu0 %v3205_v60 }
 0x54a   : > { %2965 = vmatprep.subr.bf16.mxu0 %v3206_v62 }
 0x54d   : > { %2966 = vmatpush3.bf16.msra.mxu0 %v3207_v2 }
 0x54e   : > { %2967 = vmatprep.subr.bf16.mxu0 %v3208_v46 }
 0x551   : > { %2968 = vmatpush3.bf16.msra.mxu0 %v3209_v11 }
 0x552   : > { %2969 = vmatprep.subr.bf16.mxu0 %v3210_v12 }
 0x555   : > { %2970 = vmatpush3.bf16.msra.mxu0 %v3211_v7 }
 0x60b   : > { %v2314_v19 = vpop.f32.mrb[8].mxu0 }
 0x60c   : > { %v2315_v20 = vadd.f32 %v2314_v19, %v2231_v16  ;;  %v3103_v25 = vpop.f32.mrb[9].mxu0 }
 0x60d   : > { %v2317_v26 = vpop.f32.mrb[10].mxu0 }
 0x60e   : > { %v3104_v27 = vpop.f32.mrb[11].mxu0  ;;  %v2321_v28 = vadd.f32 %v2320_v18, %v2315_v20 }
 0x610   : > { %2322 = vadd.xlane.f32.xlu1 %v2321_v28 }
 0x69d   : > { %v2323_v35 = vpop.xlane.xlu1 %2322 }
 0x69e   : > { %v2325_v36 = vmul.f32 0.0078125, %v2323_v35 }
 0x6a0   : > { %v2326_v37 = vsub.f32 %v2321_v28, %v2325_v36 }
 0x6a2   : > { %v2327_v39 = vmul.f32 %v2326_v37, %v2326_v37 }
 0x6a4   : > { %2328 = vadd.xlane.f32.xlu0 %v2327_v39 }
 0x731   : > { %v2329_v1 = vpop.xlane.xlu0 %2328 }
 0x732   : > { %v2330_v63 = vmul.f32 0.0078125, %v2329_v1 }
 0x734   : > { %v2331_v0 = vadd.f32 1e-05, %v2330_v63 }
 0x736   : > { %3228 = vrsqrt.f32 %v2331_v0 }
 0x740   : > { %v3229_v5 = vpop.eup %3228 }
 0x741   : > { %v2333_v6 = vmul.f32 %v3229_v5, %v2326_v37 }
 0x743   : > { %v2338_v8 = vmul.f32 %v2337_v10, %v2333_v6 }
 0x745   : > { %v2343_v61 = vadd.f32 %v2342_v22, %v2338_v8 }
 0x747   : > { %v2345_v9 = vpack.c.bf16 %v2343_v61, %v2343_v61 }
 0x749   : > { %2487 = vmatmul.mubr.bf16.vlgmr.msra.gmra.mrb[36].mxu1 %v2345_v9 }
 0x81c   : > { %v2488_v16 = vpop.f32.mrb[36].mxu1 }
 0x81d   : > { %v2489_v17 = vadd.f32 %v2488_v16, %v2367_v14  ;;  %v2490_v18 = vpop.f32.mrb[37].mxu1 }
 0x81e   : > { %v2491_v19 = vadd.f32 %v2490_v18, %v2371_v15  ;;  %v2492_v20 = vpop.f32.mrb[38].mxu1 }
 0x81f   : > { %v2495_v25 = vmax.f32 %v2489_v17, 0.0  ;;  %v2493_v26 = vpop.f32.mrb[39].mxu1 }
 0x820   : > { %v2496_v27 = vmax.f32 %v2491_v19, 0.0 }
 0x821   : > { %v2497_v29 = vpack.c.bf16 %v2495_v25, %v2495_v25 }
 0x822   : > { %v2498_v28 = vpack.c.bf16 %v2496_v27, %v2496_v27 }
 0x824   : > { %2663 = vmatprep.mubr.bf16.mxu0 %v2498_v28 }
 0x825   : > { %2664 = vmatmul.mubr.bf16.vlgmr.msra.gmra.mrb[12].mxu0 %v2497_v29 }
 0x8f8   : > { %v2971_v31 = vpop.f32.mrb[12].mxu0 }
 0x8f9   : > { %v2972_v33 = vpop.f32.mrb[13].mxu0 }
 0x8fa   : > { %v2973_v34 = vadd.f32 %v2972_v33, %v2971_v31  ;;  %v2974_v35 = vpop.f32.mrb[14].mxu0 }
 0x8fb   : > { %v2975_v36 = vpop.f32.mrb[15].mxu0 }
 0x8fc   : > { %v2666_v37 = vadd.f32 %v2973_v34, %v2534_v32 }
 0x8fe   : > { %v2671_v39 = vadd.f32 %v2666_v37, %v2343_v61 }
 0x900   : > { %2672 = vadd.xlane.f32.xlu0 %v2671_v39 }
 0x98d   : > { %v2673_v44 = vpop.xlane.xlu0 %2672 }
 0x98e   : > { %v2674_v40 = vmul.f32 0.0078125, %v2673_v44 }
 0x990   : > { %v2675_v41 = vsub.f32 %v2671_v39, %v2674_v40 }
 0x992   : > { %v2676_v42 = vmul.f32 %v2675_v41, %v2675_v41 }
 0x994   : > { %2677 = vadd.xlane.f32.xlu1 %v2676_v42 }
 0xa21   : > { %v2678_v45 = vpop.xlane.xlu1 %2677 }
 0xa22   : > { %v2679_v47 = vmul.f32 0.0078125, %v2678_v45 }
 0xa24   : > { %v2680_v48 = vadd.f32 1e-05, %v2679_v47 }
 0xa26   : > { %3230 = vrsqrt.f32 %v2680_v48 }
 0xa30   : > { %v3231_v38 = vpop.eup %3230 }
 0xa31   : > { %v2682_v51 = vmul.f32 %v3231_v38, %v2675_v41 }
 0xa33   : > { %v2687_v52 = vmul.f32 %v2686_v49, %v2682_v51 }
 0xa35   : > { %v2692_v53 = vadd.f32 %v2691_v50, %v2687_v52 }
 0xa37   : > { %v2693_v54 = vpack.c.bf16 %v2692_v53, %v2692_v53 }
 0xa39   : > { %2694 = vst [vmem:[%s528_s30] sm:$0xf] %v2693_v54 }
 0xa3a PF: > { %s23_s27 = sadd.s32 1, %s3256_s27   ;;  %s3926_s25 = smov %s3252_s26 }
 0xa3b   : > { %p20_p5 = scmp.ge.s32.totalorder %s23_s27, 4   ;;  %s3927_s26 = smov %s3929_s28 }
 0xa3d   :  { %22 = sbr.rel (!%p20_p5) target bundleno = 2 (0x2), region = 115 }

</bundles_post_ra>
